<compile_context>
chip_gen: v7x
topology: tpu7x:2x2x1
jax: 0.10.0
libtpu: 0.0.40
codegen_flags: <defaults>
</compile_context>

<pallas_src>
import functools

import jax
import jax.numpy as jnp
from jax.experimental import pallas as pl
from jax.experimental.pallas import tpu as pltpu


def _lstm_kernel(gx_ref, wh_ref, hseq_ref, cfin_ref, h_sc, c_sc, *,
                 hidden, time_block):
    """One grid step: `time_block` LSTM steps for one batch block.

    gx_ref:   (Tt, Bb, 4H) f32  -- precomputed x@W_x + b (gate order f,i,o,g)
    wh_ref:   (H, 4H)       bf16/f32 -- recurrent weights (resident)
    hseq_ref: (Tt, Bb, H)   -- hidden states for this time block
    cfin_ref: (1, Bb, H)    -- final cell state (written on last time block)
    h_sc/c_sc: (Bb, H) f32  -- carries across time blocks
    """
    t = pl.program_id(1)

    @pl.when(t == 0)
    def _init():
        h_sc[...] = jnp.zeros_like(h_sc)
        c_sc[...] = jnp.zeros_like(c_sc)

    H = hidden
    w_h = wh_ref[...]                          # load once, reused every step

    def step(i, carry):
        h_prev, c_prev = carry                 # f32 (Bb, H)
        # Only the recurrent matmul is on the serial path; x-projection + bias
        # were hoisted into gx.  bf16 operands, f32 accumulation.
        gates = gx_ref[i] + jnp.dot(h_prev.astype(w_h.dtype), w_h,
                                    preferred_element_type=jnp.float32)
        # H is a multiple of 128 -> all gate slices are lane-aligned.
        f_t = jax.nn.sigmoid(gates[:, 0 * H:1 * H])
        i_t = jax.nn.sigmoid(gates[:, 1 * H:2 * H])
        o_t = jax.nn.sigmoid(gates[:, 2 * H:3 * H])
        g_t = jnp.tanh(gates[:, 3 * H:4 * H])
        c_new = f_t * c_prev + i_t * g_t
        h_new = o_t * jnp.tanh(c_new)
        hseq_ref[i] = h_new.astype(hseq_ref.dtype)
        return h_new, c_new

    h_fin, c_fin = jax.lax.fori_loop(0, time_block, step,
                                     (h_sc[...], c_sc[...]), unroll=True)
    h_sc[...] = h_fin
    c_sc[...] = c_fin

    @pl.when(t == pl.num_programs(1) - 1)
    def _finalize():
        cfin_ref[0] = c_fin.astype(cfin_ref.dtype)


def _round_up(n, m):
    return ((n + m - 1) // m) * m


def _largest_divisor_leq(n, cap):
    for d in range(min(n, cap), 0, -1):
        if n % d == 0:
            return d
    return 1


def lstm_forward(x, w_x, w_h, b, *, time_block_target=16,
                 recurrent_dtype=jnp.bfloat16):
    """x: (T,B,I) f32; w_x: (I,4H); w_h: (H,4H); b: (1,4H); gate order [f,i,o,g]
    (the two Linear biases of the PyTorch module are pre-summed into b).

    Returns (h_seq (T,B,H), (h (1,B,H), c (1,B,H))) with zero initial state,
    matching the PyTorch module's forward with h=c=None.
    """
    T, B, I = x.shape
    H = w_h.shape[0]
    H4 = 4 * H
    assert w_x.shape == (I, H4) and w_h.shape == (H, H4) and b.shape == (1, H4)

    # ---------------- padding / blocking choices ----------------------------
    Hp = _round_up(H, 128)                 # lane-aligned gate slices & stores
    Bp = _round_up(B, 8)                   # full f32 sublanes
    if Bp > 128:                           # split large batches across the grid
        Bb = 128
        Bp = _round_up(Bp, Bb)
    else:
        Bb = Bp
    nb = Bp // Bb
    Tt = _largest_divisor_leq(T, time_block_target)   # time steps per grid step
    nt = T // Tt

    # ------------- hoisted input projection (one big MXU matmul) ------------
    gx = jnp.einsum("tbi,io->tbo", x.astype(jnp.float32),
                    w_x.astype(jnp.float32)) + b[0].astype(jnp.float32)
    gx = gx.reshape(T, B, 4, H)
    gx = jnp.pad(gx, ((0, 0), (0, Bp - B), (0, 0), (0, Hp - H)))
    gx = gx.reshape(T, Bp, 4 * Hp)                    # f32 pre-activations

    # ------------- recurrent weight: pad per-gate, cast to bf16 -------------
    whp = w_h.astype(jnp.float32).reshape(H, 4, H)
    whp = jnp.pad(whp, ((0, Hp - H), (0, 0), (0, Hp - H)))
    whp = whp.reshape(Hp, 4 * Hp).astype(recurrent_dtype)

    kernel = functools.partial(_lstm_kernel, hidden=Hp, time_block=Tt)

    # rough VMEM budget (worst-case double-buffered), keep >= 32 MiB default
    w_itm = jnp.dtype(recurrent_dtype).itemsize
    needed = (2 * Hp * 4 * Hp * w_itm          # W_h
              + 2 * Tt * Bb * 4 * Hp * 4       # gates_x blocks
              + 2 * Tt * Bb * Hp * 4           # h_seq blocks
              + 2 * Bb * Hp * 4                # c_fin block
              + 2 * Bb * Hp * 4)               # h/c scratch
    vmem_limit = int(max(needed + (4 << 20), 32 << 20))

    def build(single_buffer_weights):
        wh_kwargs = {}
        if single_buffer_weights:
            # Constant index_map -> never re-fetched; single buffer halves
            # resident-weight VMEM.
            wh_kwargs["pipeline_mode"] = pl.Buffered(1)
        return pl.pallas_call(
            kernel,
            out_shape=(
                jax.ShapeDtypeStruct((T, Bp, Hp), x.dtype),   # h_seq (padded)
                jax.ShapeDtypeStruct((1, Bp, Hp), x.dtype),   # final c (padded)
            ),
            grid_spec=pltpu.PrefetchScalarGridSpec(
                num_scalar_prefetch=0,
                grid=(nb, nt),                                # time innermost
                in_specs=[
                    pl.BlockSpec((Tt, Bb, 4 * Hp), lambda bi, ti: (ti, bi, 0)),
                    pl.BlockSpec((Hp, 4 * Hp), lambda bi, ti: (0, 0),
                                 **wh_kwargs),
                ],
                out_specs=[
                    pl.BlockSpec((Tt, Bb, Hp), lambda bi, ti: (ti, bi, 0)),
                    pl.BlockSpec((1, Bb, Hp), lambda bi, ti: (0, bi, 0)),
                ],
                scratch_shapes=[
                    pltpu.VMEM((Bb, Hp), jnp.float32),   # h carry
                    pltpu.VMEM((Bb, Hp), jnp.float32),   # c carry
                ],
            ),
            compiler_params=pltpu.CompilerParams(
                dimension_semantics=("parallel", "arbitrary"),
                vmem_limit_bytes=vmem_limit,
            ),
        )

    try:
        h_seq_p, c_fin_p = jax.block_until_ready(build(True)(gx, whp))
    except Exception:
        # Fallback in case single-buffered pipeline_mode is rejected by this
        # jax/libtpu version; identical semantics, default double-buffering.
        h_seq_p, c_fin_p = build(False)(gx, whp)

    h_seq = h_seq_p[:, :B, :H]
    c_fin = c_fin_p[:, :B, :H]
    h_fin = h_seq[-1:]
    return h_seq, (h_fin, c_fin)


def lstm_reference(x, w_x, w_h, b):
    """Pure-JAX (f32) reference matching the PyTorch forward."""
    T, B, I = x.shape
    H = w_h.shape[0]

    def step(carry, xt):
        h, c = carry
        gates = xt @ w_x + h @ w_h + b[0]
        f = jax.nn.sigmoid(gates[:, 0 * H:1 * H])
        i = jax.nn.sigmoid(gates[:, 1 * H:2 * H])
        o = jax.nn.sigmoid(gates[:, 2 * H:3 * H])
        g = jnp.tanh(gates[:, 3 * H:4 * H])
        c = f * c + i * g
        h = o * jnp.tanh(c)
        return (h, c), h

    h0 = jnp.zeros((B, H), x.dtype)
    c0 = jnp.zeros((B, H), x.dtype)
    (hf, cf), h_seq = jax.lax.scan(step, (h0, c0), x)
    return h_seq, (hf[None], cf[None])


if __name__ == "__main__":
    # Small shapes consistent with the module's forward contract.
    T, B, I, H = 8, 2, 4, 32

    key = jax.random.PRNGKey(0)
    kx, kwx, kwh, kbx, kbh = jax.random.split(key, 5)

    x = jax.random.normal(kx, (T, B, I), dtype=jnp.float32)

    # Deterministic parameter init (gate order: f, i, o, g).
    scale = 1.0 / jnp.sqrt(H)
    w_x = jax.random.uniform(kwx, (I, 4 * H), jnp.float32, -scale, scale)
    w_h = jax.random.uniform(kwh, (H, 4 * H), jnp.float32, -scale, scale)
    # Two biases per gate in the PyTorch module (W_x* and W_h* Linears) — summed.
    b_x = jax.random.uniform(kbx, (1, 4 * H), jnp.float32, -scale, scale)
    b_h = jax.random.uniform(kbh, (1, 4 * H), jnp.float32, -scale, scale)
    b = b_x + b_h

    h_seq_ref, (h_ref, c_ref) = lstm_reference(x, w_x, w_h, b)

    # Default (bf16 recurrent weights) run — loosened tolerance vs f32 ref.
    h_seq, (h_fin, c_fin) = jax.block_until_ready(lstm_forward(x, w_x, w_h, b))
    assert h_seq.shape == (T, B, H)
    assert h_fin.shape == (1, B, H) and c_fin.shape == (1, B, H)
    assert jnp.allclose(h_seq, h_seq_ref, atol=2e-2, rtol=2e-2)
    assert jnp.allclose(h_fin, h_ref, atol=2e-2, rtol=2e-2)
    assert jnp.allclose(c_fin, c_ref, atol=2e-2, rtol=2e-2)

    # Strict f32 check of the kernel structure itself.
    h_seq32, (h_fin32, c_fin32) = jax.block_until_ready(
        lstm_forward(x, w_x, w_h, b, recurrent_dtype=jnp.float32))
    assert jnp.allclose(h_seq32, h_seq_ref, atol=2e-4, rtol=2e-4)
    assert jnp.allclose(h_fin32, h_ref, atol=2e-4, rtol=2e-4)
    assert jnp.allclose(c_fin32, c_ref, atol=2e-4, rtol=2e-4)

    # TODO(synk): PackedSequence input path (pad_packed_sequence / pack_outputs)
    # has no Pallas equivalent; dense (seq, batch, input) path implemented.
    print("KERNEL_OK")
</pallas_src>

<mosaic_0001>
module attributes {stable_mosaic.version = 11 : i64} {
  func.func @_lstm_kernel(%arg0: i32, %arg1: i32, %arg2: memref<8x8x512xf32, #tpu.memory_space<vmem>>, %arg3: memref<128x512xbf16, #tpu.memory_space<vmem>>, %arg4: memref<8x8x128xf32, #tpu.memory_space<vmem>>, %arg5: memref<1x8x128xf32, #tpu.memory_space<vmem>>, %arg6: memref<8x128xf32, #tpu.memory_space<vmem>>, %arg7: memref<8x128xf32, #tpu.memory_space<vmem>>) attributes {dimension_semantics = [#tpu.dimension_semantics<parallel>, #tpu.dimension_semantics<arbitrary>], iteration_bounds = array<i64: 1, 1>, scalar_prefetch = 0 : i64, scratch_operands = 2 : i64, tpu.core_type = #tpu.core_type<tc>, window_params = [{transform_indices = @transform_0, window_bounds = array<i64: 8, 8, 512>}, {pipeline_mode = #tpu.pipeline_mode<synchronous>, transform_indices = @transform_1, window_bounds = array<i64: 128, 512>}, {transform_indices = @transform_2, window_bounds = array<i64: 8, 8, 128>}, {transform_indices = @transform_3, window_bounds = array<i64: 1, 8, 128>}]} {
    %c0_i32 = arith.constant 0 : i32
    %0 = arith.cmpi eq, %arg1, %c0_i32 : i32
    %1 = arith.extui %0 : i1 to i32
    %c0_i32_0 = arith.constant 0 : i32
    %2 = arith.cmpi ne, %1, %c0_i32_0 : i32
    scf.if %2 {
      %cst_76 = arith.constant 0.000000e+00 : f32
      %291 = vector.broadcast %cst_76 : f32 to vector<8x128xf32>
      %c0_77 = arith.constant 0 : index
      %c0_78 = arith.constant 0 : index
      %292 = vector.load %arg6[%c0_77, %c0_78] : memref<8x128xf32, #tpu.memory_space<vmem>>, vector<8x128xf32>
      tpu.vector_store %arg6[%c0_77, %c0_78], %291 {strides = array<i32>} : memref<8x128xf32, #tpu.memory_space<vmem>>, vector<8x128xf32>,
      %cst_79 = arith.constant 0.000000e+00 : f32
      %293 = vector.broadcast %cst_79 : f32 to vector<8x128xf32>
      %c0_80 = arith.constant 0 : index
      %c0_81 = arith.constant 0 : index
      %294 = vector.load %arg7[%c0_80, %c0_81] : memref<8x128xf32, #tpu.memory_space<vmem>>, vector<8x128xf32>
      tpu.vector_store %arg7[%c0_80, %c0_81], %293 {strides = array<i32>} : memref<8x128xf32, #tpu.memory_space<vmem>>, vector<8x128xf32>,
    } else {
    }
    %c0 = arith.constant 0 : index
    %c0_1 = arith.constant 0 : index
    %3 = vector.load %arg3[%c0, %c0_1] : memref<128x512xbf16, #tpu.memory_space<vmem>>, vector<128x512xbf16>
    %c0_2 = arith.constant 0 : index
    %c0_3 = arith.constant 0 : index
    %4 = vector.load %arg6[%c0_2, %c0_3] : memref<8x128xf32, #tpu.memory_space<vmem>>, vector<8x128xf32>
    %c0_4 = arith.constant 0 : index
    %c0_5 = arith.constant 0 : index
    %5 = vector.load %arg7[%c0_4, %c0_5] : memref<8x128xf32, #tpu.memory_space<vmem>>, vector<8x128xf32>
    %c0_i32_6 = arith.constant 0 : i32
    %6 = arith.index_cast %c0_i32_6 : i32 to index
    %c0_7 = arith.constant 0 : index
    %c0_8 = arith.constant 0 : index
    %7 = vector.load %arg2[%6, %c0_7, %c0_8] : memref<8x8x512xf32, #tpu.memory_space<vmem>>, vector<1x8x512xf32>
    %8 = vector.shape_cast %7 : vector<1x8x512xf32> to vector<8x512xf32>
    %9 = arith.truncf %4 : vector<8x128xf32> to vector<8x128xbf16>
    %cst = arith.constant dense<0.000000e+00> : vector<8x512xf32>
    %10 = tpu.matmul %9, %3, %cst {dimension_numbers = #tpu.dot_dimension_numbers<[1], [0], [0], [1], [0, 0, 1, 1], [], []>} : vector<8x128xbf16>, vector<128x512xbf16>, vector<8x512xf32> -> vector<8x512xf32>
    %11 = arith.addf %8, %10 : vector<8x512xf32>
    %12 = vector.extract_strided_slice %11 {offsets = [0, 0], sizes = [8, 128], strides = [1, 1]} : vector<8x512xf32> to vector<8x128xf32>
    %13 = arith.negf %12 : vector<8x128xf32>
    %14 = math.exp %13 : vector<8x128xf32>
    %cst_9 = arith.constant 1.000000e+00 : f32
    %15 = vector.broadcast %cst_9 : f32 to vector<8x128xf32>
    %16 = arith.addf %15, %14 : vector<8x128xf32>
    %17 = arith.divf %15, %16 : vector<8x128xf32>
    %18 = vector.extract_strided_slice %11 {offsets = [0, 128], sizes = [8, 128], strides = [1, 1]} : vector<8x512xf32> to vector<8x128xf32>
    %19 = arith.negf %18 : vector<8x128xf32>
    %20 = math.exp %19 : vector<8x128xf32>
    %cst_10 = arith.constant 1.000000e+00 : f32
    %21 = vector.broadcast %cst_10 : f32 to vector<8x128xf32>
    %22 = arith.addf %21, %20 : vector<8x128xf32>
    %23 = arith.divf %21, %22 : vector<8x128xf32>
    %24 = vector.extract_strided_slice %11 {offsets = [0, 256], sizes = [8, 128], strides = [1, 1]} : vector<8x512xf32> to vector<8x128xf32>
    %25 = arith.negf %24 : vector<8x128xf32>
    %26 = math.exp %25 : vector<8x128xf32>
    %cst_11 = arith.constant 1.000000e+00 : f32
    %27 = vector.broadcast %cst_11 : f32 to vector<8x128xf32>
    %28 = arith.addf %27, %26 : vector<8x128xf32>
    %29 = arith.divf %27, %28 : vector<8x128xf32>
    %30 = vector.extract_strided_slice %11 {offsets = [0, 384], sizes = [8, 128], strides = [1, 1]} : vector<8x512xf32> to vector<8x128xf32>
    %31 = math.tanh %30 : vector<8x128xf32>
    %32 = arith.mulf %17, %5 : vector<8x128xf32>
    %33 = arith.mulf %23, %31 : vector<8x128xf32>
    %34 = arith.addf %32, %33 : vector<8x128xf32>
    %35 = math.tanh %34 : vector<8x128xf32>
    %36 = arith.mulf %29, %35 : vector<8x128xf32>
    %37 = arith.index_cast %c0_i32_6 : i32 to index
    %c0_12 = arith.constant 0 : index
    %c0_13 = arith.constant 0 : index
    %38 = vector.load %arg4[%37, %c0_12, %c0_13] : memref<8x8x128xf32, #tpu.memory_space<vmem>>, vector<1x8x128xf32>
    %39 = vector.shape_cast %38 : vector<1x8x128xf32> to vector<8x128xf32>
    %40 = vector.shape_cast %36 : vector<8x128xf32> to vector<1x8x128xf32>
    tpu.vector_store %arg4[%37, %c0_12, %c0_13], %40 {strides = array<i32>} : memref<8x8x128xf32, #tpu.memory_space<vmem>>, vector<1x8x128xf32>,
    %c1_i32 = arith.constant 1 : i32
    %41 = arith.index_cast %c1_i32 : i32 to index
    %c0_14 = arith.constant 0 : index
    %c0_15 = arith.constant 0 : index
    %42 = vector.load %arg2[%41, %c0_14, %c0_15] : memref<8x8x512xf32, #tpu.memory_space<vmem>>, vector<1x8x512xf32>
    %43 = vector.shape_cast %42 : vector<1x8x512xf32> to vector<8x512xf32>
    %44 = arith.truncf %36 : vector<8x128xf32> to vector<8x128xbf16>
    %cst_16 = arith.constant dense<0.000000e+00> : vector<8x512xf32>
    %45 = tpu.matmul %44, %3, %cst_16 {dimension_numbers = #tpu.dot_dimension_numbers<[1], [0], [0], [1], [0, 0, 1, 1], [], []>} : vector<8x128xbf16>, vector<128x512xbf16>, vector<8x512xf32> -> vector<8x512xf32>
    %46 = arith.addf %43, %45 : vector<8x512xf32>
    %47 = vector.extract_strided_slice %46 {offsets = [0, 0], sizes = [8, 128], strides = [1, 1]} : vector<8x512xf32> to vector<8x128xf32>
    %48 = arith.negf %47 : vector<8x128xf32>
    %49 = math.exp %48 : vector<8x128xf32>
    %cst_17 = arith.constant 1.000000e+00 : f32
    %50 = vector.broadcast %cst_17 : f32 to vector<8x128xf32>
    %51 = arith.addf %50, %49 : vector<8x128xf32>
    %52 = arith.divf %50, %51 : vector<8x128xf32>
    %53 = vector.extract_strided_slice %46 {offsets = [0, 128], sizes = [8, 128], strides = [1, 1]} : vector<8x512xf32> to vector<8x128xf32>
    %54 = arith.negf %53 : vector<8x128xf32>
    %55 = math.exp %54 : vector<8x128xf32>
    %cst_18 = arith.constant 1.000000e+00 : f32
    %56 = vector.broadcast %cst_18 : f32 to vector<8x128xf32>
    %57 = arith.addf %56, %55 : vector<8x128xf32>
    %58 = arith.divf %56, %57 : vector<8x128xf32>
    %59 = vector.extract_strided_slice %46 {offsets = [0, 256], sizes = [8, 128], strides = [1, 1]} : vector<8x512xf32> to vector<8x128xf32>
    %60 = arith.negf %59 : vector<8x128xf32>
    %61 = math.exp %60 : vector<8x128xf32>
    %cst_19 = arith.constant 1.000000e+00 : f32
    %62 = vector.broadcast %cst_19 : f32 to vector<8x128xf32>
    %63 = arith.addf %62, %61 : vector<8x128xf32>
    %64 = arith.divf %62, %63 : vector<8x128xf32>
    %65 = vector.extract_strided_slice %46 {offsets = [0, 384], sizes = [8, 128], strides = [1, 1]} : vector<8x512xf32> to vector<8x128xf32>
    %66 = math.tanh %65 : vector<8x128xf32>
    %67 = arith.mulf %52, %34 : vector<8x128xf32>
    %68 = arith.mulf %58, %66 : vector<8x128xf32>
    %69 = arith.addf %67, %68 : vector<8x128xf32>
    %70 = math.tanh %69 : vector<8x128xf32>
    %71 = arith.mulf %64, %70 : vector<8x128xf32>
    %72 = arith.index_cast %c1_i32 : i32 to index
    %c0_20 = arith.constant 0 : index
    %c0_21 = arith.constant 0 : index
    %73 = vector.load %arg4[%72, %c0_20, %c0_21] : memref<8x8x128xf32, #tpu.memory_space<vmem>>, vector<1x8x128xf32>
    %74 = vector.shape_cast %73 : vector<1x8x128xf32> to vector<8x128xf32>
    %75 = vector.shape_cast %71 : vector<8x128xf32> to vector<1x8x128xf32>
    tpu.vector_store %arg4[%72, %c0_20, %c0_21], %75 {strides = array<i32>} : memref<8x8x128xf32, #tpu.memory_space<vmem>>, vector<1x8x128xf32>,
    %c2_i32 = arith.constant 2 : i32
    %76 = arith.index_cast %c2_i32 : i32 to index
    %c0_22 = arith.constant 0 : index
    %c0_23 = arith.constant 0 : index
    %77 = vector.load %arg2[%76, %c0_22, %c0_23] : memref<8x8x512xf32, #tpu.memory_space<vmem>>, vector<1x8x512xf32>
    %78 = vector.shape_cast %77 : vector<1x8x512xf32> to vector<8x512xf32>
    %79 = arith.truncf %71 : vector<8x128xf32> to vector<8x128xbf16>
    %cst_24 = arith.constant dense<0.000000e+00> : vector<8x512xf32>
    %80 = tpu.matmul %79, %3, %cst_24 {dimension_numbers = #tpu.dot_dimension_numbers<[1], [0], [0], [1], [0, 0, 1, 1], [], []>} : vector<8x128xbf16>, vector<128x512xbf16>, vector<8x512xf32> -> vector<8x512xf32>
    %81 = arith.addf %78, %80 : vector<8x512xf32>
    %82 = vector.extract_strided_slice %81 {offsets = [0, 0], sizes = [8, 128], strides = [1, 1]} : vector<8x512xf32> to vector<8x128xf32>
    %83 = arith.negf %82 : vector<8x128xf32>
    %84 = math.exp %83 : vector<8x128xf32>
    %cst_25 = arith.constant 1.000000e+00 : f32
    %85 = vector.broadcast %cst_25 : f32 to vector<8x128xf32>
    %86 = arith.addf %85, %84 : vector<8x128xf32>
    %87 = arith.divf %85, %86 : vector<8x128xf32>
    %88 = vector.extract_strided_slice %81 {offsets = [0, 128], sizes = [8, 128], strides = [1, 1]} : vector<8x512xf32> to vector<8x128xf32>
    %89 = arith.negf %88 : vector<8x128xf32>
    %90 = math.exp %89 : vector<8x128xf32>
    %cst_26 = arith.constant 1.000000e+00 : f32
    %91 = vector.broadcast %cst_26 : f32 to vector<8x128xf32>
    %92 = arith.addf %91, %90 : vector<8x128xf32>
    %93 = arith.divf %91, %92 : vector<8x128xf32>
    %94 = vector.extract_strided_slice %81 {offsets = [0, 256], sizes = [8, 128], strides = [1, 1]} : vector<8x512xf32> to vector<8x128xf32>
    %95 = arith.negf %94 : vector<8x128xf32>
    %96 = math.exp %95 : vector<8x128xf32>
    %cst_27 = arith.constant 1.000000e+00 : f32
    %97 = vector.broadcast %cst_27 : f32 to vector<8x128xf32>
    %98 = arith.addf %97, %96 : vector<8x128xf32>
    %99 = arith.divf %97, %98 : vector<8x128xf32>
    %100 = vector.extract_strided_slice %81 {offsets = [0, 384], sizes = [8, 128], strides = [1, 1]} : vector<8x512xf32> to vector<8x128xf32>
    %101 = math.tanh %100 : vector<8x128xf32>
    %102 = arith.mulf %87, %69 : vector<8x128xf32>
    %103 = arith.mulf %93, %101 : vector<8x128xf32>
    %104 = arith.addf %102, %103 : vector<8x128xf32>
    %105 = math.tanh %104 : vector<8x128xf32>
    %106 = arith.mulf %99, %105 : vector<8x128xf32>
    %107 = arith.index_cast %c2_i32 : i32 to index
    %c0_28 = arith.constant 0 : index
    %c0_29 = arith.constant 0 : index
    %108 = vector.load %arg4[%107, %c0_28, %c0_29] : memref<8x8x128xf32, #tpu.memory_space<vmem>>, vector<1x8x128xf32>
    %109 = vector.shape_cast %108 : vector<1x8x128xf32> to vector<8x128xf32>
    %110 = vector.shape_cast %106 : vector<8x128xf32> to vector<1x8x128xf32>
    tpu.vector_store %arg4[%107, %c0_28, %c0_29], %110 {strides = array<i32>} : memref<8x8x128xf32, #tpu.memory_space<vmem>>, vector<1x8x128xf32>,
    %c3_i32 = arith.constant 3 : i32
    %111 = arith.index_cast %c3_i32 : i32 to index
    %c0_30 = arith.constant 0 : index
    %c0_31 = arith.constant 0 : index
    %112 = vector.load %arg2[%111, %c0_30, %c0_31] : memref<8x8x512xf32, #tpu.memory_space<vmem>>, vector<1x8x512xf32>
    %113 = vector.shape_cast %112 : vector<1x8x512xf32> to vector<8x512xf32>
    %114 = arith.truncf %106 : vector<8x128xf32> to vector<8x128xbf16>
    %cst_32 = arith.constant dense<0.000000e+00> : vector<8x512xf32>
    %115 = tpu.matmul %114, %3, %cst_32 {dimension_numbers = #tpu.dot_dimension_numbers<[1], [0], [0], [1], [0, 0, 1, 1], [], []>} : vector<8x128xbf16>, vector<128x512xbf16>, vector<8x512xf32> -> vector<8x512xf32>
    %116 = arith.addf %113, %115 : vector<8x512xf32>
    %117 = vector.extract_strided_slice %116 {offsets = [0, 0], sizes = [8, 128], strides = [1, 1]} : vector<8x512xf32> to vector<8x128xf32>
    %118 = arith.negf %117 : vector<8x128xf32>
    %119 = math.exp %118 : vector<8x128xf32>
    %cst_33 = arith.constant 1.000000e+00 : f32
    %120 = vector.broadcast %cst_33 : f32 to vector<8x128xf32>
    %121 = arith.addf %120, %119 : vector<8x128xf32>
    %122 = arith.divf %120, %121 : vector<8x128xf32>
    %123 = vector.extract_strided_slice %116 {offsets = [0, 128], sizes = [8, 128], strides = [1, 1]} : vector<8x512xf32> to vector<8x128xf32>
    %124 = arith.negf %123 : vector<8x128xf32>
    %125 = math.exp %124 : vector<8x128xf32>
    %cst_34 = arith.constant 1.000000e+00 : f32
    %126 = vector.broadcast %cst_34 : f32 to vector<8x128xf32>
    %127 = arith.addf %126, %125 : vector<8x128xf32>
    %128 = arith.divf %126, %127 : vector<8x128xf32>
    %129 = vector.extract_strided_slice %116 {offsets = [0, 256], sizes = [8, 128], strides = [1, 1]} : vector<8x512xf32> to vector<8x128xf32>
    %130 = arith.negf %129 : vector<8x128xf32>
    %131 = math.exp %130 : vector<8x128xf32>
    %cst_35 = arith.constant 1.000000e+00 : f32
    %132 = vector.broadcast %cst_35 : f32 to vector<8x128xf32>
    %133 = arith.addf %132, %131 : vector<8x128xf32>
    %134 = arith.divf %132, %133 : vector<8x128xf32>
    %135 = vector.extract_strided_slice %116 {offsets = [0, 384], sizes = [8, 128], strides = [1, 1]} : vector<8x512xf32> to vector<8x128xf32>
    %136 = math.tanh %135 : vector<8x128xf32>
    %137 = arith.mulf %122, %104 : vector<8x128xf32>
    %138 = arith.mulf %128, %136 : vector<8x128xf32>
    %139 = arith.addf %137, %138 : vector<8x128xf32>
    %140 = math.tanh %139 : vector<8x128xf32>
    %141 = arith.mulf %134, %140 : vector<8x128xf32>
    %142 = arith.index_cast %c3_i32 : i32 to index
    %c0_36 = arith.constant 0 : index
    %c0_37 = arith.constant 0 : index
    %143 = vector.load %arg4[%142, %c0_36, %c0_37] : memref<8x8x128xf32, #tpu.memory_space<vmem>>, vector<1x8x128xf32>
    %144 = vector.shape_cast %143 : vector<1x8x128xf32> to vector<8x128xf32>
    %145 = vector.shape_cast %141 : vector<8x128xf32> to vector<1x8x128xf32>
    tpu.vector_store %arg4[%142, %c0_36, %c0_37], %145 {strides = array<i32>} : memref<8x8x128xf32, #tpu.memory_space<vmem>>, vector<1x8x128xf32>,
    %c4_i32 = arith.constant 4 : i32
    %146 = arith.index_cast %c4_i32 : i32 to index
    %c0_38 = arith.constant 0 : index
    %c0_39 = arith.constant 0 : index
    %147 = vector.load %arg2[%146, %c0_38, %c0_39] : memref<8x8x512xf32, #tpu.memory_space<vmem>>, vector<1x8x512xf32>
    %148 = vector.shape_cast %147 : vector<1x8x512xf32> to vector<8x512xf32>
    %149 = arith.truncf %141 : vector<8x128xf32> to vector<8x128xbf16>
    %cst_40 = arith.constant dense<0.000000e+00> : vector<8x512xf32>
    %150 = tpu.matmul %149, %3, %cst_40 {dimension_numbers = #tpu.dot_dimension_numbers<[1], [0], [0], [1], [0, 0, 1, 1], [], []>} : vector<8x128xbf16>, vector<128x512xbf16>, vector<8x512xf32> -> vector<8x512xf32>
    %151 = arith.addf %148, %150 : vector<8x512xf32>
    %152 = vector.extract_strided_slice %151 {offsets = [0, 0], sizes = [8, 128], strides = [1, 1]} : vector<8x512xf32> to vector<8x128xf32>
    %153 = arith.negf %152 : vector<8x128xf32>
    %154 = math.exp %153 : vector<8x128xf32>
    %cst_41 = arith.constant 1.000000e+00 : f32
    %155 = vector.broadcast %cst_41 : f32 to vector<8x128xf32>
    %156 = arith.addf %155, %154 : vector<8x128xf32>
    %157 = arith.divf %155, %156 : vector<8x128xf32>
    %158 = vector.extract_strided_slice %151 {offsets = [0, 128], sizes = [8, 128], strides = [1, 1]} : vector<8x512xf32> to vector<8x128xf32>
    %159 = arith.negf %158 : vector<8x128xf32>
    %160 = math.exp %159 : vector<8x128xf32>
    %cst_42 = arith.constant 1.000000e+00 : f32
    %161 = vector.broadcast %cst_42 : f32 to vector<8x128xf32>
    %162 = arith.addf %161, %160 : vector<8x128xf32>
    %163 = arith.divf %161, %162 : vector<8x128xf32>
    %164 = vector.extract_strided_slice %151 {offsets = [0, 256], sizes = [8, 128], strides = [1, 1]} : vector<8x512xf32> to vector<8x128xf32>
    %165 = arith.negf %164 : vector<8x128xf32>
    %166 = math.exp %165 : vector<8x128xf32>
    %cst_43 = arith.constant 1.000000e+00 : f32
    %167 = vector.broadcast %cst_43 : f32 to vector<8x128xf32>
    %168 = arith.addf %167, %166 : vector<8x128xf32>
    %169 = arith.divf %167, %168 : vector<8x128xf32>
    %170 = vector.extract_strided_slice %151 {offsets = [0, 384], sizes = [8, 128], strides = [1, 1]} : vector<8x512xf32> to vector<8x128xf32>
    %171 = math.tanh %170 : vector<8x128xf32>
    %172 = arith.mulf %157, %139 : vector<8x128xf32>
    %173 = arith.mulf %163, %171 : vector<8x128xf32>
    %174 = arith.addf %172, %173 : vector<8x128xf32>
    %175 = math.tanh %174 : vector<8x128xf32>
    %176 = arith.mulf %169, %175 : vector<8x128xf32>
    %177 = arith.index_cast %c4_i32 : i32 to index
    %c0_44 = arith.constant 0 : index
    %c0_45 = arith.constant 0 : index
    %178 = vector.load %arg4[%177, %c0_44, %c0_45] : memref<8x8x128xf32, #tpu.memory_space<vmem>>, vector<1x8x128xf32>
    %179 = vector.shape_cast %178 : vector<1x8x128xf32> to vector<8x128xf32>
    %180 = vector.shape_cast %176 : vector<8x128xf32> to vector<1x8x128xf32>
    tpu.vector_store %arg4[%177, %c0_44, %c0_45], %180 {strides = array<i32>} : memref<8x8x128xf32, #tpu.memory_space<vmem>>, vector<1x8x128xf32>,
    %c5_i32 = arith.constant 5 : i32
    %181 = arith.index_cast %c5_i32 : i32 to index
    %c0_46 = arith.constant 0 : index
    %c0_47 = arith.constant 0 : index
    %182 = vector.load %arg2[%181, %c0_46, %c0_47] : memref<8x8x512xf32, #tpu.memory_space<vmem>>, vector<1x8x512xf32>
    %183 = vector.shape_cast %182 : vector<1x8x512xf32> to vector<8x512xf32>
    %184 = arith.truncf %176 : vector<8x128xf32> to vector<8x128xbf16>
    %cst_48 = arith.constant dense<0.000000e+00> : vector<8x512xf32>
    %185 = tpu.matmul %184, %3, %cst_48 {dimension_numbers = #tpu.dot_dimension_numbers<[1], [0], [0], [1], [0, 0, 1, 1], [], []>} : vector<8x128xbf16>, vector<128x512xbf16>, vector<8x512xf32> -> vector<8x512xf32>
    %186 = arith.addf %183, %185 : vector<8x512xf32>
    %187 = vector.extract_strided_slice %186 {offsets = [0, 0], sizes = [8, 128], strides = [1, 1]} : vector<8x512xf32> to vector<8x128xf32>
    %188 = arith.negf %187 : vector<8x128xf32>
    %189 = math.exp %188 : vector<8x128xf32>
    %cst_49 = arith.constant 1.000000e+00 : f32
    %190 = vector.broadcast %cst_49 : f32 to vector<8x128xf32>
    %191 = arith.addf %190, %189 : vector<8x128xf32>
    %192 = arith.divf %190, %191 : vector<8x128xf32>
    %193 = vector.extract_strided_slice %186 {offsets = [0, 128], sizes = [8, 128], strides = [1, 1]} : vector<8x512xf32> to vector<8x128xf32>
    %194 = arith.negf %193 : vector<8x128xf32>
    %195 = math.exp %194 : vector<8x128xf32>
    %cst_50 = arith.constant 1.000000e+00 : f32
    %196 = vector.broadcast %cst_50 : f32 to vector<8x128xf32>
    %197 = arith.addf %196, %195 : vector<8x128xf32>
    %198 = arith.divf %196, %197 : vector<8x128xf32>
    %199 = vector.extract_strided_slice %186 {offsets = [0, 256], sizes = [8, 128], strides = [1, 1]} : vector<8x512xf32> to vector<8x128xf32>
    %200 = arith.negf %199 : vector<8x128xf32>
    %201 = math.exp %200 : vector<8x128xf32>
    %cst_51 = arith.constant 1.000000e+00 : f32
    %202 = vector.broadcast %cst_51 : f32 to vector<8x128xf32>
    %203 = arith.addf %202, %201 : vector<8x128xf32>
    %204 = arith.divf %202, %203 : vector<8x128xf32>
    %205 = vector.extract_strided_slice %186 {offsets = [0, 384], sizes = [8, 128], strides = [1, 1]} : vector<8x512xf32> to vector<8x128xf32>
    %206 = math.tanh %205 : vector<8x128xf32>
    %207 = arith.mulf %192, %174 : vector<8x128xf32>
    %208 = arith.mulf %198, %206 : vector<8x128xf32>
    %209 = arith.addf %207, %208 : vector<8x128xf32>
    %210 = math.tanh %209 : vector<8x128xf32>
    %211 = arith.mulf %204, %210 : vector<8x128xf32>
    %212 = arith.index_cast %c5_i32 : i32 to index
    %c0_52 = arith.constant 0 : index
    %c0_53 = arith.constant 0 : index
    %213 = vector.load %arg4[%212, %c0_52, %c0_53] : memref<8x8x128xf32, #tpu.memory_space<vmem>>, vector<1x8x128xf32>
    %214 = vector.shape_cast %213 : vector<1x8x128xf32> to vector<8x128xf32>
    %215 = vector.shape_cast %211 : vector<8x128xf32> to vector<1x8x128xf32>
    tpu.vector_store %arg4[%212, %c0_52, %c0_53], %215 {strides = array<i32>} : memref<8x8x128xf32, #tpu.memory_space<vmem>>, vector<1x8x128xf32>,
    %c6_i32 = arith.constant 6 : i32
    %216 = arith.index_cast %c6_i32 : i32 to index
    %c0_54 = arith.constant 0 : index
    %c0_55 = arith.constant 0 : index
    %217 = vector.load %arg2[%216, %c0_54, %c0_55] : memref<8x8x512xf32, #tpu.memory_space<vmem>>, vector<1x8x512xf32>
    %218 = vector.shape_cast %217 : vector<1x8x512xf32> to vector<8x512xf32>
    %219 = arith.truncf %211 : vector<8x128xf32> to vector<8x128xbf16>
    %cst_56 = arith.constant dense<0.000000e+00> : vector<8x512xf32>
    %220 = tpu.matmul %219, %3, %cst_56 {dimension_numbers = #tpu.dot_dimension_numbers<[1], [0], [0], [1], [0, 0, 1, 1], [], []>} : vector<8x128xbf16>, vector<128x512xbf16>, vector<8x512xf32> -> vector<8x512xf32>
    %221 = arith.addf %218, %220 : vector<8x512xf32>
    %222 = vector.extract_strided_slice %221 {offsets = [0, 0], sizes = [8, 128], strides = [1, 1]} : vector<8x512xf32> to vector<8x128xf32>
    %223 = arith.negf %222 : vector<8x128xf32>
    %224 = math.exp %223 : vector<8x128xf32>
    %cst_57 = arith.constant 1.000000e+00 : f32
    %225 = vector.broadcast %cst_57 : f32 to vector<8x128xf32>
    %226 = arith.addf %225, %224 : vector<8x128xf32>
    %227 = arith.divf %225, %226 : vector<8x128xf32>
    %228 = vector.extract_strided_slice %221 {offsets = [0, 128], sizes = [8, 128], strides = [1, 1]} : vector<8x512xf32> to vector<8x128xf32>
    %229 = arith.negf %228 : vector<8x128xf32>
    %230 = math.exp %229 : vector<8x128xf32>
    %cst_58 = arith.constant 1.000000e+00 : f32
    %231 = vector.broadcast %cst_58 : f32 to vector<8x128xf32>
    %232 = arith.addf %231, %230 : vector<8x128xf32>
    %233 = arith.divf %231, %232 : vector<8x128xf32>
    %234 = vector.extract_strided_slice %221 {offsets = [0, 256], sizes = [8, 128], strides = [1, 1]} : vector<8x512xf32> to vector<8x128xf32>
    %235 = arith.negf %234 : vector<8x128xf32>
    %236 = math.exp %235 : vector<8x128xf32>
    %cst_59 = arith.constant 1.000000e+00 : f32
    %237 = vector.broadcast %cst_59 : f32 to vector<8x128xf32>
    %238 = arith.addf %237, %236 : vector<8x128xf32>
    %239 = arith.divf %237, %238 : vector<8x128xf32>
    %240 = vector.extract_strided_slice %221 {offsets = [0, 384], sizes = [8, 128], strides = [1, 1]} : vector<8x512xf32> to vector<8x128xf32>
    %241 = math.tanh %240 : vector<8x128xf32>
    %242 = arith.mulf %227, %209 : vector<8x128xf32>
    %243 = arith.mulf %233, %241 : vector<8x128xf32>
    %244 = arith.addf %242, %243 : vector<8x128xf32>
    %245 = math.tanh %244 : vector<8x128xf32>
    %246 = arith.mulf %239, %245 : vector<8x128xf32>
    %247 = arith.index_cast %c6_i32 : i32 to index
    %c0_60 = arith.constant 0 : index
    %c0_61 = arith.constant 0 : index
    %248 = vector.load %arg4[%247, %c0_60, %c0_61] : memref<8x8x128xf32, #tpu.memory_space<vmem>>, vector<1x8x128xf32>
    %249 = vector.shape_cast %248 : vector<1x8x128xf32> to vector<8x128xf32>
    %250 = vector.shape_cast %246 : vector<8x128xf32> to vector<1x8x128xf32>
    tpu.vector_store %arg4[%247, %c0_60, %c0_61], %250 {strides = array<i32>} : memref<8x8x128xf32, #tpu.memory_space<vmem>>, vector<1x8x128xf32>,
    %c7_i32 = arith.constant 7 : i32
    %251 = arith.index_cast %c7_i32 : i32 to index
    %c0_62 = arith.constant 0 : index
    %c0_63 = arith.constant 0 : index
    %252 = vector.load %arg2[%251, %c0_62, %c0_63] : memref<8x8x512xf32, #tpu.memory_space<vmem>>, vector<1x8x512xf32>
    %253 = vector.shape_cast %252 : vector<1x8x512xf32> to vector<8x512xf32>
    %254 = arith.truncf %246 : vector<8x128xf32> to vector<8x128xbf16>
    %cst_64 = arith.constant dense<0.000000e+00> : vector<8x512xf32>
    %255 = tpu.matmul %254, %3, %cst_64 {dimension_numbers = #tpu.dot_dimension_numbers<[1], [0], [0], [1], [0, 0, 1, 1], [], []>} : vector<8x128xbf16>, vector<128x512xbf16>, vector<8x512xf32> -> vector<8x512xf32>
    %256 = arith.addf %253, %255 : vector<8x512xf32>
    %257 = vector.extract_strided_slice %256 {offsets = [0, 0], sizes = [8, 128], strides = [1, 1]} : vector<8x512xf32> to vector<8x128xf32>
    %258 = arith.negf %257 : vector<8x128xf32>
    %259 = math.exp %258 : vector<8x128xf32>
    %cst_65 = arith.constant 1.000000e+00 : f32
    %260 = vector.broadcast %cst_65 : f32 to vector<8x128xf32>
    %261 = arith.addf %260, %259 : vector<8x128xf32>
    %262 = arith.divf %260, %261 : vector<8x128xf32>
    %263 = vector.extract_strided_slice %256 {offsets = [0, 128], sizes = [8, 128], strides = [1, 1]} : vector<8x512xf32> to vector<8x128xf32>
    %264 = arith.negf %263 : vector<8x128xf32>
    %265 = math.exp %264 : vector<8x128xf32>
    %cst_66 = arith.constant 1.000000e+00 : f32
    %266 = vector.broadcast %cst_66 : f32 to vector<8x128xf32>
    %267 = arith.addf %266, %265 : vector<8x128xf32>
    %268 = arith.divf %266, %267 : vector<8x128xf32>
    %269 = vector.extract_strided_slice %256 {offsets = [0, 256], sizes = [8, 128], strides = [1, 1]} : vector<8x512xf32> to vector<8x128xf32>
    %270 = arith.negf %269 : vector<8x128xf32>
    %271 = math.exp %270 : vector<8x128xf32>
    %cst_67 = arith.constant 1.000000e+00 : f32
    %272 = vector.broadcast %cst_67 : f32 to vector<8x128xf32>
    %273 = arith.addf %272, %271 : vector<8x128xf32>
    %274 = arith.divf %272, %273 : vector<8x128xf32>
    %275 = vector.extract_strided_slice %256 {offsets = [0, 384], sizes = [8, 128], strides = [1, 1]} : vector<8x512xf32> to vector<8x128xf32>
    %276 = math.tanh %275 : vector<8x128xf32>
    %277 = arith.mulf %262, %244 : vector<8x128xf32>
    %278 = arith.mulf %268, %276 : vector<8x128xf32>
    %279 = arith.addf %277, %278 : vector<8x128xf32>
    %280 = math.tanh %279 : vector<8x128xf32>
    %281 = arith.mulf %274, %280 : vector<8x128xf32>
    %282 = arith.index_cast %c7_i32 : i32 to index
    %c0_68 = arith.constant 0 : index
    %c0_69 = arith.constant 0 : index
    %283 = vector.load %arg4[%282, %c0_68, %c0_69] : memref<8x8x128xf32, #tpu.memory_space<vmem>>, vector<1x8x128xf32>
    %284 = vector.shape_cast %283 : vector<1x8x128xf32> to vector<8x128xf32>
    %285 = vector.shape_cast %281 : vector<8x128xf32> to vector<1x8x128xf32>
    tpu.vector_store %arg4[%282, %c0_68, %c0_69], %285 {strides = array<i32>} : memref<8x8x128xf32, #tpu.memory_space<vmem>>, vector<1x8x128xf32>,
    %c8_i32 = arith.constant 8 : i32
    %c0_70 = arith.constant 0 : index
    %c0_71 = arith.constant 0 : index
    %286 = vector.load %arg6[%c0_70, %c0_71] : memref<8x128xf32, #tpu.memory_space<vmem>>, vector<8x128xf32>
    tpu.vector_store %arg6[%c0_70, %c0_71], %281 {strides = array<i32>} : memref<8x128xf32, #tpu.memory_space<vmem>>, vector<8x128xf32>,
    %c0_72 = arith.constant 0 : index
    %c0_73 = arith.constant 0 : index
    %287 = vector.load %arg7[%c0_72, %c0_73] : memref<8x128xf32, #tpu.memory_space<vmem>>, vector<8x128xf32>
    tpu.vector_store %arg7[%c0_72, %c0_73], %279 {strides = array<i32>} : memref<8x128xf32, #tpu.memory_space<vmem>>, vector<8x128xf32>,
    %c0_i32_74 = arith.constant 0 : i32
    %288 = arith.cmpi eq, %arg1, %c0_i32_74 : i32
    %289 = arith.extui %288 : i1 to i32
    %c0_i32_75 = arith.constant 0 : i32
    %290 = arith.cmpi ne, %289, %c0_i32_75 : i32
    scf.if %290 {
      %c0_76 = arith.constant 0 : index
      %c0_77 = arith.constant 0 : index
      %c0_78 = arith.constant 0 : index
      %291 = vector.load %arg5[%c0_76, %c0_77, %c0_78] : memref<1x8x128xf32, #tpu.memory_space<vmem>>, vector<1x8x128xf32>
      %292 = vector.shape_cast %291 : vector<1x8x128xf32> to vector<8x128xf32>
      %293 = vector.shape_cast %279 : vector<8x128xf32> to vector<1x8x128xf32>
      tpu.vector_store %arg5[%c0_76, %c0_77, %c0_78], %293 {strides = array<i32>} : memref<1x8x128xf32, #tpu.memory_space<vmem>>, vector<1x8x128xf32>,
    } else {
    }
    return
  }
  func.func @transform_0(%arg0: i32, %arg1: i32) -> (i32, i32, i32) {
    %c0_i32 = arith.constant 0 : i32
    %c0_i32_0 = arith.constant 0 : i32
    return %arg1, %arg0, %c0_i32 : i32, i32, i32
  }
  func.func @transform_1(%arg0: i32, %arg1: i32) -> (i32, i32) {
    %c0_i32 = arith.constant 0 : i32
    %c0_i32_0 = arith.constant 0 : i32
    %c0_i32_1 = arith.constant 0 : i32
    return %c0_i32, %c0_i32_0 : i32, i32
  }
  func.func @transform_2(%arg0: i32, %arg1: i32) -> (i32, i32, i32) {
    %c0_i32 = arith.constant 0 : i32
    %c0_i32_0 = arith.constant 0 : i32
    return %arg1, %arg0, %c0_i32 : i32, i32, i32
  }
  func.func @transform_3(%arg0: i32, %arg1: i32) -> (i32, i32, i32) {
    %c0_i32 = arith.constant 0 : i32
    %c0_i32_0 = arith.constant 0 : i32
    %c0_i32_1 = arith.constant 0 : i32
    return %c0_i32, %arg0, %c0_i32_0 : i32, i32, i32
  }
}

module attributes {stable_mosaic.version = 11 : i64} {
  func.func @_lstm_kernel(%arg0: i32, %arg1: i32, %arg2: memref<8x8x512xf32, #tpu.memory_space<vmem>>, %arg3: memref<128x512xbf16, #tpu.memory_space<vmem>>, %arg4: memref<8x8x128xf32, #tpu.memory_space<vmem>>, %arg5: memref<1x8x128xf32, #tpu.memory_space<vmem>>, %arg6: memref<8x128xf32, #tpu.memory_space<vmem>>, %arg7: memref<8x128xf32, #tpu.memory_space<vmem>>) attributes {dimension_semantics = [#tpu.dimension_semantics<parallel>, #tpu.dimension_semantics<arbitrary>], iteration_bounds = array<i64: 1, 1>, scalar_prefetch = 0 : i64, scratch_operands = 2 : i64, tpu.core_type = #tpu.core_type<tc>, window_params = [{transform_indices = @transform_0, window_bounds = array<i64: 8, 8, 512>}, {pipeline_mode = #tpu.pipeline_mode<synchronous>, transform_indices = @transform_1, window_bounds = array<i64: 128, 512>}, {transform_indices = @transform_2, window_bounds = array<i64: 8, 8, 128>}, {transform_indices = @transform_3, window_bounds = array<i64: 1, 8, 128>}]} {
    %c0_i32 = arith.constant 0 : i32
    %0 = arith.cmpi eq, %arg1, %c0_i32 : i32
    %1 = arith.extui %0 : i1 to i32
    %c0_i32_0 = arith.constant 0 : i32
    %2 = arith.cmpi ne, %1, %c0_i32_0 : i32
    scf.if %2 {
      %cst_76 = arith.constant 0.000000e+00 : f32
      %291 = vector.broadcast %cst_76 : f32 to vector<8x128xf32>
      %c0_77 = arith.constant 0 : index
      %c0_78 = arith.constant 0 : index
      %292 = vector.load %arg6[%c0_77, %c0_78] : memref<8x128xf32, #tpu.memory_space<vmem>>, vector<8x128xf32>
      tpu.vector_store %arg6[%c0_77, %c0_78], %291 {strides = array<i32>} : memref<8x128xf32, #tpu.memory_space<vmem>>, vector<8x128xf32>,
      %cst_79 = arith.constant 0.000000e+00 : f32
      %293 = vector.broadcast %cst_79 : f32 to vector<8x128xf32>
      %c0_80 = arith.constant 0 : index
      %c0_81 = arith.constant 0 : index
      %294 = vector.load %arg7[%c0_80, %c0_81] : memref<8x128xf32, #tpu.memory_space<vmem>>, vector<8x128xf32>
      tpu.vector_store %arg7[%c0_80, %c0_81], %293 {strides = array<i32>} : memref<8x128xf32, #tpu.memory_space<vmem>>, vector<8x128xf32>,
    } else {
    }
    %c0 = arith.constant 0 : index
    %c0_1 = arith.constant 0 : index
    %3 = vector.load %arg3[%c0, %c0_1] : memref<128x512xbf16, #tpu.memory_space<vmem>>, vector<128x512xbf16>
    %c0_2 = arith.constant 0 : index
    %c0_3 = arith.constant 0 : index
    %4 = vector.load %arg6[%c0_2, %c0_3] : memref<8x128xf32, #tpu.memory_space<vmem>>, vector<8x128xf32>
    %c0_4 = arith.constant 0 : index
    %c0_5 = arith.constant 0 : index
    %5 = vector.load %arg7[%c0_4, %c0_5] : memref<8x128xf32, #tpu.memory_space<vmem>>, vector<8x128xf32>
    %c0_i32_6 = arith.constant 0 : i32
    %6 = arith.index_cast %c0_i32_6 : i32 to index
    %c0_7 = arith.constant 0 : index
    %c0_8 = arith.constant 0 : index
    %7 = vector.load %arg2[%6, %c0_7, %c0_8] : memref<8x8x512xf32, #tpu.memory_space<vmem>>, vector<1x8x512xf32>
    %8 = vector.shape_cast %7 : vector<1x8x512xf32> to vector<8x512xf32>
    %9 = arith.truncf %4 : vector<8x128xf32> to vector<8x128xbf16>
    %cst = arith.constant dense<0.000000e+00> : vector<8x512xf32>
    %10 = tpu.matmul %9, %3, %cst {dimension_numbers = #tpu.dot_dimension_numbers<[1], [0], [0], [1], [0, 0, 1, 1], [], []>} : vector<8x128xbf16>, vector<128x512xbf16>, vector<8x512xf32> -> vector<8x512xf32>
    %11 = arith.addf %8, %10 : vector<8x512xf32>
    %12 = vector.extract_strided_slice %11 {offsets = [0, 0], sizes = [8, 128], strides = [1, 1]} : vector<8x512xf32> to vector<8x128xf32>
    %13 = arith.negf %12 : vector<8x128xf32>
    %14 = math.exp %13 : vector<8x128xf32>
    %cst_9 = arith.constant 1.000000e+00 : f32
    %15 = vector.broadcast %cst_9 : f32 to vector<8x128xf32>
    %16 = arith.addf %15, %14 : vector<8x128xf32>
    %17 = arith.divf %15, %16 : vector<8x128xf32>
    %18 = vector.extract_strided_slice %11 {offsets = [0, 128], sizes = [8, 128], strides = [1, 1]} : vector<8x512xf32> to vector<8x128xf32>
    %19 = arith.negf %18 : vector<8x128xf32>
    %20 = math.exp %19 : vector<8x128xf32>
    %cst_10 = arith.constant 1.000000e+00 : f32
    %21 = vector.broadcast %cst_10 : f32 to vector<8x128xf32>
    %22 = arith.addf %21, %20 : vector<8x128xf32>
    %23 = arith.divf %21, %22 : vector<8x128xf32>
    %24 = vector.extract_strided_slice %11 {offsets = [0, 256], sizes = [8, 128], strides = [1, 1]} : vector<8x512xf32> to vector<8x128xf32>
    %25 = arith.negf %24 : vector<8x128xf32>
    %26 = math.exp %25 : vector<8x128xf32>
    %cst_11 = arith.constant 1.000000e+00 : f32
    %27 = vector.broadcast %cst_11 : f32 to vector<8x128xf32>
    %28 = arith.addf %27, %26 : vector<8x128xf32>
    %29 = arith.divf %27, %28 : vector<8x128xf32>
    %30 = vector.extract_strided_slice %11 {offsets = [0, 384], sizes = [8, 128], strides = [1, 1]} : vector<8x512xf32> to vector<8x128xf32>
    %31 = math.tanh %30 : vector<8x128xf32>
    %32 = arith.mulf %17, %5 : vector<8x128xf32>
    %33 = arith.mulf %23, %31 : vector<8x128xf32>
    %34 = arith.addf %32, %33 : vector<8x128xf32>
    %35 = math.tanh %34 : vector<8x128xf32>
    %36 = arith.mulf %29, %35 : vector<8x128xf32>
    %37 = arith.index_cast %c0_i32_6 : i32 to index
    %c0_12 = arith.constant 0 : index
    %c0_13 = arith.constant 0 : index
    %38 = vector.load %arg4[%37, %c0_12, %c0_13] : memref<8x8x128xf32, #tpu.memory_space<vmem>>, vector<1x8x128xf32>
    %39 = vector.shape_cast %38 : vector<1x8x128xf32> to vector<8x128xf32>
    %40 = vector.shape_cast %36 : vector<8x128xf32> to vector<1x8x128xf32>
    tpu.vector_store %arg4[%37, %c0_12, %c0_13], %40 {strides = array<i32>} : memref<8x8x128xf32, #tpu.memory_space<vmem>>, vector<1x8x128xf32>,
    %c1_i32 = arith.constant 1 : i32
    %41 = arith.index_cast %c1_i32 : i32 to index
    %c0_14 = arith.constant 0 : index
    %c0_15 = arith.constant 0 : index
    %42 = vector.load %arg2[%41, %c0_14, %c0_15] : memref<8x8x512xf32, #tpu.memory_space<vmem>>, vector<1x8x512xf32>
    %43 = vector.shape_cast %42 : vector<1x8x512xf32> to vector<8x512xf32>
    %44 = arith.truncf %36 : vector<8x128xf32> to vector<8x128xbf16>
    %cst_16 = arith.constant dense<0.000000e+00> : vector<8x512xf32>
    %45 = tpu.matmul %44, %3, %cst_16 {dimension_numbers = #tpu.dot_dimension_numbers<[1], [0], [0], [1], [0, 0, 1, 1], [], []>} : vector<8x128xbf16>, vector<128x512xbf16>, vector<8x512xf32> -> vector<8x512xf32>
    %46 = arith.addf %43, %45 : vector<8x512xf32>
    %47 = vector.extract_strided_slice %46 {offsets = [0, 0], sizes = [8, 128], strides = [1, 1]} : vector<8x512xf32> to vector<8x128xf32>
    %48 = arith.negf %47 : vector<8x128xf32>
    %49 = math.exp %48 : vector<8x128xf32>
    %cst_17 = arith.constant 1.000000e+00 : f32
    %50 = vector.broadcast %cst_17 : f32 to vector<8x128xf32>
    %51 = arith.addf %50, %49 : vector<8x128xf32>
    %52 = arith.divf %50, %51 : vector<8x128xf32>
    %53 = vector.extract_strided_slice %46 {offsets = [0, 128], sizes = [8, 128], strides = [1, 1]} : vector<8x512xf32> to vector<8x128xf32>
    %54 = arith.negf %53 : vector<8x128xf32>
    %55 = math.exp %54 : vector<8x128xf32>
    %cst_18 = arith.constant 1.000000e+00 : f32
    %56 = vector.broadcast %cst_18 : f32 to vector<8x128xf32>
    %57 = arith.addf %56, %55 : vector<8x128xf32>
    %58 = arith.divf %56, %57 : vector<8x128xf32>
    %59 = vector.extract_strided_slice %46 {offsets = [0, 256], sizes = [8, 128], strides = [1, 1]} : vector<8x512xf32> to vector<8x128xf32>
    %60 = arith.negf %59 : vector<8x128xf32>
    %61 = math.exp %60 : vector<8x128xf32>
    %cst_19 = arith.constant 1.000000e+00 : f32
    %62 = vector.broadcast %cst_19 : f32 to vector<8x128xf32>
    %63 = arith.addf %62, %61 : vector<8x128xf32>
    %64 = arith.divf %62, %63 : vector<8x128xf32>
    %65 = vector.extract_strided_slice %46 {offsets = [0, 384], sizes = [8, 128], strides = [1, 1]} : vector<8x512xf32> to vector<8x128xf32>
    %66 = math.tanh %65 : vector<8x128xf32>
    %67 = arith.mulf %52, %34 : vector<8x128xf32>
    %68 = arith.mulf %58, %66 : vector<8x128xf32>
    %69 = arith.addf %67, %68 : vector<8x128xf32>
    %70 = math.tanh %69 : vector<8x128xf32>
    %71 = arith.mulf %64, %70 : vector<8x128xf32>
    %72 = arith.index_cast %c1_i32 : i32 to index
    %c0_20 = arith.constant 0 : index
    %c0_21 = arith.constant 0 : index
    %73 = vector.load %arg4[%72, %c0_20, %c0_21] : memref<8x8x128xf32, #tpu.memory_space<vmem>>, vector<1x8x128xf32>
    %74 = vector.shape_cast %73 : vector<1x8x128xf32> to vector<8x128xf32>
    %75 = vector.shape_cast %71 : vector<8x128xf32> to vector<1x8x128xf32>
    tpu.vector_store %arg4[%72, %c0_20, %c0_21], %75 {strides = array<i32>} : memref<8x8x128xf32, #tpu.memory_space<vmem>>, vector<1x8x128xf32>,
    %c2_i32 = arith.constant 2 : i32
    %76 = arith.index_cast %c2_i32 : i32 to index
    %c0_22 = arith.constant 0 : index
    %c0_23 = arith.constant 0 : index
    %77 = vector.load %arg2[%76, %c0_22, %c0_23] : memref<8x8x512xf32, #tpu.memory_space<vmem>>, vector<1x8x512xf32>
    %78 = vector.shape_cast %77 : vector<1x8x512xf32> to vector<8x512xf32>
    %79 = arith.truncf %71 : vector<8x128xf32> to vector<8x128xbf16>
    %cst_24 = arith.constant dense<0.000000e+00> : vector<8x512xf32>
    %80 = tpu.matmul %79, %3, %cst_24 {dimension_numbers = #tpu.dot_dimension_numbers<[1], [0], [0], [1], [0, 0, 1, 1], [], []>} : vector<8x128xbf16>, vector<128x512xbf16>, vector<8x512xf32> -> vector<8x512xf32>
    %81 = arith.addf %78, %80 : vector<8x512xf32>
    %82 = vector.extract_strided_slice %81 {offsets = [0, 0], sizes = [8, 128], strides = [1, 1]} : vector<8x512xf32> to vector<8x128xf32>
    %83 = arith.negf %82 : vector<8x128xf32>
    %84 = math.exp %83 : vector<8x128xf32>
    %cst_25 = arith.constant 1.000000e+00 : f32
    %85 = vector.broadcast %cst_25 : f32 to vector<8x128xf32>
    %86 = arith.addf %85, %84 : vector<8x128xf32>
    %87 = arith.divf %85, %86 : vector<8x128xf32>
    %88 = vector.extract_strided_slice %81 {offsets = [0, 128], sizes = [8, 128], strides = [1, 1]} : vector<8x512xf32> to vector<8x128xf32>
    %89 = arith.negf %88 : vector<8x128xf32>
    %90 = math.exp %89 : vector<8x128xf32>
    %cst_26 = arith.constant 1.000000e+00 : f32
    %91 = vector.broadcast %cst_26 : f32 to vector<8x128xf32>
    %92 = arith.addf %91, %90 : vector<8x128xf32>
    %93 = arith.divf %91, %92 : vector<8x128xf32>
    %94 = vector.extract_strided_slice %81 {offsets = [0, 256], sizes = [8, 128], strides = [1, 1]} : vector<8x512xf32> to vector<8x128xf32>
    %95 = arith.negf %94 : vector<8x128xf32>
    %96 = math.exp %95 : vector<8x128xf32>
    %cst_27 = arith.constant 1.000000e+00 : f32
    %97 = vector.broadcast %cst_27 : f32 to vector<8x128xf32>
    %98 = arith.addf %97, %96 : vector<8x128xf32>
    %99 = arith.divf %97, %98 : vector<8x128xf32>
    %100 = vector.extract_strided_slice %81 {offsets = [0, 384], sizes = [8, 128], strides = [1, 1]} : vector<8x512xf32> to vector<8x128xf32>
    %101 = math.tanh %100 : vector<8x128xf32>
    %102 = arith.mulf %87, %69 : vector<8x128xf32>
    %103 = arith.mulf %93, %101 : vector<8x128xf32>
    %104 = arith.addf %102, %103 : vector<8x128xf32>
    %105 = math.tanh %104 : vector<8x128xf32>
    %106 = arith.mulf %99, %105 : vector<8x128xf32>
    %107 = arith.index_cast %c2_i32 : i32 to index
    %c0_28 = arith.constant 0 : index
    %c0_29 = arith.constant 0 : index
    %108 = vector.load %arg4[%107, %c0_28, %c0_29] : memref<8x8x128xf32, #tpu.memory_space<vmem>>, vector<1x8x128xf32>
    %109 = vector.shape_cast %108 : vector<1x8x128xf32> to vector<8x128xf32>
    %110 = vector.shape_cast %106 : vector<8x128xf32> to vector<1x8x128xf32>
    tpu.vector_store %arg4[%107, %c0_28, %c0_29], %110 {strides = array<i32>} : memref<8x8x128xf32, #tpu.memory_space<vmem>>, vector<1x8x128xf32>,
    %c3_i32 = arith.constant 3 : i32
    %111 = arith.index_cast %c3_i32 : i32 to index
    %c0_30 = arith.constant 0 : index
    %c0_31 = arith.constant 0 : index
    %112 = vector.load %arg2[%111, %c0_30, %c0_31] : memref<8x8x512xf32, #tpu.memory_space<vmem>>, vector<1x8x512xf32>
    %113 = vector.shape_cast %112 : vector<1x8x512xf32> to vector<8x512xf32>
    %114 = arith.truncf %106 : vector<8x128xf32> to vector<8x128xbf16>
    %cst_32 = arith.constant dense<0.000000e+00> : vector<8x512xf32>
    %115 = tpu.matmul %114, %3, %cst_32 {dimension_numbers = #tpu.dot_dimension_numbers<[1], [0], [0], [1], [0, 0, 1, 1], [], []>} : vector<8x128xbf16>, vector<128x512xbf16>, vector<8x512xf32> -> vector<8x512xf32>
    %116 = arith.addf %113, %115 : vector<8x512xf32>
    %117 = vector.extract_strided_slice %116 {offsets = [0, 0], sizes = [8, 128], strides = [1, 1]} : vector<8x512xf32> to vector<8x128xf32>
    %118 = arith.negf %117 : vector<8x128xf32>
    %119 = math.exp %118 : vector<8x128xf32>
    %cst_33 = arith.constant 1.000000e+00 : f32
    %120 = vector.broadcast %cst_33 : f32 to vector<8x128xf32>
    %121 = arith.addf %120, %119 : vector<8x128xf32>
    %122 = arith.divf %120, %121 : vector<8x128xf32>
    %123 = vector.extract_strided_slice %116 {offsets = [0, 128], sizes = [8, 128], strides = [1, 1]} : vector<8x512xf32> to vector<8x128xf32>
    %124 = arith.negf %123 : vector<8x128xf32>
    %125 = math.exp %124 : vector<8x128xf32>
    %cst_34 = arith.constant 1.000000e+00 : f32
    %126 = vector.broadcast %cst_34 : f32 to vector<8x128xf32>
    %127 = arith.addf %126, %125 : vector<8x128xf32>
    %128 = arith.divf %126, %127 : vector<8x128xf32>
    %129 = vector.extract_strided_slice %116 {offsets = [0, 256], sizes = [8, 128], strides = [1, 1]} : vector<8x512xf32> to vector<8x128xf32>
    %130 = arith.negf %129 : vector<8x128xf32>
    %131 = math.exp %130 : vector<8x128xf32>
    %cst_35 = arith.constant 1.000000e+00 : f32
    %132 = vector.broadcast %cst_35 : f32 to vector<8x128xf32>
    %133 = arith.addf %132, %131 : vector<8x128xf32>
    %134 = arith.divf %132, %133 : vector<8x128xf32>
    %135 = vector.extract_strided_slice %116 {offsets = [0, 384], sizes = [8, 128], strides = [1, 1]} : vector<8x512xf32> to vector<8x128xf32>
    %136 = math.tanh %135 : vector<8x128xf32>
    %137 = arith.mulf %122, %104 : vector<8x128xf32>
    %138 = arith.mulf %128, %136 : vector<8x128xf32>
    %139 = arith.addf %137, %138 : vector<8x128xf32>
    %140 = math.tanh %139 : vector<8x128xf32>
    %141 = arith.mulf %134, %140 : vector<8x128xf32>
    %142 = arith.index_cast %c3_i32 : i32 to index
    %c0_36 = arith.constant 0 : index
    %c0_37 = arith.constant 0 : index
    %143 = vector.load %arg4[%142, %c0_36, %c0_37] : memref<8x8x128xf32, #tpu.memory_space<vmem>>, vector<1x8x128xf32>
    %144 = vector.shape_cast %143 : vector<1x8x128xf32> to vector<8x128xf32>
    %145 = vector.shape_cast %141 : vector<8x128xf32> to vector<1x8x128xf32>
    tpu.vector_store %arg4[%142, %c0_36, %c0_37], %145 {strides = array<i32>} : memref<8x8x128xf32, #tpu.memory_space<vmem>>, vector<1x8x128xf32>,
    %c4_i32 = arith.constant 4 : i32
    %146 = arith.index_cast %c4_i32 : i32 to index
    %c0_38 = arith.constant 0 : index
    %c0_39 = arith.constant 0 : index
    %147 = vector.load %arg2[%146, %c0_38, %c0_39] : memref<8x8x512xf32, #tpu.memory_space<vmem>>, vector<1x8x512xf32>
    %148 = vector.shape_cast %147 : vector<1x8x512xf32> to vector<8x512xf32>
    %149 = arith.truncf %141 : vector<8x128xf32> to vector<8x128xbf16>
    %cst_40 = arith.constant dense<0.000000e+00> : vector<8x512xf32>
    %150 = tpu.matmul %149, %3, %cst_40 {dimension_numbers = #tpu.dot_dimension_numbers<[1], [0], [0], [1], [0, 0, 1, 1], [], []>} : vector<8x128xbf16>, vector<128x512xbf16>, vector<8x512xf32> -> vector<8x512xf32>
    %151 = arith.addf %148, %150 : vector<8x512xf32>
    %152 = vector.extract_strided_slice %151 {offsets = [0, 0], sizes = [8, 128], strides = [1, 1]} : vector<8x512xf32> to vector<8x128xf32>
    %153 = arith.negf %152 : vector<8x128xf32>
    %154 = math.exp %153 : vector<8x128xf32>
    %cst_41 = arith.constant 1.000000e+00 : f32
    %155 = vector.broadcast %cst_41 : f32 to vector<8x128xf32>
    %156 = arith.addf %155, %154 : vector<8x128xf32>
    %157 = arith.divf %155, %156 : vector<8x128xf32>
    %158 = vector.extract_strided_slice %151 {offsets = [0, 128], sizes = [8, 128], strides = [1, 1]} : vector<8x512xf32> to vector<8x128xf32>
    %159 = arith.negf %158 : vector<8x128xf32>
    %160 = math.exp %159 : vector<8x128xf32>
    %cst_42 = arith.constant 1.000000e+00 : f32
    %161 = vector.broadcast %cst_42 : f32 to vector<8x128xf32>
    %162 = arith.addf %161, %160 : vector<8x128xf32>
    %163 = arith.divf %161, %162 : vector<8x128xf32>
    %164 = vector.extract_strided_slice %151 {offsets = [0, 256], sizes = [8, 128], strides = [1, 1]} : vector<8x512xf32> to vector<8x128xf32>
    %165 = arith.negf %164 : vector<8x128xf32>
    %166 = math.exp %165 : vector<8x128xf32>
    %cst_43 = arith.constant 1.000000e+00 : f32
    %167 = vector.broadcast %cst_43 : f32 to vector<8x128xf32>
    %168 = arith.addf %167, %166 : vector<8x128xf32>
    %169 = arith.divf %167, %168 : vector<8x128xf32>
    %170 = vector.extract_strided_slice %151 {offsets = [0, 384], sizes = [8, 128], strides = [1, 1]} : vector<8x512xf32> to vector<8x128xf32>
    %171 = math.tanh %170 : vector<8x128xf32>
    %172 = arith.mulf %157, %139 : vector<8x128xf32>
    %173 = arith.mulf %163, %171 : vector<8x128xf32>
    %174 = arith.addf %172, %173 : vector<8x128xf32>
    %175 = math.tanh %174 : vector<8x128xf32>
    %176 = arith.mulf %169, %175 : vector<8x128xf32>
    %177 = arith.index_cast %c4_i32 : i32 to index
    %c0_44 = arith.constant 0 : index
    %c0_45 = arith.constant 0 : index
    %178 = vector.load %arg4[%177, %c0_44, %c0_45] : memref<8x8x128xf32, #tpu.memory_space<vmem>>, vector<1x8x128xf32>
    %179 = vector.shape_cast %178 : vector<1x8x128xf32> to vector<8x128xf32>
    %180 = vector.shape_cast %176 : vector<8x128xf32> to vector<1x8x128xf32>
    tpu.vector_store %arg4[%177, %c0_44, %c0_45], %180 {strides = array<i32>} : memref<8x8x128xf32, #tpu.memory_space<vmem>>, vector<1x8x128xf32>,
    %c5_i32 = arith.constant 5 : i32
    %181 = arith.index_cast %c5_i32 : i32 to index
    %c0_46 = arith.constant 0 : index
    %c0_47 = arith.constant 0 : index
    %182 = vector.load %arg2[%181, %c0_46, %c0_47] : memref<8x8x512xf32, #tpu.memory_space<vmem>>, vector<1x8x512xf32>
    %183 = vector.shape_cast %182 : vector<1x8x512xf32> to vector<8x512xf32>
    %184 = arith.truncf %176 : vector<8x128xf32> to vector<8x128xbf16>
    %cst_48 = arith.constant dense<0.000000e+00> : vector<8x512xf32>
    %185 = tpu.matmul %184, %3, %cst_48 {dimension_numbers = #tpu.dot_dimension_numbers<[1], [0], [0], [1], [0, 0, 1, 1], [], []>} : vector<8x128xbf16>, vector<128x512xbf16>, vector<8x512xf32> -> vector<8x512xf32>
    %186 = arith.addf %183, %185 : vector<8x512xf32>
    %187 = vector.extract_strided_slice %186 {offsets = [0, 0], sizes = [8, 128], strides = [1, 1]} : vector<8x512xf32> to vector<8x128xf32>
    %188 = arith.negf %187 : vector<8x128xf32>
    %189 = math.exp %188 : vector<8x128xf32>
    %cst_49 = arith.constant 1.000000e+00 : f32
    %190 = vector.broadcast %cst_49 : f32 to vector<8x128xf32>
    %191 = arith.addf %190, %189 : vector<8x128xf32>
    %192 = arith.divf %190, %191 : vector<8x128xf32>
    %193 = vector.extract_strided_slice %186 {offsets = [0, 128], sizes = [8, 128], strides = [1, 1]} : vector<8x512xf32> to vector<8x128xf32>
    %194 = arith.negf %193 : vector<8x128xf32>
    %195 = math.exp %194 : vector<8x128xf32>
    %cst_50 = arith.constant 1.000000e+00 : f32
    %196 = vector.broadcast %cst_50 : f32 to vector<8x128xf32>
    %197 = arith.addf %196, %195 : vector<8x128xf32>
    %198 = arith.divf %196, %197 : vector<8x128xf32>
    %199 = vector.extract_strided_slice %186 {offsets = [0, 256], sizes = [8, 128], strides = [1, 1]} : vector<8x512xf32> to vector<8x128xf32>
    %200 = arith.negf %199 : vector<8x128xf32>
    %201 = math.exp %200 : vector<8x128xf32>
    %cst_51 = arith.constant 1.000000e+00 : f32
    %202 = vector.broadcast %cst_51 : f32 to vector<8x128xf32>
    %203 = arith.addf %202, %201 : vector<8x128xf32>
    %204 = arith.divf %202, %203 : vector<8x128xf32>
    %205 = vector.extract_strided_slice %186 {offsets = [0, 384], sizes = [8, 128], strides = [1, 1]} : vector<8x512xf32> to vector<8x128xf32>
    %206 = math.tanh %205 : vector<8x128xf32>
    %207 = arith.mulf %192, %174 : vector<8x128xf32>
    %208 = arith.mulf %198, %206 : vector<8x128xf32>
    %209 = arith.addf %207, %208 : vector<8x128xf32>
    %210 = math.tanh %209 : vector<8x128xf32>
    %211 = arith.mulf %204, %210 : vector<8x128xf32>
    %212 = arith.index_cast %c5_i32 : i32 to index
    %c0_52 = arith.constant 0 : index
    %c0_53 = arith.constant 0 : index
    %213 = vector.load %arg4[%212, %c0_52, %c0_53] : memref<8x8x128xf32, #tpu.memory_space<vmem>>, vector<1x8x128xf32>
    %214 = vector.shape_cast %213 : vector<1x8x128xf32> to vector<8x128xf32>
    %215 = vector.shape_cast %211 : vector<8x128xf32> to vector<1x8x128xf32>
    tpu.vector_store %arg4[%212, %c0_52, %c0_53], %215 {strides = array<i32>} : memref<8x8x128xf32, #tpu.memory_space<vmem>>, vector<1x8x128xf32>,
    %c6_i32 = arith.constant 6 : i32
    %216 = arith.index_cast %c6_i32 : i32 to index
    %c0_54 = arith.constant 0 : index
    %c0_55 = arith.constant 0 : index
    %217 = vector.load %arg2[%216, %c0_54, %c0_55] : memref<8x8x512xf32, #tpu.memory_space<vmem>>, vector<1x8x512xf32>
    %218 = vector.shape_cast %217 : vector<1x8x512xf32> to vector<8x512xf32>
    %219 = arith.truncf %211 : vector<8x128xf32> to vector<8x128xbf16>
    %cst_56 = arith.constant dense<0.000000e+00> : vector<8x512xf32>
    %220 = tpu.matmul %219, %3, %cst_56 {dimension_numbers = #tpu.dot_dimension_numbers<[1], [0], [0], [1], [0, 0, 1, 1], [], []>} : vector<8x128xbf16>, vector<128x512xbf16>, vector<8x512xf32> -> vector<8x512xf32>
    %221 = arith.addf %218, %220 : vector<8x512xf32>
    %222 = vector.extract_strided_slice %221 {offsets = [0, 0], sizes = [8, 128], strides = [1, 1]} : vector<8x512xf32> to vector<8x128xf32>
    %223 = arith.negf %222 : vector<8x128xf32>
    %224 = math.exp %223 : vector<8x128xf32>
    %cst_57 = arith.constant 1.000000e+00 : f32
    %225 = vector.broadcast %cst_57 : f32 to vector<8x128xf32>
    %226 = arith.addf %225, %224 : vector<8x128xf32>
    %227 = arith.divf %225, %226 : vector<8x128xf32>
    %228 = vector.extract_strided_slice %221 {offsets = [0, 128], sizes = [8, 128], strides = [1, 1]} : vector<8x512xf32> to vector<8x128xf32>
    %229 = arith.negf %228 : vector<8x128xf32>
    %230 = math.exp %229 : vector<8x128xf32>
    %cst_58 = arith.constant 1.000000e+00 : f32
    %231 = vector.broadcast %cst_58 : f32 to vector<8x128xf32>
    %232 = arith.addf %231, %230 : vector<8x128xf32>
    %233 = arith.divf %231, %232 : vector<8x128xf32>
    %234 = vector.extract_strided_slice %221 {offsets = [0, 256], sizes = [8, 128], strides = [1, 1]} : vector<8x512xf32> to vector<8x128xf32>
    %235 = arith.negf %234 : vector<8x128xf32>
    %236 = math.exp %235 : vector<8x128xf32>
    %cst_59 = arith.constant 1.000000e+00 : f32
    %237 = vector.broadcast %cst_59 : f32 to vector<8x128xf32>
    %238 = arith.addf %237, %236 : vector<8x128xf32>
    %239 = arith.divf %237, %238 : vector<8x128xf32>
    %240 = vector.extract_strided_slice %221 {offsets = [0, 384], sizes = [8, 128], strides = [1, 1]} : vector<8x512xf32> to vector<8x128xf32>
    %241 = math.tanh %240 : vector<8x128xf32>
    %242 = arith.mulf %227, %209 : vector<8x128xf32>
    %243 = arith.mulf %233, %241 : vector<8x128xf32>
    %244 = arith.addf %242, %243 : vector<8x128xf32>
    %245 = math.tanh %244 : vector<8x128xf32>
    %246 = arith.mulf %239, %245 : vector<8x128xf32>
    %247 = arith.index_cast %c6_i32 : i32 to index
    %c0_60 = arith.constant 0 : index
    %c0_61 = arith.constant 0 : index
    %248 = vector.load %arg4[%247, %c0_60, %c0_61] : memref<8x8x128xf32, #tpu.memory_space<vmem>>, vector<1x8x128xf32>
    %249 = vector.shape_cast %248 : vector<1x8x128xf32> to vector<8x128xf32>
    %250 = vector.shape_cast %246 : vector<8x128xf32> to vector<1x8x128xf32>
    tpu.vector_store %arg4[%247, %c0_60, %c0_61], %250 {strides = array<i32>} : memref<8x8x128xf32, #tpu.memory_space<vmem>>, vector<1x8x128xf32>,
    %c7_i32 = arith.constant 7 : i32
    %251 = arith.index_cast %c7_i32 : i32 to index
    %c0_62 = arith.constant 0 : index
    %c0_63 = arith.constant 0 : index
    %252 = vector.load %arg2[%251, %c0_62, %c0_63] : memref<8x8x512xf32, #tpu.memory_space<vmem>>, vector<1x8x512xf32>
    %253 = vector.shape_cast %252 : vector<1x8x512xf32> to vector<8x512xf32>
    %254 = arith.truncf %246 : vector<8x128xf32> to vector<8x128xbf16>
    %cst_64 = arith.constant dense<0.000000e+00> : vector<8x512xf32>
    %255 = tpu.matmul %254, %3, %cst_64 {dimension_numbers = #tpu.dot_dimension_numbers<[1], [0], [0], [1], [0, 0, 1, 1], [], []>} : vector<8x128xbf16>, vector<128x512xbf16>, vector<8x512xf32> -> vector<8x512xf32>
    %256 = arith.addf %253, %255 : vector<8x512xf32>
    %257 = vector.extract_strided_slice %256 {offsets = [0, 0], sizes = [8, 128], strides = [1, 1]} : vector<8x512xf32> to vector<8x128xf32>
    %258 = arith.negf %257 : vector<8x128xf32>
    %259 = math.exp %258 : vector<8x128xf32>
    %cst_65 = arith.constant 1.000000e+00 : f32
    %260 = vector.broadcast %cst_65 : f32 to vector<8x128xf32>
    %261 = arith.addf %260, %259 : vector<8x128xf32>
    %262 = arith.divf %260, %261 : vector<8x128xf32>
    %263 = vector.extract_strided_slice %256 {offsets = [0, 128], sizes = [8, 128], strides = [1, 1]} : vector<8x512xf32> to vector<8x128xf32>
    %264 = arith.negf %263 : vector<8x128xf32>
    %265 = math.exp %264 : vector<8x128xf32>
    %cst_66 = arith.constant 1.000000e+00 : f32
    %266 = vector.broadcast %cst_66 : f32 to vector<8x128xf32>
    %267 = arith.addf %266, %265 : vector<8x128xf32>
    %268 = arith.divf %266, %267 : vector<8x128xf32>
    %269 = vector.extract_strided_slice %256 {offsets = [0, 256], sizes = [8, 128], strides = [1, 1]} : vector<8x512xf32> to vector<8x128xf32>
    %270 = arith.negf %269 : vector<8x128xf32>
    %271 = math.exp %270 : vector<8x128xf32>
    %cst_67 = arith.constant 1.000000e+00 : f32
    %272 = vector.broadcast %cst_67 : f32 to vector<8x128xf32>
    %273 = arith.addf %272, %271 : vector<8x128xf32>
    %274 = arith.divf %272, %273 : vector<8x128xf32>
    %275 = vector.extract_strided_slice %256 {offsets = [0, 384], sizes = [8, 128], strides = [1, 1]} : vector<8x512xf32> to vector<8x128xf32>
    %276 = math.tanh %275 : vector<8x128xf32>
    %277 = arith.mulf %262, %244 : vector<8x128xf32>
    %278 = arith.mulf %268, %276 : vector<8x128xf32>
    %279 = arith.addf %277, %278 : vector<8x128xf32>
    %280 = math.tanh %279 : vector<8x128xf32>
    %281 = arith.mulf %274, %280 : vector<8x128xf32>
    %282 = arith.index_cast %c7_i32 : i32 to index
    %c0_68 = arith.constant 0 : index
    %c0_69 = arith.constant 0 : index
    %283 = vector.load %arg4[%282, %c0_68, %c0_69] : memref<8x8x128xf32, #tpu.memory_space<vmem>>, vector<1x8x128xf32>
    %284 = vector.shape_cast %283 : vector<1x8x128xf32> to vector<8x128xf32>
    %285 = vector.shape_cast %281 : vector<8x128xf32> to vector<1x8x128xf32>
    tpu.vector_store %arg4[%282, %c0_68, %c0_69], %285 {strides = array<i32>} : memref<8x8x128xf32, #tpu.memory_space<vmem>>, vector<1x8x128xf32>,
    %c8_i32 = arith.constant 8 : i32
    %c0_70 = arith.constant 0 : index
    %c0_71 = arith.constant 0 : index
    %286 = vector.load %arg6[%c0_70, %c0_71] : memref<8x128xf32, #tpu.memory_space<vmem>>, vector<8x128xf32>
    tpu.vector_store %arg6[%c0_70, %c0_71], %281 {strides = array<i32>} : memref<8x128xf32, #tpu.memory_space<vmem>>, vector<8x128xf32>,
    %c0_72 = arith.constant 0 : index
    %c0_73 = arith.constant 0 : index
    %287 = vector.load %arg7[%c0_72, %c0_73] : memref<8x128xf32, #tpu.memory_space<vmem>>, vector<8x128xf32>
    tpu.vector_store %arg7[%c0_72, %c0_73], %279 {strides = array<i32>} : memref<8x128xf32, #tpu.memory_space<vmem>>, vector<8x128xf32>,
    %c0_i32_74 = arith.constant 0 : i32
    %288 = arith.cmpi eq, %arg1, %c0_i32_74 : i32
    %289 = arith.extui %288 : i1 to i32
    %c0_i32_75 = arith.constant 0 : i32
    %290 = arith.cmpi ne, %289, %c0_i32_75 : i32
    scf.if %290 {
      %c0_76 = arith.constant 0 : index
      %c0_77 = arith.constant 0 : index
      %c0_78 = arith.constant 0 : index
      %291 = vector.load %arg5[%c0_76, %c0_77, %c0_78] : memref<1x8x128xf32, #tpu.memory_space<vmem>>, vector<1x8x128xf32>
      %292 = vector.shape_cast %291 : vector<1x8x128xf32> to vector<8x128xf32>
      %293 = vector.shape_cast %279 : vector<8x128xf32> to vector<1x8x128xf32>
      tpu.vector_store %arg5[%c0_76, %c0_77, %c0_78], %293 {strides = array<i32>} : memref<1x8x128xf32, #tpu.memory_space<vmem>>, vector<1x8x128xf32>,
    } else {
    }
    return
  }
  func.func @transform_0(%arg0: i32, %arg1: i32) -> (i32, i32, i32) {
    %c0_i32 = arith.constant 0 : i32
    %c0_i32_0 = arith.constant 0 : i32
    return %arg1, %arg0, %c0_i32 : i32, i32, i32
  }
  func.func @transform_1(%arg0: i32, %arg1: i32) -> (i32, i32) {
    %c0_i32 = arith.constant 0 : i32
    %c0_i32_0 = arith.constant 0 : i32
    %c0_i32_1 = arith.constant 0 : i32
    return %c0_i32, %c0_i32_0 : i32, i32
  }
  func.func @transform_2(%arg0: i32, %arg1: i32) -> (i32, i32, i32) {
    %c0_i32 = arith.constant 0 : i32
    %c0_i32_0 = arith.constant 0 : i32
    return %arg1, %arg0, %c0_i32 : i32, i32, i32
  }
  func.func @transform_3(%arg0: i32, %arg1: i32) -> (i32, i32, i32) {
    %c0_i32 = arith.constant 0 : i32
    %c0_i32_0 = arith.constant 0 : i32
    %c0_i32_1 = arith.constant 0 : i32
    return %c0_i32, %arg0, %c0_i32_0 : i32, i32, i32
  }
}

</mosaic_0001>

<bundles_post_ra>
// kernel: tpu_custom_call.1
= control target key start
LH: loop header
LB: loop body
LE: loop exit
PB: predicated region body
PF: predicated region fallthrough
CT: control target
= control target key end

     0   :  { %9 = vsyncpa [#allocation5], 0  ;;  %s2004_s0 = inlined_call_operand.hbm [shape: f32[8,8,512], index: 0, kind: input, shape index: {}]   ;;  %s2005_s1 = inlined_call_operand.hbm [shape: bf16[128,512], index: 1, kind: input, shape index: {}]   ;;  %s2006_s2 = inlined_call_operand.hbm [shape: f32[8,8,128], index: 2, kind: output, shape index: {0}]   ;;  %s2007_s3 = inlined_call_operand.hbm [shape: f32[1,8,128], index: 3, kind: output, shape index: {1}]  }
   0x1   :  { %10 = vsyncpa [#allocation8], 0 }
   0x2   :  { %11 = vsyncpa [#allocation6], 0 }
   0x3   :  { %12 = vsyncpa [#allocation11], 0  ;;  %s1596_s12 = smov [#allocation4]   ;;  %s1500_s16 = scalar_lea.hbm %s2004_s0, 4096 }
   0x4   :  { %s18_s13 = sshll.u32 %s1596_s12, 4  ;;  %p1501_p0 = scmp.ne.s32.totalorder %s2004_s0, %s1500_s16  ;;  %s19_s13 = int_to_ptr.vmem [resolvable:$true] %s18_s13 }
   0x5   :  { %p1504_p1 = scmp.lt.u32.totalorder %s1500_s16, %s2004_s0 }
   0x7   :  { %p1506_p2 = pnand %p1504_p1, %p1501_p0 }
   0x9   :  { %1509 = shalt.err (!%p1506_p2)
}
   0xa   :  { %s1510_s21 = scalar_lea.vmem %s19_s13, 4096  ;;  %p1515_p4 = scmp.lt.s32.totalorder %s19_s13, %s19_s13 }
   0xb   :  { %p1511_p3 = scmp.ne.s32.totalorder %s19_s13, %s1510_s21  ;;  %p1516_p5 = scmp.lt.s32.totalorder %s1510_s21, %s1510_s21 }
   0xd   :  { %p1517_p6 = por %p1516_p5, %p1515_p4 }
   0xf   :  { %p1518_p7 = pnand %p1517_p6, %p1511_p3 }
  0x11   :  { %1521 = shalt.err (!%p1518_p7)
}
  0x12   :  { %s1597_s22 = smov 512   ;;  %s1598_s23 = smov 32  }
  0x13   :  { %24 = dma.hbm_to_vmem [thread:$0]  %s2004_s0, 4096, %s19_s13, [#allocation5], %s1597_s22, %s1597_s22, %s1598_s23  }
  0x14   :  { %s1599_s26 = smov [#allocation7]   ;;  %s1522_s30 = scalar_lea.hbm %s2005_s1, 4096 }
  0x15   :  { %s30_s27 = sshll.u32 %s1599_s26, 4  ;;  %p1523_p8 = scmp.ne.s32.totalorder %s2005_s1, %s1522_s30  ;;  %s31_s27 = int_to_ptr.vmem [resolvable:$true] %s30_s27 }
  0x16   :  { %p1526_p9 = scmp.lt.u32.totalorder %s1522_s30, %s2005_s1 }
  0x18   :  { %p1528_p10 = pnand %p1526_p9, %p1523_p8 }
  0x1a   :  { %1531 = shalt.err (!%p1528_p10)
}
  0x1b   :  { %s1532_s8 = scalar_lea.vmem %s31_s27, 4096  ;;  %p1537_p12 = scmp.lt.s32.totalorder %s31_s27, %s31_s27 }
  0x1c   :  { %p1533_p11 = scmp.ne.s32.totalorder %s31_s27, %s1532_s8  ;;  %p1538_p13 = scmp.lt.s32.totalorder %s1532_s8, %s1532_s8 }
  0x1e   :  { %p1539_p0 = por %p1538_p13, %p1537_p12 }
  0x20   :  { %p1540_p1 = pnand %p1539_p0, %p1533_p11 }
  0x22   :  { %1543 = shalt.err (!%p1540_p1)
}
  0x23   :  { %s1600_s0 = smov 256   ;;  %s1601_s9 = smov 16  }
  0x24   :  { %36 = dma.hbm_to_vmem [thread:$0]  %s2005_s1, 4096, %s31_s27, [#allocation8], %s1600_s0, %s1600_s0, %s1601_s9  }
  0x25   :  { %1588 = dma.done.wait [#allocation5], 4096  }
  0x26   :  { %1589 = vsyncadd [#allocation5], 4294963200 }
  0x27   :  { %1590 = dma.done.wait [#allocation8], 4096  }
  0x28   :  { %1591 = vsyncadd [#allocation8], 4294963200  ;;  %v1602_v0 = vmov 0   ;;  %v1654_v1 = vld [vmem:[#allocation7 + $0x4] ss:$16 sps:$4 sm:$0xff]   ;;  %v1603_v33 = vmov 0.0|0.0  }
  0x29   :  { %281 = vmatprep.mubr.bf16.mxu0 %v1602_v0  ;;  %322 = vmatprep.mubr.bf16.mxu1 %v1602_v0  ;;  %v1656_v2 = vld [vmem:[#allocation7] ss:$16 sps:$4 sm:$0xff]   ;;  %v1659_v3 = vld [vmem:[#allocation7 + $0x24] ss:$16 sps:$4 sm:$0xff]   ;;  %v1667_v6 = vld [vmem:[#allocation7 + $0xc] ss:$16 sps:$4 sm:$0xff]  }
  0x2a   :  { %249 = vmatprep.subr.bf16.mxu0 %v1654_v1  ;;  %v1662_v4 = vld [vmem:[#allocation7 + $0x20] ss:$16 sps:$4 sm:$0xff]   ;;  %v1665_v5 = vld [vmem:[#allocation7 + $0x44] ss:$16 sps:$4 sm:$0xff]   ;;  %v1669_v7 = vld [vmem:[#allocation7 + $0x8] ss:$16 sps:$4 sm:$0xff]   ;;  %290 = vmatprep.subr.bf16.mxu1 %v1667_v6 }
  0x2b   :  { %250 = vmatpush1.bf16.msra.mxu0 %v1656_v2  ;;  %v1672_v8 = vld [vmem:[#allocation7 + $0x40] ss:$16 sps:$4 sm:$0xff]   ;;  %v1676_v9 = vld [vmem:[#allocation7 + $0x64] ss:$16 sps:$4 sm:$0xff]   ;;  %291 = vmatpush1.bf16.msra.mxu1 %v1669_v7  ;;  %v1679_v10 = vld [vmem:[#allocation7 + $0x2c] ss:$16 sps:$4 sm:$0xff]  }
  0x2c   :  { %251 = vmatprep.subr.bf16.mxu0 %v1659_v3  ;;  %v1681_v11 = vld [vmem:[#allocation7 + $0x28] ss:$16 sps:$4 sm:$0xff]   ;;  %292 = vmatprep.subr.bf16.mxu1 %v1679_v10  ;;  %v1685_v12 = vld [vmem:[#allocation7 + $0x60] ss:$16 sps:$4 sm:$0xff]   ;;  %v1687_v13 = vld [vmem:[#allocation7 + $0x84] ss:$16 sps:$4 sm:$0xff]  }
  0x2d   :  { %v1689_v14 = vld [vmem:[#allocation7 + $0x4c] ss:$16 sps:$4 sm:$0xff]   ;;  %v1693_v15 = vld [vmem:[#allocation7 + $0x48] ss:$16 sps:$4 sm:$0xff]   ;;  %v1699_v17 = vld [vmem:[#allocation7 + $0x80] ss:$16 sps:$4 sm:$0xff]  }
  0x2e   :  { %v1696_v16 = vld [vmem:[#allocation7 + $0x6c] ss:$16 sps:$4 sm:$0xff]   ;;  %v1702_v18 = vld [vmem:[#allocation7 + $0xa4] ss:$16 sps:$4 sm:$0xff]   ;;  %v1705_v19 = vld [vmem:[#allocation7 + $0x68] ss:$16 sps:$4 sm:$0xff]  }
  0x2f   :  { %252 = vmatpush1.bf16.msra.mxu0 %v1662_v4  ;;  %293 = vmatpush1.bf16.msra.mxu1 %v1681_v11  ;;  %v1708_v20 = vld [vmem:[#allocation7 + $0x8c] ss:$16 sps:$4 sm:$0xff]   ;;  %v1711_v21 = vld [vmem:[#allocation7 + $0xa0] ss:$16 sps:$4 sm:$0xff]   ;;  %v1713_v22 = vld [vmem:[#allocation7 + $0xc4] ss:$16 sps:$4 sm:$0xff]  }
  0x30   :  { %253 = vmatprep.subr.bf16.mxu0 %v1665_v5  ;;  %294 = vmatprep.subr.bf16.mxu1 %v1689_v14  ;;  %v1717_v23 = vld [vmem:[#allocation7 + $0x88] ss:$16 sps:$4 sm:$0xff]   ;;  %v1720_v24 = vld [vmem:[#allocation7 + $0xac] ss:$16 sps:$4 sm:$0xff]   ;;  %v1723_v25 = vld [vmem:[#allocation7 + $0xc0] ss:$16 sps:$4 sm:$0xff]  }
  0x31   :  { %v1726_v26 = vld [vmem:[#allocation7 + $0xe4] ss:$16 sps:$4 sm:$0xff]   ;;  %v1729_v27 = vld [vmem:[#allocation7 + $0xa8] ss:$16 sps:$4 sm:$0xff]   ;;  %v1732_v28 = vld [vmem:[#allocation7 + $0xcc] ss:$16 sps:$4 sm:$0xff]  }
  0x32   :  { %v1735_v29 = vld [vmem:[#allocation7 + $0xe0] ss:$16 sps:$4 sm:$0xff]   ;;  %v1739_v30 = vld [vmem:[#allocation7 + $0xc8] ss:$16 sps:$4 sm:$0xff]   ;;  %v1742_v31 = vld [vmem:[#allocation7 + $0xec] ss:$16 sps:$4 sm:$0xff]  }
  0x33   :  { %254 = vmatpush1.bf16.msra.mxu0 %v1672_v8  ;;  %295 = vmatpush1.bf16.msra.mxu1 %v1693_v15  ;;  %v1746_v32 = vld [vmem:[#allocation7 + $0xe8] ss:$16 sps:$4 sm:$0xff]   ;;  %v84_v34 = vld [vmem:[#allocation4] sm:$0xff]  ;;  %v86_v44 = vld [vmem:[#allocation4 + $0x10] sm:$0xff]  ;;  %s1604_s1 = smov [#allocation10]  }
  0x34   :  { %255 = vmatprep.subr.bf16.mxu0 %v1676_v9  ;;  %296 = vmatprep.subr.bf16.mxu1 %v1696_v16  ;;  %v85_v35 = vld [vmem:[#allocation4 + $0x8] sm:$0xff]  ;;  %v87_v50 = vld [vmem:[#allocation4 + $0x18] sm:$0xff]  ;;  %s1210_s12 = sshll.u32 %s1604_s1, 4  ;;  %s1211_s12 = int_to_ptr.vmem [resolvable:$true] %s1210_s12 }
  0x35   :  { %s1544_s13 = scalar_lea.vmem %s1211_s12, 128  ;;  %p1549_p3 = scmp.lt.s32.totalorder %s1211_s12, %s1211_s12 }
  0x36   :  { %p1545_p2 = scmp.ne.s32.totalorder %s1211_s12, %s1544_s13  ;;  %p1550_p4 = scmp.lt.s32.totalorder %s1544_s13, %s1544_s13 }
  0x37   :  { %256 = vmatpush1.bf16.msra.mxu0 %v1685_v12  ;;  %297 = vmatpush1.bf16.msra.mxu1 %v1705_v19 }
  0x38   :  { %257 = vmatprep.subr.bf16.mxu0 %v1687_v13  ;;  %298 = vmatprep.subr.bf16.mxu1 %v1708_v20  ;;  %p1551_p5 = por %p1550_p4, %p1549_p3 }
  0x3a   :  { %p1552_p6 = pnand %p1551_p5, %p1545_p2 }
  0x3b   :  { %258 = vmatpush1.bf16.msra.mxu0 %v1699_v17  ;;  %299 = vmatpush1.bf16.msra.mxu1 %v1717_v23 }
  0x3c   :  { %259 = vmatprep.subr.bf16.mxu0 %v1702_v18  ;;  %300 = vmatprep.subr.bf16.mxu1 %v1720_v24 }
  0x3f   :  { %260 = vmatpush1.bf16.msra.mxu0 %v1711_v21  ;;  %301 = vmatpush1.bf16.msra.mxu1 %v1729_v27 }
  0x40   :  { %261 = vmatprep.subr.bf16.mxu0 %v1713_v22  ;;  %302 = vmatprep.subr.bf16.mxu1 %v1732_v28 }
  0x43   :  { %262 = vmatpush1.bf16.msra.mxu0 %v1723_v25  ;;  %303 = vmatpush1.bf16.msra.mxu1 %v1739_v30 }
  0x44   :  { %263 = vmatprep.subr.bf16.mxu0 %v1726_v26  ;;  %304 = vmatprep.subr.bf16.mxu1 %v1742_v31 }
  0x47   :  { %264 = vmatpush1.bf16.msra.mxu0 %v1735_v29  ;;  %305 = vmatpush1.bf16.msra.mxu1 %v1746_v32 }
  0x48   :  { %366 = vmatprep.subr.bf16.mxu0 %v1654_v1  ;;  %407 = vmatprep.subr.bf16.mxu1 %v1667_v6 }
  0x4a   :  { %282 = vmatmul.mubr.bf16.vlgmr.msra.gmra.mrb[0].mxu0 %v1603_v33  ;;  %323 = vmatmul.mubr.bf16.vlgmr.msra.gmra.mrb[0].mxu1 %v1603_v33 }
  0x4b   :  { %367 = vmatpush1.bf16.msra.mxu0 %v1656_v2  ;;  %398 = vmatprep.mubr.bf16.mxu0 %v1602_v0 }
  0x4c   :  { %368 = vmatprep.subr.bf16.mxu0 %v1659_v3  ;;  %408 = vmatpush1.bf16.msra.mxu1 %v1669_v7 }
  0x4d   :  { %409 = vmatprep.subr.bf16.mxu1 %v1679_v10  ;;  %439 = vmatprep.mubr.bf16.mxu1 %v1602_v0 }
  0x4f   :  { %369 = vmatpush1.bf16.msra.mxu0 %v1662_v4 }
  0x50   :  { %370 = vmatprep.subr.bf16.mxu0 %v1665_v5  ;;  %410 = vmatpush1.bf16.msra.mxu1 %v1681_v11 }
  0x51   :  { %411 = vmatprep.subr.bf16.mxu1 %v1689_v14 }
  0x53   :  { %371 = vmatpush1.bf16.msra.mxu0 %v1672_v8 }
  0x54   :  { %372 = vmatprep.subr.bf16.mxu0 %v1676_v9  ;;  %412 = vmatpush1.bf16.msra.mxu1 %v1693_v15 }
  0x55   :  { %413 = vmatprep.subr.bf16.mxu1 %v1696_v16 }
  0x57   :  { %373 = vmatpush1.bf16.msra.mxu0 %v1685_v12 }
  0x58   :  { %374 = vmatprep.subr.bf16.mxu0 %v1687_v13  ;;  %414 = vmatpush1.bf16.msra.mxu1 %v1705_v19 }
  0x59   :  { %415 = vmatprep.subr.bf16.mxu1 %v1708_v20 }
  0x5b   :  { %375 = vmatpush1.bf16.msra.mxu0 %v1699_v17 }
  0x5c   :  { %376 = vmatprep.subr.bf16.mxu0 %v1702_v18  ;;  %416 = vmatpush1.bf16.msra.mxu1 %v1717_v23 }
  0x5d   :  { %417 = vmatprep.subr.bf16.mxu1 %v1720_v24 }
  0x5f   :  { %377 = vmatpush1.bf16.msra.mxu0 %v1711_v21 }
  0x60   :  { %378 = vmatprep.subr.bf16.mxu0 %v1713_v22  ;;  %418 = vmatpush1.bf16.msra.mxu1 %v1729_v27 }
  0x61   :  { %419 = vmatprep.subr.bf16.mxu1 %v1732_v28 }
  0x63   :  { %379 = vmatpush1.bf16.msra.mxu0 %v1723_v25 }
  0x64   :  { %380 = vmatprep.subr.bf16.mxu0 %v1726_v26  ;;  %420 = vmatpush1.bf16.msra.mxu1 %v1739_v30 }
  0x65   :  { %421 = vmatprep.subr.bf16.mxu1 %v1742_v31 }
  0x67   :  { %381 = vmatpush1.bf16.msra.mxu0 %v1735_v29 }
  0x68   :  { %484 = vmatprep.subr.bf16.mxu0 %v1654_v1  ;;  %422 = vmatpush1.bf16.msra.mxu1 %v1746_v32 }
  0x69   :  { %525 = vmatprep.subr.bf16.mxu1 %v1667_v6 }
 0x11d   :  { %v283_v36 = vpop.f32.mrb[0].mxu0  ;;  %v324_v45 = vpop.f32.mrb[0].mxu1 }
 0x11e   :  { %v331_v37 = vadd.f32 %v283_v36, %v84_v34  ;;  %v285_v38 = vpop.f32.mrb[1].mxu0  ;;  %v326_v46 = vpop.f32.mrb[1].mxu1  ;;  %v333_v47 = vadd.f32 %v324_v45, %v86_v44 }
 0x11f   :  { %v332_v39 = vadd.f32 %v285_v38, %v85_v35  ;;  %v287_v40 = vpop.f32.mrb[2].mxu0  ;;  %v328_v48 = vpop.f32.mrb[2].mxu1  ;;  %v334_v52 = vadd.f32 %v326_v46, %v87_v50  ;;  %v361_v38 = vld [vmem:[#allocation4 + $0x20] sm:$0xff] }
 0x120   :  { %v1256_v41 = vmul.f32 -1.442695, %v331_v37  ;;  %v288_v42 = vpop.f32.mrb[3].mxu0  ;;  %v329_v49 = vpop.f32.mrb[3].mxu1  ;;  %v1258_v51 = vmul.f32 -1.442695, %v333_v47 }
 0x121   :  { %v1257_v43 = vmul.f32 -1.442695, %v332_v39  ;;  %v362_v39 = vld [vmem:[#allocation4 + $0x28] sm:$0xff] }
 0x122   :  { %1340 = vpow2.f32 %v1256_v41 }
 0x123   :  { %1342 = vpow2.f32 %v1257_v43 }
 0x124   :  { %1344 = vpow2.f32 %v1258_v51 }
 0x125   :  { %1346 = vtanh.f32 %v334_v52  ;;  %v363_v52 = vld [vmem:[#allocation4 + $0x30] sm:$0xff] }
 0x12c   :  { %v1341_v53 = vpop.eup %1340 }
 0x12d   :  { %v1343_v54 = vpop.eup %1342  ;;  %v338_v55 = vadd.f32 1.0, %v1341_v53 }
 0x12e   :  { %v344_v56 = vadd.f32 1.0, %v1343_v54  ;;  %v1345_v57 = vpop.eup %1344  ;;  %v364_v54 = vld [vmem:[#allocation4 + $0x38] sm:$0xff] }
 0x12f   :  { %1348 = vrcp.f32 %v338_v55  ;;  %v1347_v58 = vpop.eup %1346  ;;  %v350_v60 = vadd.f32 1.0, %v1345_v57 }
 0x130   :  { %1350 = vrcp.f32 %v344_v56 }
 0x131   :  { %1352 = vrcp.f32 %v350_v60 }
 0x139   :  { %v1349_v59 = vpop.eup %1348 }
 0x13a   :  { %v1351_v61 = vpop.eup %1350  ;;  %v354_v62 = vmul.f32 0.0, %v1349_v59 }
 0x13b   :  { %v355_v63 = vmul.f32 %v1351_v61, %v1347_v58  ;;  %v1353_v34 = vpop.eup %1352 }
 0x13d   :  { %v1786_v33 = vadd.f32 %v355_v63, %v354_v62 }
 0x13f   :  { %1354 = vtanh.f32 %v1786_v33 }
 0x149   :  { %v1355_v35 = vpop.eup %1354 }
 0x14a   :  { %v358_v36 = vmul.f32 %v1355_v35, %v1353_v34 }
 0x14c   :  { %359 = vst [vmem:[#allocation9] sm:$0xff] %v358_v36  ;;  %v365_v37 = vpack.c.bf16 %v358_v36, %v358_v36 }
 0x14e   :  { %399 = vmatmul.mubr.bf16.vlgmr.msra.gmra.mrb[4].mxu0 %v365_v37  ;;  %440 = vmatmul.mubr.bf16.vlgmr.msra.gmra.mrb[4].mxu1 %v365_v37 }
 0x14f   :  { %485 = vmatpush1.bf16.msra.mxu0 %v1656_v2  ;;  %526 = vmatpush1.bf16.msra.mxu1 %v1669_v7 }
 0x150   :  { %486 = vmatprep.subr.bf16.mxu0 %v1659_v3  ;;  %527 = vmatprep.subr.bf16.mxu1 %v1679_v10 }
 0x151   :  { %516 = vmatprep.mubr.bf16.mxu0 %v1602_v0  ;;  %557 = vmatprep.mubr.bf16.mxu1 %v1602_v0 }
 0x153   :  { %487 = vmatpush1.bf16.msra.mxu0 %v1662_v4  ;;  %528 = vmatpush1.bf16.msra.mxu1 %v1681_v11 }
 0x154   :  { %488 = vmatprep.subr.bf16.mxu0 %v1665_v5  ;;  %529 = vmatprep.subr.bf16.mxu1 %v1689_v14 }
 0x157   :  { %489 = vmatpush1.bf16.msra.mxu0 %v1672_v8  ;;  %530 = vmatpush1.bf16.msra.mxu1 %v1693_v15 }
 0x158   :  { %490 = vmatprep.subr.bf16.mxu0 %v1676_v9  ;;  %531 = vmatprep.subr.bf16.mxu1 %v1696_v16 }
 0x15b   :  { %491 = vmatpush1.bf16.msra.mxu0 %v1685_v12  ;;  %532 = vmatpush1.bf16.msra.mxu1 %v1705_v19 }
 0x15c   :  { %492 = vmatprep.subr.bf16.mxu0 %v1687_v13  ;;  %533 = vmatprep.subr.bf16.mxu1 %v1708_v20 }
 0x15f   :  { %493 = vmatpush1.bf16.msra.mxu0 %v1699_v17  ;;  %534 = vmatpush1.bf16.msra.mxu1 %v1717_v23 }
 0x160   :  { %494 = vmatprep.subr.bf16.mxu0 %v1702_v18  ;;  %535 = vmatprep.subr.bf16.mxu1 %v1720_v24 }
 0x163   :  { %495 = vmatpush1.bf16.msra.mxu0 %v1711_v21  ;;  %536 = vmatpush1.bf16.msra.mxu1 %v1729_v27 }
 0x164   :  { %496 = vmatprep.subr.bf16.mxu0 %v1713_v22  ;;  %537 = vmatprep.subr.bf16.mxu1 %v1732_v28 }
 0x167   :  { %497 = vmatpush1.bf16.msra.mxu0 %v1723_v25  ;;  %538 = vmatpush1.bf16.msra.mxu1 %v1739_v30 }
 0x168   :  { %498 = vmatprep.subr.bf16.mxu0 %v1726_v26  ;;  %539 = vmatprep.subr.bf16.mxu1 %v1742_v31 }
 0x16b   :  { %499 = vmatpush1.bf16.msra.mxu0 %v1735_v29  ;;  %540 = vmatpush1.bf16.msra.mxu1 %v1746_v32 }
 0x16c   :  { %602 = vmatprep.subr.bf16.mxu0 %v1654_v1  ;;  %643 = vmatprep.subr.bf16.mxu1 %v1667_v6 }
 0x221   :  { %v400_v40 = vpop.f32.mrb[4].mxu0  ;;  %v441_v41 = vpop.f32.mrb[4].mxu1 }
 0x222   :  { %v448_v42 = vadd.f32 %v400_v40, %v361_v38  ;;  %v402_v43 = vpop.f32.mrb[5].mxu0  ;;  %v443_v44 = vpop.f32.mrb[5].mxu1  ;;  %v450_v53 = vadd.f32 %v441_v41, %v363_v52 }
 0x223   :  { %v449_v45 = vadd.f32 %v402_v43, %v362_v39  ;;  %v404_v46 = vpop.f32.mrb[6].mxu0  ;;  %v445_v47 = vpop.f32.mrb[6].mxu1  ;;  %v451_v57 = vadd.f32 %v443_v44, %v364_v54  ;;  %v480_v43 = vld [vmem:[#allocation4 + $0x48] sm:$0xff] }
 0x224   :  { %v1259_v48 = vmul.f32 -1.442695, %v448_v42  ;;  %v405_v49 = vpop.f32.mrb[7].mxu0  ;;  %v446_v50 = vpop.f32.mrb[7].mxu1  ;;  %v1261_v55 = vmul.f32 -1.442695, %v450_v53 }
 0x225   :  { %v1260_v51 = vmul.f32 -1.442695, %v449_v45 }
 0x226   :  { %1356 = vpow2.f32 %v1259_v48 }
 0x227   :  { %1358 = vpow2.f32 %v1260_v51 }
 0x228   :  { %1360 = vpow2.f32 %v1261_v55 }
 0x230   :  { %v1357_v56 = vpop.eup %1356 }
 0x231   :  { %v455_v58 = vadd.f32 1.0, %v1357_v56  ;;  %v1359_v59 = vpop.eup %1358  ;;  %v481_v56 = vld [vmem:[#allocation4 + $0x50] sm:$0xff] }
 0x232   :  { %v461_v60 = vadd.f32 1.0, %v1359_v59  ;;  %v1361_v61 = vpop.eup %1360 }
 0x233   :  { %1362 = vrcp.f32 %v455_v58  ;;  %v467_v36 = vadd.f32 1.0, %v1361_v61  ;;  %v482_v58 = vld [vmem:[#allocation4 + $0x58] sm:$0xff] }
 0x234   :  { %1364 = vtanh.f32 %v451_v57 }
 0x235   :  { %1366 = vrcp.f32 %v461_v60 }
 0x236   :  { %1368 = vrcp.f32 %v467_v36 }
 0x23d   :  { %v1363_v62 = vpop.eup %1362 }
 0x23e   :  { %v1365_v63 = vpop.eup %1364  ;;  %v471_v34 = vmul.f32 %v1363_v62, %v1786_v33  ;;  %v479_v33 = vld [vmem:[#allocation4 + $0x40] sm:$0xff] }
 0x23f   :  { %v1367_v35 = vpop.eup %1366 }
 0x240   :  { %v472_v37 = vmul.f32 %v1367_v35, %v1365_v63  ;;  %v1369_v39 = vpop.eup %1368 }
 0x242   :  { %v1824_v38 = vadd.f32 %v472_v37, %v471_v34 }
 0x244   :  { %1370 = vtanh.f32 %v1824_v38 }
 0x24e   :  { %v1371_v40 = vpop.eup %1370 }
 0x24f   :  { %v475_v41 = vmul.f32 %v1371_v40, %v1369_v39 }
 0x251   :  { %477 = vst [vmem:[#allocation9 + $0x8] sm:$0xff] %v475_v41  ;;  %v483_v42 = vpack.c.bf16 %v475_v41, %v475_v41 }
 0x253   :  { %517 = vmatmul.mubr.bf16.vlgmr.msra.gmra.mrb[8].mxu0 %v483_v42  ;;  %558 = vmatmul.mubr.bf16.vlgmr.msra.gmra.mrb[8].mxu1 %v483_v42 }
 0x254   :  { %603 = vmatpush1.bf16.msra.mxu0 %v1656_v2  ;;  %644 = vmatpush1.bf16.msra.mxu1 %v1669_v7 }
 0x255   :  { %604 = vmatprep.subr.bf16.mxu0 %v1659_v3  ;;  %645 = vmatprep.subr.bf16.mxu1 %v1679_v10 }
 0x256   :  { %634 = vmatprep.mubr.bf16.mxu0 %v1602_v0  ;;  %675 = vmatprep.mubr.bf16.mxu1 %v1602_v0 }
 0x258   :  { %605 = vmatpush1.bf16.msra.mxu0 %v1662_v4  ;;  %646 = vmatpush1.bf16.msra.mxu1 %v1681_v11 }
 0x259   :  { %606 = vmatprep.subr.bf16.mxu0 %v1665_v5  ;;  %647 = vmatprep.subr.bf16.mxu1 %v1689_v14 }
 0x25c   :  { %607 = vmatpush1.bf16.msra.mxu0 %v1672_v8  ;;  %648 = vmatpush1.bf16.msra.mxu1 %v1693_v15 }
 0x25d   :  { %608 = vmatprep.subr.bf16.mxu0 %v1676_v9  ;;  %649 = vmatprep.subr.bf16.mxu1 %v1696_v16 }
 0x260   :  { %609 = vmatpush1.bf16.msra.mxu0 %v1685_v12  ;;  %650 = vmatpush1.bf16.msra.mxu1 %v1705_v19 }
 0x261   :  { %610 = vmatprep.subr.bf16.mxu0 %v1687_v13  ;;  %651 = vmatprep.subr.bf16.mxu1 %v1708_v20 }
 0x264   :  { %611 = vmatpush1.bf16.msra.mxu0 %v1699_v17  ;;  %652 = vmatpush1.bf16.msra.mxu1 %v1717_v23 }
 0x265   :  { %612 = vmatprep.subr.bf16.mxu0 %v1702_v18  ;;  %653 = vmatprep.subr.bf16.mxu1 %v1720_v24 }
 0x268   :  { %613 = vmatpush1.bf16.msra.mxu0 %v1711_v21  ;;  %654 = vmatpush1.bf16.msra.mxu1 %v1729_v27 }
 0x269   :  { %614 = vmatprep.subr.bf16.mxu0 %v1713_v22  ;;  %655 = vmatprep.subr.bf16.mxu1 %v1732_v28 }
 0x26c   :  { %615 = vmatpush1.bf16.msra.mxu0 %v1723_v25  ;;  %656 = vmatpush1.bf16.msra.mxu1 %v1739_v30 }
 0x26d   :  { %616 = vmatprep.subr.bf16.mxu0 %v1726_v26  ;;  %657 = vmatprep.subr.bf16.mxu1 %v1742_v31 }
 0x270   :  { %617 = vmatpush1.bf16.msra.mxu0 %v1735_v29  ;;  %658 = vmatpush1.bf16.msra.mxu1 %v1746_v32 }
 0x271   :  { %720 = vmatprep.subr.bf16.mxu0 %v1654_v1  ;;  %761 = vmatprep.subr.bf16.mxu1 %v1667_v6 }
 0x326   :  { %v518_v44 = vpop.f32.mrb[8].mxu0  ;;  %v559_v45 = vpop.f32.mrb[8].mxu1 }
 0x327   :  { %v566_v46 = vadd.f32 %v518_v44, %v479_v33  ;;  %v520_v47 = vpop.f32.mrb[9].mxu0  ;;  %v561_v48 = vpop.f32.mrb[9].mxu1  ;;  %v568_v57 = vadd.f32 %v559_v45, %v481_v56 }
 0x328   :  { %v567_v49 = vadd.f32 %v520_v47, %v480_v43  ;;  %v522_v50 = vpop.f32.mrb[10].mxu0  ;;  %v563_v51 = vpop.f32.mrb[10].mxu1  ;;  %v569_v61 = vadd.f32 %v561_v48, %v482_v58  ;;  %v598_v47 = vld [vmem:[#allocation4 + $0x68] sm:$0xff] }
 0x329   :  { %v1262_v52 = vmul.f32 -1.442695, %v566_v46  ;;  %v523_v53 = vpop.f32.mrb[11].mxu0  ;;  %v564_v54 = vpop.f32.mrb[11].mxu1  ;;  %v1264_v59 = vmul.f32 -1.442695, %v568_v57 }
 0x32a   :  { %v1263_v55 = vmul.f32 -1.442695, %v567_v49 }
 0x32b   :  { %1372 = vpow2.f32 %v1262_v52 }
 0x32c   :  { %1374 = vpow2.f32 %v1263_v55 }
 0x32d   :  { %1376 = vpow2.f32 %v1264_v59 }
 0x335   :  { %v1373_v60 = vpop.eup %1372 }
 0x336   :  { %v573_v62 = vadd.f32 1.0, %v1373_v60  ;;  %v1375_v63 = vpop.eup %1374  ;;  %v599_v60 = vld [vmem:[#allocation4 + $0x70] sm:$0xff] }
 0x337   :  { %v579_v34 = vadd.f32 1.0, %v1375_v63  ;;  %v1377_v35 = vpop.eup %1376 }
 0x338   :  { %1378 = vrcp.f32 %v573_v62  ;;  %v585_v41 = vadd.f32 1.0, %v1377_v35  ;;  %v600_v62 = vld [vmem:[#allocation4 + $0x78] sm:$0xff] }
 0x339   :  { %1380 = vtanh.f32 %v569_v61 }
 0x33a   :  { %1382 = vrcp.f32 %v579_v34 }
 0x33b   :  { %1384 = vrcp.f32 %v585_v41 }
 0x342   :  { %v1379_v36 = vpop.eup %1378 }
 0x343   :  { %v1381_v37 = vpop.eup %1380  ;;  %v589_v39 = vmul.f32 %v1379_v36, %v1824_v38  ;;  %v597_v38 = vld [vmem:[#allocation4 + $0x60] sm:$0xff] }
 0x344   :  { %v1383_v40 = vpop.eup %1382 }
 0x345   :  { %v590_v42 = vmul.f32 %v1383_v40, %v1381_v37  ;;  %v1385_v43 = vpop.eup %1384 }
 0x347   :  { %v1862_v33 = vadd.f32 %v590_v42, %v589_v39 }
 0x349   :  { %1386 = vtanh.f32 %v1862_v33 }
 0x353   :  { %v1387_v44 = vpop.eup %1386 }
 0x354   :  { %v593_v45 = vmul.f32 %v1387_v44, %v1385_v43 }
 0x356   :  { %595 = vst [vmem:[#allocation9 + $0x10] sm:$0xff] %v593_v45  ;;  %v601_v46 = vpack.c.bf16 %v593_v45, %v593_v45 }
 0x358   :  { %635 = vmatmul.mubr.bf16.vlgmr.msra.gmra.mrb[12].mxu0 %v601_v46  ;;  %676 = vmatmul.mubr.bf16.vlgmr.msra.gmra.mrb[12].mxu1 %v601_v46 }
 0x359   :  { %721 = vmatpush1.bf16.msra.mxu0 %v1656_v2  ;;  %762 = vmatpush1.bf16.msra.mxu1 %v1669_v7 }
 0x35a   :  { %722 = vmatprep.subr.bf16.mxu0 %v1659_v3  ;;  %763 = vmatprep.subr.bf16.mxu1 %v1679_v10 }
 0x35b   :  { %752 = vmatprep.mubr.bf16.mxu0 %v1602_v0  ;;  %793 = vmatprep.mubr.bf16.mxu1 %v1602_v0 }
 0x35d   :  { %723 = vmatpush1.bf16.msra.mxu0 %v1662_v4  ;;  %764 = vmatpush1.bf16.msra.mxu1 %v1681_v11 }
 0x35e   :  { %724 = vmatprep.subr.bf16.mxu0 %v1665_v5  ;;  %765 = vmatprep.subr.bf16.mxu1 %v1689_v14 }
 0x361   :  { %725 = vmatpush1.bf16.msra.mxu0 %v1672_v8  ;;  %766 = vmatpush1.bf16.msra.mxu1 %v1693_v15 }
 0x362   :  { %726 = vmatprep.subr.bf16.mxu0 %v1676_v9  ;;  %767 = vmatprep.subr.bf16.mxu1 %v1696_v16 }
 0x365   :  { %727 = vmatpush1.bf16.msra.mxu0 %v1685_v12  ;;  %768 = vmatpush1.bf16.msra.mxu1 %v1705_v19 }
 0x366   :  { %728 = vmatprep.subr.bf16.mxu0 %v1687_v13  ;;  %769 = vmatprep.subr.bf16.mxu1 %v1708_v20 }
 0x369   :  { %729 = vmatpush1.bf16.msra.mxu0 %v1699_v17  ;;  %770 = vmatpush1.bf16.msra.mxu1 %v1717_v23 }
 0x36a   :  { %730 = vmatprep.subr.bf16.mxu0 %v1702_v18  ;;  %771 = vmatprep.subr.bf16.mxu1 %v1720_v24 }
 0x36d   :  { %731 = vmatpush1.bf16.msra.mxu0 %v1711_v21  ;;  %772 = vmatpush1.bf16.msra.mxu1 %v1729_v27 }
 0x36e   :  { %732 = vmatprep.subr.bf16.mxu0 %v1713_v22  ;;  %773 = vmatprep.subr.bf16.mxu1 %v1732_v28 }
 0x371   :  { %733 = vmatpush1.bf16.msra.mxu0 %v1723_v25  ;;  %774 = vmatpush1.bf16.msra.mxu1 %v1739_v30 }
 0x372   :  { %734 = vmatprep.subr.bf16.mxu0 %v1726_v26  ;;  %775 = vmatprep.subr.bf16.mxu1 %v1742_v31 }
 0x375   :  { %735 = vmatpush1.bf16.msra.mxu0 %v1735_v29  ;;  %776 = vmatpush1.bf16.msra.mxu1 %v1746_v32 }
 0x376   :  { %838 = vmatprep.subr.bf16.mxu0 %v1654_v1  ;;  %879 = vmatprep.subr.bf16.mxu1 %v1667_v6 }
 0x42b   :  { %v636_v48 = vpop.f32.mrb[12].mxu0  ;;  %v677_v49 = vpop.f32.mrb[12].mxu1 }
 0x42c   :  { %v684_v50 = vadd.f32 %v636_v48, %v597_v38  ;;  %v638_v51 = vpop.f32.mrb[13].mxu0  ;;  %v679_v52 = vpop.f32.mrb[13].mxu1  ;;  %v686_v61 = vadd.f32 %v677_v49, %v599_v60 }
 0x42d   :  { %v685_v53 = vadd.f32 %v638_v51, %v598_v47  ;;  %v640_v54 = vpop.f32.mrb[14].mxu0  ;;  %v681_v55 = vpop.f32.mrb[14].mxu1  ;;  %v687_v35 = vadd.f32 %v679_v52, %v600_v62  ;;  %v716_v51 = vld [vmem:[#allocation4 + $0x88] sm:$0xff] }
 0x42e   :  { %v1265_v56 = vmul.f32 -1.442695, %v684_v50  ;;  %v641_v57 = vpop.f32.mrb[15].mxu0  ;;  %v682_v58 = vpop.f32.mrb[15].mxu1  ;;  %v1267_v63 = vmul.f32 -1.442695, %v686_v61 }
 0x42f   :  { %v1266_v59 = vmul.f32 -1.442695, %v685_v53 }
 0x430   :  { %1388 = vpow2.f32 %v1265_v56 }
 0x431   :  { %1390 = vpow2.f32 %v1266_v59 }
 0x432   :  { %1392 = vpow2.f32 %v1267_v63 }
 0x43a   :  { %v1389_v34 = vpop.eup %1388 }
 0x43b   :  { %v691_v36 = vadd.f32 1.0, %v1389_v34  ;;  %v1391_v37 = vpop.eup %1390  ;;  %v717_v34 = vld [vmem:[#allocation4 + $0x90] sm:$0xff] }
 0x43c   :  { %v697_v39 = vadd.f32 1.0, %v1391_v37  ;;  %v1393_v40 = vpop.eup %1392 }
 0x43d   :  { %1394 = vrcp.f32 %v691_v36  ;;  %v703_v45 = vadd.f32 1.0, %v1393_v40 }
 0x43e   :  { %1396 = vtanh.f32 %v687_v35  ;;  %v718_v35 = vld [vmem:[#allocation4 + $0x98] sm:$0xff] }
 0x43f   :  { %1398 = vrcp.f32 %v697_v39 }
 0x440   :  { %1400 = vrcp.f32 %v703_v45 }
 0x447   :  { %v1395_v41 = vpop.eup %1394 }
 0x448   :  { %v1397_v42 = vpop.eup %1396  ;;  %v707_v43 = vmul.f32 %v1395_v41, %v1862_v33  ;;  %v715_v33 = vld [vmem:[#allocation4 + $0x80] sm:$0xff] }
 0x449   :  { %v1399_v44 = vpop.eup %1398 }
 0x44a   :  { %v708_v46 = vmul.f32 %v1399_v44, %v1397_v42  ;;  %v1401_v47 = vpop.eup %1400 }
 0x44c   :  { %v1900_v38 = vadd.f32 %v708_v46, %v707_v43 }
 0x44e   :  { %1402 = vtanh.f32 %v1900_v38 }
 0x458   :  { %v1403_v48 = vpop.eup %1402 }
 0x459   :  { %v711_v49 = vmul.f32 %v1403_v48, %v1401_v47 }
 0x45b   :  { %713 = vst [vmem:[#allocation9 + $0x18] sm:$0xff] %v711_v49  ;;  %v719_v50 = vpack.c.bf16 %v711_v49, %v711_v49 }
 0x45d   :  { %753 = vmatmul.mubr.bf16.vlgmr.msra.gmra.mrb[16].mxu0 %v719_v50  ;;  %794 = vmatmul.mubr.bf16.vlgmr.msra.gmra.mrb[16].mxu1 %v719_v50 }
 0x45e   :  { %839 = vmatpush1.bf16.msra.mxu0 %v1656_v2  ;;  %880 = vmatpush1.bf16.msra.mxu1 %v1669_v7 }
 0x45f   :  { %840 = vmatprep.subr.bf16.mxu0 %v1659_v3  ;;  %881 = vmatprep.subr.bf16.mxu1 %v1679_v10 }
 0x460   :  { %870 = vmatprep.mubr.bf16.mxu0 %v1602_v0  ;;  %911 = vmatprep.mubr.bf16.mxu1 %v1602_v0 }
 0x462   :  { %841 = vmatpush1.bf16.msra.mxu0 %v1662_v4  ;;  %882 = vmatpush1.bf16.msra.mxu1 %v1681_v11 }
 0x463   :  { %842 = vmatprep.subr.bf16.mxu0 %v1665_v5  ;;  %883 = vmatprep.subr.bf16.mxu1 %v1689_v14 }
 0x466   :  { %843 = vmatpush1.bf16.msra.mxu0 %v1672_v8  ;;  %884 = vmatpush1.bf16.msra.mxu1 %v1693_v15 }
 0x467   :  { %844 = vmatprep.subr.bf16.mxu0 %v1676_v9  ;;  %885 = vmatprep.subr.bf16.mxu1 %v1696_v16 }
 0x46a   :  { %845 = vmatpush1.bf16.msra.mxu0 %v1685_v12  ;;  %886 = vmatpush1.bf16.msra.mxu1 %v1705_v19 }
 0x46b   :  { %846 = vmatprep.subr.bf16.mxu0 %v1687_v13  ;;  %887 = vmatprep.subr.bf16.mxu1 %v1708_v20 }
 0x46e   :  { %847 = vmatpush1.bf16.msra.mxu0 %v1699_v17  ;;  %888 = vmatpush1.bf16.msra.mxu1 %v1717_v23 }
 0x46f   :  { %848 = vmatprep.subr.bf16.mxu0 %v1702_v18  ;;  %889 = vmatprep.subr.bf16.mxu1 %v1720_v24 }
 0x472   :  { %849 = vmatpush1.bf16.msra.mxu0 %v1711_v21  ;;  %890 = vmatpush1.bf16.msra.mxu1 %v1729_v27 }
 0x473   :  { %850 = vmatprep.subr.bf16.mxu0 %v1713_v22  ;;  %891 = vmatprep.subr.bf16.mxu1 %v1732_v28 }
 0x476   :  { %851 = vmatpush1.bf16.msra.mxu0 %v1723_v25  ;;  %892 = vmatpush1.bf16.msra.mxu1 %v1739_v30 }
 0x477   :  { %852 = vmatprep.subr.bf16.mxu0 %v1726_v26  ;;  %893 = vmatprep.subr.bf16.mxu1 %v1742_v31 }
 0x47a   :  { %853 = vmatpush1.bf16.msra.mxu0 %v1735_v29  ;;  %894 = vmatpush1.bf16.msra.mxu1 %v1746_v32 }
 0x47b   :  { %956 = vmatprep.subr.bf16.mxu0 %v1654_v1  ;;  %997 = vmatprep.subr.bf16.mxu1 %v1667_v6 }
 0x530   :  { %v754_v52 = vpop.f32.mrb[16].mxu0  ;;  %v795_v53 = vpop.f32.mrb[16].mxu1 }
 0x531   :  { %v802_v54 = vadd.f32 %v754_v52, %v715_v33  ;;  %v756_v55 = vpop.f32.mrb[17].mxu0  ;;  %v797_v56 = vpop.f32.mrb[17].mxu1  ;;  %v804_v1 = vadd.f32 %v795_v53, %v717_v34  ;;  %v1475_v34 = vld [vmem:[#allocation7 + $0x28] ss:$16 sps:$4 sm:$0xff]  }
 0x532   :  { %v803_v57 = vadd.f32 %v756_v55, %v716_v51  ;;  %v758_v58 = vpop.f32.mrb[18].mxu0  ;;  %v799_v59 = vpop.f32.mrb[18].mxu1  ;;  %v805_v37 = vadd.f32 %v797_v56, %v718_v35  ;;  %v1477_v35 = vld [vmem:[#allocation7 + $0x4c] ss:$16 sps:$4 sm:$0xff]  }
 0x533   :  { %v1268_v60 = vmul.f32 -1.442695, %v802_v54  ;;  %v759_v61 = vpop.f32.mrb[19].mxu0  ;;  %v800_v62 = vpop.f32.mrb[19].mxu1  ;;  %v1270_v6 = vmul.f32 -1.442695, %v804_v1 }
 0x534   :  { %v1269_v63 = vmul.f32 -1.442695, %v803_v57  ;;  %v1470_v59 = vld [vmem:[#allocation7] ss:$16 sps:$4 sm:$0xff]   ;;  %v1472_v61 = vld [vmem:[#allocation7 + $0x24] ss:$16 sps:$4 sm:$0xff]  }
 0x535   :  { %1404 = vpow2.f32 %v1268_v60  ;;  %v1471_v60 = vld [vmem:[#allocation7 + $0x8] ss:$16 sps:$4 sm:$0xff]   ;;  %v1473_v62 = vld [vmem:[#allocation7 + $0x2c] ss:$16 sps:$4 sm:$0xff]   ;;  %v1476_v1 = vld [vmem:[#allocation7 + $0x44] ss:$16 sps:$4 sm:$0xff]  }
 0x536   :  { %1406 = vpow2.f32 %v1269_v63  ;;  %v1474_v63 = vld [vmem:[#allocation7 + $0x20] ss:$16 sps:$4 sm:$0xff]  }
 0x537   :  { %1408 = vpow2.f32 %v1270_v6  ;;  %v1478_v6 = vld [vmem:[#allocation7 + $0x40] ss:$16 sps:$4 sm:$0xff]  }
 0x53f   :  { %v1405_v36 = vpop.eup %1404 }
 0x540   :  { %v809_v39 = vadd.f32 1.0, %v1405_v36  ;;  %v1407_v40 = vpop.eup %1406  ;;  %v1479_v36 = vld [vmem:[#allocation7 + $0x48] ss:$16 sps:$4 sm:$0xff]  }
 0x541   :  { %v815_v41 = vadd.f32 1.0, %v1407_v40  ;;  %v1409_v42 = vpop.eup %1408  ;;  %v1482_v40 = vld [vmem:[#allocation7 + $0x60] ss:$16 sps:$4 sm:$0xff]  }
 0x542   :  { %1410 = vrcp.f32 %v809_v39  ;;  %v821_v47 = vadd.f32 1.0, %v1409_v42  ;;  %v1481_v39 = vld [vmem:[#allocation7 + $0x6c] ss:$16 sps:$4 sm:$0xff]  }
 0x543   :  { %1412 = vtanh.f32 %v805_v37  ;;  %v1480_v37 = vld [vmem:[#allocation7 + $0x64] ss:$16 sps:$4 sm:$0xff]   ;;  %v1485_v42 = vld [vmem:[#allocation7 + $0x8c] ss:$16 sps:$4 sm:$0xff]  }
 0x544   :  { %1414 = vrcp.f32 %v815_v41  ;;  %v1483_v41 = vld [vmem:[#allocation7 + $0x68] ss:$16 sps:$4 sm:$0xff]  }
 0x545   :  { %1416 = vrcp.f32 %v821_v47  ;;  %v1490_v47 = vld [vmem:[#allocation7 + $0xa0] ss:$16 sps:$4 sm:$0xff]  }
 0x54c   :  { %v1411_v43 = vpop.eup %1410 }
 0x54d   :  { %v1413_v44 = vpop.eup %1412  ;;  %v825_v45 = vmul.f32 %v1411_v43, %v1900_v38  ;;  %v1486_v43 = vld [vmem:[#allocation7 + $0x80] ss:$16 sps:$4 sm:$0xff]  }
 0x54e   :  { %v1415_v46 = vpop.eup %1414 }
 0x54f   :  { %v826_v48 = vmul.f32 %v1415_v46, %v1413_v44  ;;  %v1417_v50 = vpop.eup %1416  ;;  %v1487_v44 = vld [vmem:[#allocation7 + $0x88] ss:$16 sps:$4 sm:$0xff]   ;;  %v1489_v46 = vld [vmem:[#allocation7 + $0xac] ss:$16 sps:$4 sm:$0xff]  }
 0x551   :  { %v1938_v49 = vadd.f32 %v826_v48, %v825_v45  ;;  %v1488_v45 = vld [vmem:[#allocation7 + $0xa4] ss:$16 sps:$4 sm:$0xff]   ;;  %v1491_v48 = vld [vmem:[#allocation7 + $0xa8] ss:$16 sps:$4 sm:$0xff]  }
 0x553   :  { %1418 = vtanh.f32 %v1938_v49 }
 0x55d   :  { %v1419_v33 = vpop.eup %1418 }
 0x55e   :  { %v829_v51 = vmul.f32 %v1419_v33, %v1417_v50  ;;  %v1493_v50 = vld [vmem:[#allocation7 + $0xcc] ss:$16 sps:$4 sm:$0xff]   ;;  %v1494_v33 = vld [vmem:[#allocation7 + $0xc0] ss:$16 sps:$4 sm:$0xff]  }
 0x560   :  { %831 = vst [vmem:[#allocation9 + $0x20] sm:$0xff] %v829_v51  ;;  %v837_v52 = vpack.c.bf16 %v829_v51, %v829_v51  ;;  %v1495_v51 = vld [vmem:[#allocation7 + $0xc8] ss:$16 sps:$4 sm:$0xff]  }
 0x562   :  { %871 = vmatmul.mubr.bf16.vlgmr.msra.gmra.mrb[20].mxu0 %v837_v52  ;;  %912 = vmatmul.mubr.bf16.vlgmr.msra.gmra.mrb[20].mxu1 %v837_v52  ;;  %v1496_v52 = vld [vmem:[#allocation7 + $0xe4] ss:$16 sps:$4 sm:$0xff]  }
 0x563   :  { %957 = vmatpush1.bf16.msra.mxu0 %v1656_v2  ;;  %998 = vmatpush1.bf16.msra.mxu1 %v1669_v7  ;;  %v1468_v2 = vld [vmem:[#allocation7 + $0x4] ss:$16 sps:$4 sm:$0xff]  }
 0x564   :  { %958 = vmatprep.subr.bf16.mxu0 %v1659_v3  ;;  %999 = vmatprep.subr.bf16.mxu1 %v1679_v10  ;;  %v1469_v3 = vld [vmem:[#allocation7 + $0xc] ss:$16 sps:$4 sm:$0xff]  }
 0x565   :  { %988 = vmatprep.mubr.bf16.mxu0 %v1602_v0  ;;  %1029 = vmatprep.mubr.bf16.mxu1 %v1602_v0 }
 0x567   :  { %959 = vmatpush1.bf16.msra.mxu0 %v1662_v4  ;;  %1000 = vmatpush1.bf16.msra.mxu1 %v1681_v11  ;;  %v833_v4 = vld [vmem:[#allocation4 + $0xa0] sm:$0xff] }
 0x568   :  { %960 = vmatprep.subr.bf16.mxu0 %v1665_v5  ;;  %1001 = vmatprep.subr.bf16.mxu1 %v1689_v14  ;;  %v834_v5 = vld [vmem:[#allocation4 + $0xa8] sm:$0xff] }
 0x56b   :  { %961 = vmatpush1.bf16.msra.mxu0 %v1672_v8  ;;  %1002 = vmatpush1.bf16.msra.mxu1 %v1693_v15 }
 0x56c   :  { %962 = vmatprep.subr.bf16.mxu0 %v1676_v9  ;;  %1003 = vmatprep.subr.bf16.mxu1 %v1696_v16 }
 0x56f   :  { %963 = vmatpush1.bf16.msra.mxu0 %v1685_v12  ;;  %1004 = vmatpush1.bf16.msra.mxu1 %v1705_v19  ;;  %v835_v19 = vld [vmem:[#allocation4 + $0xb0] sm:$0xff] }
 0x570   :  { %964 = vmatprep.subr.bf16.mxu0 %v1687_v13  ;;  %1005 = vmatprep.subr.bf16.mxu1 %v1708_v20 }
 0x573   :  { %965 = vmatpush1.bf16.msra.mxu0 %v1699_v17  ;;  %1006 = vmatpush1.bf16.msra.mxu1 %v1717_v23 }
 0x574   :  { %966 = vmatprep.subr.bf16.mxu0 %v1702_v18  ;;  %1007 = vmatprep.subr.bf16.mxu1 %v1720_v24 }
 0x577   :  { %967 = vmatpush1.bf16.msra.mxu0 %v1711_v21  ;;  %1008 = vmatpush1.bf16.msra.mxu1 %v1729_v27  ;;  %v836_v21 = vld [vmem:[#allocation4 + $0xb8] sm:$0xff] }
 0x578   :  { %968 = vmatprep.subr.bf16.mxu0 %v1713_v22  ;;  %1009 = vmatprep.subr.bf16.mxu1 %v1732_v28 }
 0x57b   :  { %969 = vmatpush1.bf16.msra.mxu0 %v1723_v25  ;;  %1010 = vmatpush1.bf16.msra.mxu1 %v1739_v30 }
 0x57c   :  { %970 = vmatprep.subr.bf16.mxu0 %v1726_v26  ;;  %1011 = vmatprep.subr.bf16.mxu1 %v1742_v31 }
 0x57f   :  { %971 = vmatpush1.bf16.msra.mxu0 %v1735_v29  ;;  %1012 = vmatpush1.bf16.msra.mxu1 %v1746_v32 }
 0x580   :  { %1074 = vmatprep.subr.bf16.mxu0 %v1468_v2  ;;  %1115 = vmatprep.subr.bf16.mxu1 %v1469_v3  ;;  %v1497_v2 = vld [vmem:[#allocation7 + $0xec] ss:$16 sps:$4 sm:$0xff]   ;;  %v1498_v3 = vld [vmem:[#allocation7 + $0xe0] ss:$16 sps:$4 sm:$0xff]  }
 0x635   :  { %v872_v7 = vpop.f32.mrb[20].mxu0  ;;  %v913_v8 = vpop.f32.mrb[20].mxu1 }
 0x636   :  { %v920_v9 = vadd.f32 %v872_v7, %v833_v4  ;;  %v874_v10 = vpop.f32.mrb[21].mxu0  ;;  %v915_v11 = vpop.f32.mrb[21].mxu1  ;;  %v922_v20 = vadd.f32 %v913_v8, %v835_v19  ;;  %v1499_v4 = vld [vmem:[#allocation7 + $0xe8] ss:$16 sps:$4 sm:$0xff]  }
 0x637   :  { %v921_v12 = vadd.f32 %v874_v10, %v834_v5  ;;  %v876_v13 = vpop.f32.mrb[22].mxu0  ;;  %v917_v14 = vpop.f32.mrb[22].mxu1  ;;  %v923_v24 = vadd.f32 %v915_v11, %v836_v21  ;;  %v951_v5 = vld [vmem:[#allocation4 + $0xc0] sm:$0xff]  ;;  %v952_v7 = vld [vmem:[#allocation4 + $0xc8] sm:$0xff] }
 0x638   :  { %v1271_v15 = vmul.f32 -1.442695, %v920_v9  ;;  %v877_v16 = vpop.f32.mrb[23].mxu0  ;;  %v918_v17 = vpop.f32.mrb[23].mxu1  ;;  %v1273_v22 = vmul.f32 -1.442695, %v922_v20 }
 0x639   :  { %v1272_v18 = vmul.f32 -1.442695, %v921_v12  ;;  %v953_v20 = vld [vmem:[#allocation4 + $0xd0] sm:$0xff] }
 0x63a   :  { %1420 = vpow2.f32 %v1271_v15 }
 0x63b   :  { %1422 = vpow2.f32 %v1272_v18 }
 0x63c   :  { %1424 = vpow2.f32 %v1273_v22  ;;  %v954_v22 = vld [vmem:[#allocation4 + $0xd8] sm:$0xff] }
 0x644   :  { %v1421_v23 = vpop.eup %1420 }
 0x645   :  { %v927_v25 = vadd.f32 1.0, %v1421_v23  ;;  %v1423_v26 = vpop.eup %1422 }
 0x646   :  { %v933_v27 = vadd.f32 1.0, %v1423_v26  ;;  %v1425_v28 = vpop.eup %1424 }
 0x647   :  { %1426 = vrcp.f32 %v927_v25  ;;  %v939_v38 = vadd.f32 1.0, %v1425_v28 }
 0x648   :  { %1428 = vtanh.f32 %v923_v24 }
 0x649   :  { %1430 = vrcp.f32 %v933_v27 }
 0x64a   :  { %1432 = vrcp.f32 %v939_v38 }
 0x651   :  { %v1427_v29 = vpop.eup %1426 }
 0x652   :  { %v1429_v30 = vpop.eup %1428  ;;  %v943_v31 = vmul.f32 %v1427_v29, %v1938_v49  ;;  %v1492_v49 = vld [vmem:[#allocation7 + $0xc4] ss:$16 sps:$4 sm:$0xff]  }
 0x653   :  { %v1431_v32 = vpop.eup %1430 }
 0x654   :  { %v944_v53 = vmul.f32 %v1431_v32, %v1429_v30  ;;  %v1433_v55 = vpop.eup %1432 }
 0x656   :  { %v1974_v54 = vadd.f32 %v944_v53, %v943_v31 }
 0x658   :  { %1434 = vtanh.f32 %v1974_v54 }
 0x662   :  { %v1435_v56 = vpop.eup %1434 }
 0x663   :  { %v947_v57 = vmul.f32 %v1435_v56, %v1433_v55 }
 0x665   :  { %949 = vst [vmem:[#allocation9 + $0x28] sm:$0xff] %v947_v57  ;;  %v955_v58 = vpack.c.bf16 %v947_v57, %v947_v57 }
 0x667   :  { %989 = vmatmul.mubr.bf16.vlgmr.msra.gmra.mrb[24].mxu0 %v955_v58  ;;  %1030 = vmatmul.mubr.bf16.vlgmr.msra.gmra.mrb[24].mxu1 %v955_v58 }
 0x668   :  { %1075 = vmatpush1.bf16.msra.mxu0 %v1470_v59  ;;  %1116 = vmatpush1.bf16.msra.mxu1 %v1471_v60 }
 0x669   :  { %1076 = vmatprep.subr.bf16.mxu0 %v1472_v61  ;;  %1117 = vmatprep.subr.bf16.mxu1 %v1473_v62  ;;  %v1069_v61 = vld [vmem:[#allocation4 + $0xe0] sm:$0xff]  ;;  %v1070_v62 = vld [vmem:[#allocation4 + $0xe8] sm:$0xff] }
 0x66a   :  { %1106 = vmatprep.mubr.bf16.mxu0 %v1602_v0  ;;  %1147 = vmatprep.mubr.bf16.mxu1 %v1602_v0  ;;  %v1484_v0 = vld [vmem:[#allocation7 + $0x84] ss:$16 sps:$4 sm:$0xff]  }
 0x66c   :  { %1077 = vmatpush1.bf16.msra.mxu0 %v1474_v63  ;;  %1118 = vmatpush1.bf16.msra.mxu1 %v1475_v34 }
 0x66d   :  { %1078 = vmatprep.subr.bf16.mxu0 %v1476_v1  ;;  %1119 = vmatprep.subr.bf16.mxu1 %v1477_v35 }
 0x670   :  { %1079 = vmatpush1.bf16.msra.mxu0 %v1478_v6  ;;  %1120 = vmatpush1.bf16.msra.mxu1 %v1479_v36 }
 0x671   :  { %1080 = vmatprep.subr.bf16.mxu0 %v1480_v37  ;;  %1121 = vmatprep.subr.bf16.mxu1 %v1481_v39 }
 0x674   :  { %1081 = vmatpush1.bf16.msra.mxu0 %v1482_v40  ;;  %1122 = vmatpush1.bf16.msra.mxu1 %v1483_v41 }
 0x675   :  { %1082 = vmatprep.subr.bf16.mxu0 %v1484_v0  ;;  %1123 = vmatprep.subr.bf16.mxu1 %v1485_v42  ;;  %v1071_v42 = vld [vmem:[#allocation4 + $0xf0] sm:$0xff] }
 0x678   :  { %1083 = vmatpush1.bf16.msra.mxu0 %v1486_v43  ;;  %1124 = vmatpush1.bf16.msra.mxu1 %v1487_v44  ;;  %v1072_v44 = vld [vmem:[#allocation4 + $0xf8] sm:$0xff] }
 0x679   :  { %1084 = vmatprep.subr.bf16.mxu0 %v1488_v45  ;;  %1125 = vmatprep.subr.bf16.mxu1 %v1489_v46 }
 0x67c   :  { %1085 = vmatpush1.bf16.msra.mxu0 %v1490_v47  ;;  %1126 = vmatpush1.bf16.msra.mxu1 %v1491_v48 }
 0x67d   :  { %1086 = vmatprep.subr.bf16.mxu0 %v1492_v49  ;;  %1127 = vmatprep.subr.bf16.mxu1 %v1493_v50 }
 0x680   :  { %1087 = vmatpush1.bf16.msra.mxu0 %v1494_v33  ;;  %1128 = vmatpush1.bf16.msra.mxu1 %v1495_v51 }
 0x681   :  { %1088 = vmatprep.subr.bf16.mxu0 %v1496_v52  ;;  %1129 = vmatprep.subr.bf16.mxu1 %v1497_v2 }
 0x684   :  { %1089 = vmatpush1.bf16.msra.mxu0 %v1498_v3  ;;  %1130 = vmatpush1.bf16.msra.mxu1 %v1499_v4 }
 0x73a   :  { %v990_v8 = vpop.f32.mrb[24].mxu0  ;;  %v1031_v9 = vpop.f32.mrb[24].mxu1 }
 0x73b   :  { %v1038_v10 = vadd.f32 %v990_v8, %v951_v5  ;;  %v992_v11 = vpop.f32.mrb[25].mxu0  ;;  %v1033_v12 = vpop.f32.mrb[25].mxu1  ;;  %v1040_v21 = vadd.f32 %v1031_v9, %v953_v20 }
 0x73c   :  { %v1039_v13 = vadd.f32 %v992_v11, %v952_v7  ;;  %v994_v14 = vpop.f32.mrb[26].mxu0  ;;  %v1035_v15 = vpop.f32.mrb[26].mxu1  ;;  %v1041_v25 = vadd.f32 %v1033_v12, %v954_v22 }
 0x73d   :  { %v1274_v16 = vmul.f32 -1.442695, %v1038_v10  ;;  %v995_v17 = vpop.f32.mrb[27].mxu0  ;;  %v1036_v18 = vpop.f32.mrb[27].mxu1  ;;  %v1276_v23 = vmul.f32 -1.442695, %v1040_v21 }
 0x73e   :  { %v1275_v19 = vmul.f32 -1.442695, %v1039_v13 }
 0x73f   :  { %1436 = vpow2.f32 %v1274_v16 }
 0x740   :  { %1438 = vpow2.f32 %v1275_v19 }
 0x741   :  { %1440 = vpow2.f32 %v1276_v23 }
 0x749   :  { %v1437_v24 = vpop.eup %1436 }
 0x74a   :  { %v1045_v26 = vadd.f32 1.0, %v1437_v24  ;;  %v1439_v27 = vpop.eup %1438 }
 0x74b   :  { %v1051_v28 = vadd.f32 1.0, %v1439_v27  ;;  %v1441_v29 = vpop.eup %1440 }
 0x74c   :  { %1442 = vrcp.f32 %v1045_v26  ;;  %v1057_v53 = vadd.f32 1.0, %v1441_v29 }
 0x74d   :  { %1444 = vtanh.f32 %v1041_v25 }
 0x74e   :  { %1446 = vrcp.f32 %v1051_v28 }
 0x74f   :  { %1448 = vrcp.f32 %v1057_v53 }
 0x756   :  { %v1443_v30 = vpop.eup %1442 }
 0x757   :  { %v1445_v31 = vpop.eup %1444  ;;  %v1061_v32 = vmul.f32 %v1443_v30, %v1974_v54 }
 0x758   :  { %v1447_v38 = vpop.eup %1446 }
 0x759   :  { %v1062_v55 = vmul.f32 %v1447_v38, %v1445_v31  ;;  %v1449_v57 = vpop.eup %1448 }
 0x75b   :  { %v1063_v56 = vadd.f32 %v1062_v55, %v1061_v32 }
 0x75d   :  { %1450 = vtanh.f32 %v1063_v56 }
 0x767   :  { %v1451_v58 = vpop.eup %1450 }
 0x768   :  { %v1065_v59 = vmul.f32 %v1451_v58, %v1449_v57 }
 0x76a   :  { %1067 = vst [vmem:[#allocation9 + $0x30] sm:$0xff] %v1065_v59  ;;  %v1073_v60 = vpack.c.bf16 %v1065_v59, %v1065_v59 }
 0x76c   :  { %1107 = vmatmul.mubr.bf16.vlgmr.msra.gmra.mrb[28].mxu0 %v1073_v60  ;;  %1148 = vmatmul.mubr.bf16.vlgmr.msra.gmra.mrb[28].mxu1 %v1073_v60 }
 0x83f   :  { %v1108_v63 = vpop.f32.mrb[28].mxu0  ;;  %v1149_v34 = vpop.f32.mrb[28].mxu1 }
 0x840   :  { %v1156_v1 = vadd.f32 %v1108_v63, %v1069_v61  ;;  %v1110_v35 = vpop.f32.mrb[29].mxu0  ;;  %v1151_v54 = vpop.f32.mrb[29].mxu1  ;;  %v1158_v43 = vadd.f32 %v1149_v34, %v1071_v42 }
 0x841   :  { %v1157_v6 = vadd.f32 %v1110_v35, %v1070_v62  ;;  %v1112_v36 = vpop.f32.mrb[30].mxu0  ;;  %v1153_v37 = vpop.f32.mrb[30].mxu1  ;;  %v1159_v47 = vadd.f32 %v1151_v54, %v1072_v44 }
 0x842   :  { %v1277_v39 = vmul.f32 -1.442695, %v1156_v1  ;;  %v1113_v40 = vpop.f32.mrb[31].mxu0  ;;  %v1154_v41 = vpop.f32.mrb[31].mxu1  ;;  %v1279_v45 = vmul.f32 -1.442695, %v1158_v43 }
 0x843   :  { %v1278_v0 = vmul.f32 -1.442695, %v1157_v6 }
 0x844   :  { %1452 = vpow2.f32 %v1277_v39 }
 0x845   :  { %1454 = vpow2.f32 %v1278_v0 }
 0x846   :  { %1456 = vpow2.f32 %v1279_v45 }
 0x84e   :  { %v1453_v46 = vpop.eup %1452 }
 0x84f   :  { %v1163_v48 = vadd.f32 1.0, %v1453_v46  ;;  %v1455_v49 = vpop.eup %1454 }
 0x850   :  { %v1169_v50 = vadd.f32 1.0, %v1455_v49  ;;  %v1457_v33 = vpop.eup %1456 }
 0x851   :  { %1458 = vrcp.f32 %v1163_v48  ;;  %v1175_v4 = vadd.f32 1.0, %v1457_v33 }
 0x852   :  { %1460 = vtanh.f32 %v1159_v47 }
 0x853   :  { %1462 = vrcp.f32 %v1169_v50 }
 0x854   :  { %1464 = vrcp.f32 %v1175_v4 }
 0x85b   :  { %v1459_v51 = vpop.eup %1458 }
 0x85c   :  { %v1461_v52 = vpop.eup %1460  ;;  %v1179_v2 = vmul.f32 %v1459_v51, %v1063_v56 }
 0x85d   :  { %v1463_v3 = vpop.eup %1462 }
 0x85e   :  { %v1180_v5 = vmul.f32 %v1463_v3, %v1461_v52 }
 0x860   :  { %v1181_v7 = vadd.f32 %v1180_v5, %v1179_v2 }
 0x862   :  { %1466 = vtanh.f32 %v1181_v7  ;;  %1191 = vst [vmem:[#allocation10] sm:$0xff] %v1181_v7 }
 0x863   :  { %1555 = shalt.err (!%p1552_p6)
}
 0x864   :  { %s1556_s16 = scalar_lea.hbm %s2007_s3, 128 }
 0x865   :  { %p1557_p7 = scmp.ne.s32.totalorder %s2007_s3, %s1556_s16  ;;  %p1560_p8 = scmp.lt.u32.totalorder %s1556_s16, %s2007_s3 }
 0x867   :  { %p1562_p9 = pnand %p1560_p8, %p1557_p7 }
 0x869   :  { %1565 = shalt.err (!%p1562_p9)
}
 0x86a   :  { %1213 = dma.vmem_to_hbm [thread:$0]  %s1211_s12, 128, %s2007_s3, [#allocation11]   ;;  %v1465_v8 = vpop.eup %1464 }
 0x86b   :  { %s1605_s23 = smov [#allocation9]  }
 0x86c   :  { %s1197_s24 = sshll.u32 %s1605_s23, 4  ;;  %v1467_v9 = vpop.eup %1466  ;;  %s1198_s24 = int_to_ptr.vmem [resolvable:$true] %s1197_s24 }
 0x86d   :  { %v1183_v10 = vmul.f32 %v1467_v9, %v1465_v8  ;;  %s1566_s25 = scalar_lea.vmem %s1198_s24, 1024  ;;  %p1571_p11 = scmp.lt.s32.totalorder %s1198_s24, %s1198_s24 }
 0x86e   :  { %p1567_p10 = scmp.ne.s32.totalorder %s1198_s24, %s1566_s25  ;;  %p1572_p12 = scmp.lt.s32.totalorder %s1566_s25, %s1566_s25 }
 0x86f   :  { %1185 = vst [vmem:[#allocation9 + $0x38] sm:$0xff] %v1183_v10 }
 0x870   :  { %p1573_p13 = por %p1572_p12, %p1571_p11 }
 0x872   :  { %p1574_p0 = pnand %p1573_p13, %p1567_p10 }
 0x874   :  { %1577 = shalt.err (!%p1574_p0)
}
 0x875   :  { %s1578_s28 = scalar_lea.hbm %s2006_s2, 1024 }
 0x876   :  { %p1579_p1 = scmp.ne.s32.totalorder %s2006_s2, %s1578_s28  ;;  %p1582_p2 = scmp.lt.u32.totalorder %s1578_s28, %s2006_s2 }
 0x878   :  { %p1584_p3 = pnand %p1582_p2, %p1579_p1 }
 0x87a   :  { %1587 = shalt.err (!%p1584_p3)
}
 0x87b   :  { %s1606_s5 = smov 128   ;;  %s1607_s6 = smov 8  }
 0x87c   :  { %1203 = dma.vmem_to_hbm [thread:$0]  %s1198_s24, 1024, %s2006_s2, [#allocation6], %s1606_s5, %s1606_s5, %s1607_s6  }
 0x87d   :  { %1592 = dma.done.wait [#allocation6], 1024  }
 0x87e   :  { %1593 = vsyncadd [#allocation6], 4294966272 }
 0x87f   :  { %1594 = dma.done.wait [#allocation11], 128  }
 0x880   :  { %1595 = vsyncadd [#allocation11], 4294967168 }
 0x881   :  { %1220 = vsyncpa [#allocation5], 1 }
 0x882   :  { %1221 = vsyncpa [#allocation8], 1 }
 0x883   :  { %1222 = vsyncpa [#allocation6], 1 }
 0x884   :  { %1223 = vsyncpa [#allocation11], 1 }

// kernel: tpu_custom_call.1
= control target key start
LH: loop header
LB: loop body
LE: loop exit
PB: predicated region body
PF: predicated region fallthrough
CT: control target
= control target key end

     0   :  { %9 = vsyncpa [#allocation5], 0  ;;  %s2004_s0 = inlined_call_operand.hbm [shape: f32[8,8,512], index: 0, kind: input, shape index: {}]   ;;  %s2005_s1 = inlined_call_operand.hbm [shape: bf16[128,512], index: 1, kind: input, shape index: {}]   ;;  %s2006_s2 = inlined_call_operand.hbm [shape: f32[8,8,128], index: 2, kind: output, shape index: {0}]   ;;  %s2007_s3 = inlined_call_operand.hbm [shape: f32[1,8,128], index: 3, kind: output, shape index: {1}]  }
   0x1   :  { %10 = vsyncpa [#allocation8], 0 }
   0x2   :  { %11 = vsyncpa [#allocation6], 0 }
   0x3   :  { %12 = vsyncpa [#allocation11], 0  ;;  %s1596_s12 = smov [#allocation4]   ;;  %s1500_s16 = scalar_lea.hbm %s2004_s0, 4096 }
   0x4   :  { %s18_s13 = sshll.u32 %s1596_s12, 4  ;;  %p1501_p0 = scmp.ne.s32.totalorder %s2004_s0, %s1500_s16  ;;  %s19_s13 = int_to_ptr.vmem [resolvable:$true] %s18_s13 }
   0x5   :  { %p1504_p1 = scmp.lt.u32.totalorder %s1500_s16, %s2004_s0 }
   0x7   :  { %p1506_p2 = pnand %p1504_p1, %p1501_p0 }
   0x9   :  { %1509 = shalt.err (!%p1506_p2)
}
   0xa   :  { %s1510_s21 = scalar_lea.vmem %s19_s13, 4096  ;;  %p1515_p4 = scmp.lt.s32.totalorder %s19_s13, %s19_s13 }
   0xb   :  { %p1511_p3 = scmp.ne.s32.totalorder %s19_s13, %s1510_s21  ;;  %p1516_p5 = scmp.lt.s32.totalorder %s1510_s21, %s1510_s21 }
   0xd   :  { %p1517_p6 = por %p1516_p5, %p1515_p4 }
   0xf   :  { %p1518_p7 = pnand %p1517_p6, %p1511_p3 }
  0x11   :  { %1521 = shalt.err (!%p1518_p7)
}
  0x12   :  { %s1597_s22 = smov 512   ;;  %s1598_s23 = smov 32  }
  0x13   :  { %24 = dma.hbm_to_vmem [thread:$0]  %s2004_s0, 4096, %s19_s13, [#allocation5], %s1597_s22, %s1597_s22, %s1598_s23  }
  0x14   :  { %s1599_s26 = smov [#allocation7]   ;;  %s1522_s30 = scalar_lea.hbm %s2005_s1, 4096 }
  0x15   :  { %s30_s27 = sshll.u32 %s1599_s26, 4  ;;  %p1523_p8 = scmp.ne.s32.totalorder %s2005_s1, %s1522_s30  ;;  %s31_s27 = int_to_ptr.vmem [resolvable:$true] %s30_s27 }
  0x16   :  { %p1526_p9 = scmp.lt.u32.totalorder %s1522_s30, %s2005_s1 }
  0x18   :  { %p1528_p10 = pnand %p1526_p9, %p1523_p8 }
  0x1a   :  { %1531 = shalt.err (!%p1528_p10)
}
  0x1b   :  { %s1532_s8 = scalar_lea.vmem %s31_s27, 4096  ;;  %p1537_p12 = scmp.lt.s32.totalorder %s31_s27, %s31_s27 }
  0x1c   :  { %p1533_p11 = scmp.ne.s32.totalorder %s31_s27, %s1532_s8  ;;  %p1538_p13 = scmp.lt.s32.totalorder %s1532_s8, %s1532_s8 }
  0x1e   :  { %p1539_p0 = por %p1538_p13, %p1537_p12 }
  0x20   :  { %p1540_p1 = pnand %p1539_p0, %p1533_p11 }
  0x22   :  { %1543 = shalt.err (!%p1540_p1)
}
  0x23   :  { %s1600_s0 = smov 256   ;;  %s1601_s9 = smov 16  }
  0x24   :  { %36 = dma.hbm_to_vmem [thread:$0]  %s2005_s1, 4096, %s31_s27, [#allocation8], %s1600_s0, %s1600_s0, %s1601_s9  }
  0x25   :  { %1588 = dma.done.wait [#allocation5], 4096  }
  0x26   :  { %1589 = vsyncadd [#allocation5], 4294963200 }
  0x27   :  { %1590 = dma.done.wait [#allocation8], 4096  }
  0x28   :  { %1591 = vsyncadd [#allocation8], 4294963200  ;;  %v1602_v0 = vmov 0   ;;  %v1654_v1 = vld [vmem:[#allocation7 + $0x4] ss:$16 sps:$4 sm:$0xff]   ;;  %v1603_v33 = vmov 0.0|0.0  }
  0x29   :  { %281 = vmatprep.mubr.bf16.mxu0 %v1602_v0  ;;  %322 = vmatprep.mubr.bf16.mxu1 %v1602_v0  ;;  %v1656_v2 = vld [vmem:[#allocation7] ss:$16 sps:$4 sm:$0xff]   ;;  %v1659_v3 = vld [vmem:[#allocation7 + $0x24] ss:$16 sps:$4 sm:$0xff]   ;;  %v1667_v6 = vld [vmem:[#allocation7 + $0xc] ss:$16 sps:$4 sm:$0xff]  }
  0x2a   :  { %249 = vmatprep.subr.bf16.mxu0 %v1654_v1  ;;  %v1662_v4 = vld [vmem:[#allocation7 + $0x20] ss:$16 sps:$4 sm:$0xff]   ;;  %v1665_v5 = vld [vmem:[#allocation7 + $0x44] ss:$16 sps:$4 sm:$0xff]   ;;  %v1669_v7 = vld [vmem:[#allocation7 + $0x8] ss:$16 sps:$4 sm:$0xff]   ;;  %290 = vmatprep.subr.bf16.mxu1 %v1667_v6 }
  0x2b   :  { %250 = vmatpush1.bf16.msra.mxu0 %v1656_v2  ;;  %v1672_v8 = vld [vmem:[#allocation7 + $0x40] ss:$16 sps:$4 sm:$0xff]   ;;  %v1676_v9 = vld [vmem:[#allocation7 + $0x64] ss:$16 sps:$4 sm:$0xff]   ;;  %291 = vmatpush1.bf16.msra.mxu1 %v1669_v7  ;;  %v1679_v10 = vld [vmem:[#allocation7 + $0x2c] ss:$16 sps:$4 sm:$0xff]  }
  0x2c   :  { %251 = vmatprep.subr.bf16.mxu0 %v1659_v3  ;;  %v1681_v11 = vld [vmem:[#allocation7 + $0x28] ss:$16 sps:$4 sm:$0xff]   ;;  %292 = vmatprep.subr.bf16.mxu1 %v1679_v10  ;;  %v1685_v12 = vld [vmem:[#allocation7 + $0x60] ss:$16 sps:$4 sm:$0xff]   ;;  %v1687_v13 = vld [vmem:[#allocation7 + $0x84] ss:$16 sps:$4 sm:$0xff]  }
  0x2d   :  { %v1689_v14 = vld [vmem:[#allocation7 + $0x4c] ss:$16 sps:$4 sm:$0xff]   ;;  %v1693_v15 = vld [vmem:[#allocation7 + $0x48] ss:$16 sps:$4 sm:$0xff]   ;;  %v1699_v17 = vld [vmem:[#allocation7 + $0x80] ss:$16 sps:$4 sm:$0xff]  }
  0x2e   :  { %v1696_v16 = vld [vmem:[#allocation7 + $0x6c] ss:$16 sps:$4 sm:$0xff]   ;;  %v1702_v18 = vld [vmem:[#allocation7 + $0xa4] ss:$16 sps:$4 sm:$0xff]   ;;  %v1705_v19 = vld [vmem:[#allocation7 + $0x68] ss:$16 sps:$4 sm:$0xff]  }
  0x2f   :  { %252 = vmatpush1.bf16.msra.mxu0 %v1662_v4  ;;  %293 = vmatpush1.bf16.msra.mxu1 %v1681_v11  ;;  %v1708_v20 = vld [vmem:[#allocation7 + $0x8c] ss:$16 sps:$4 sm:$0xff]   ;;  %v1711_v21 = vld [vmem:[#allocation7 + $0xa0] ss:$16 sps:$4 sm:$0xff]   ;;  %v1713_v22 = vld [vmem:[#allocation7 + $0xc4] ss:$16 sps:$4 sm:$0xff]  }
  0x30   :  { %253 = vmatprep.subr.bf16.mxu0 %v1665_v5  ;;  %294 = vmatprep.subr.bf16.mxu1 %v1689_v14  ;;  %v1717_v23 = vld [vmem:[#allocation7 + $0x88] ss:$16 sps:$4 sm:$0xff]   ;;  %v1720_v24 = vld [vmem:[#allocation7 + $0xac] ss:$16 sps:$4 sm:$0xff]   ;;  %v1723_v25 = vld [vmem:[#allocation7 + $0xc0] ss:$16 sps:$4 sm:$0xff]  }
  0x31   :  { %v1726_v26 = vld [vmem:[#allocation7 + $0xe4] ss:$16 sps:$4 sm:$0xff]   ;;  %v1729_v27 = vld [vmem:[#allocation7 + $0xa8] ss:$16 sps:$4 sm:$0xff]   ;;  %v1732_v28 = vld [vmem:[#allocation7 + $0xcc] ss:$16 sps:$4 sm:$0xff]  }
  0x32   :  { %v1735_v29 = vld [vmem:[#allocation7 + $0xe0] ss:$16 sps:$4 sm:$0xff]   ;;  %v1739_v30 = vld [vmem:[#allocation7 + $0xc8] ss:$16 sps:$4 sm:$0xff]   ;;  %v1742_v31 = vld [vmem:[#allocation7 + $0xec] ss:$16 sps:$4 sm:$0xff]  }
  0x33   :  { %254 = vmatpush1.bf16.msra.mxu0 %v1672_v8  ;;  %295 = vmatpush1.bf16.msra.mxu1 %v1693_v15  ;;  %v1746_v32 = vld [vmem:[#allocation7 + $0xe8] ss:$16 sps:$4 sm:$0xff]   ;;  %v84_v34 = vld [vmem:[#allocation4] sm:$0xff]  ;;  %v86_v44 = vld [vmem:[#allocation4 + $0x10] sm:$0xff]  ;;  %s1604_s1 = smov [#allocation10]  }
  0x34   :  { %255 = vmatprep.subr.bf16.mxu0 %v1676_v9  ;;  %296 = vmatprep.subr.bf16.mxu1 %v1696_v16  ;;  %v85_v35 = vld [vmem:[#allocation4 + $0x8] sm:$0xff]  ;;  %v87_v50 = vld [vmem:[#allocation4 + $0x18] sm:$0xff]  ;;  %s1210_s12 = sshll.u32 %s1604_s1, 4  ;;  %s1211_s12 = int_to_ptr.vmem [resolvable:$true] %s1210_s12 }
  0x35   :  { %s1544_s13 = scalar_lea.vmem %s1211_s12, 128  ;;  %p1549_p3 = scmp.lt.s32.totalorder %s1211_s12, %s1211_s12 }
  0x36   :  { %p1545_p2 = scmp.ne.s32.totalorder %s1211_s12, %s1544_s13  ;;  %p1550_p4 = scmp.lt.s32.totalorder %s1544_s13, %s1544_s13 }
  0x37   :  { %256 = vmatpush1.bf16.msra.mxu0 %v1685_v12  ;;  %297 = vmatpush1.bf16.msra.mxu1 %v1705_v19 }
  0x38   :  { %257 = vmatprep.subr.bf16.mxu0 %v1687_v13  ;;  %298 = vmatprep.subr.bf16.mxu1 %v1708_v20  ;;  %p1551_p5 = por %p1550_p4, %p1549_p3 }
  0x3a   :  { %p1552_p6 = pnand %p1551_p5, %p1545_p2 }
  0x3b   :  { %258 = vmatpush1.bf16.msra.mxu0 %v1699_v17  ;;  %299 = vmatpush1.bf16.msra.mxu1 %v1717_v23 }
  0x3c   :  { %259 = vmatprep.subr.bf16.mxu0 %v1702_v18  ;;  %300 = vmatprep.subr.bf16.mxu1 %v1720_v24 }
  0x3f   :  { %260 = vmatpush1.bf16.msra.mxu0 %v1711_v21  ;;  %301 = vmatpush1.bf16.msra.mxu1 %v1729_v27 }
  0x40   :  { %261 = vmatprep.subr.bf16.mxu0 %v1713_v22  ;;  %302 = vmatprep.subr.bf16.mxu1 %v1732_v28 }
  0x43   :  { %262 = vmatpush1.bf16.msra.mxu0 %v1723_v25  ;;  %303 = vmatpush1.bf16.msra.mxu1 %v1739_v30 }
  0x44   :  { %263 = vmatprep.subr.bf16.mxu0 %v1726_v26  ;;  %304 = vmatprep.subr.bf16.mxu1 %v1742_v31 }
  0x47   :  { %264 = vmatpush1.bf16.msra.mxu0 %v1735_v29  ;;  %305 = vmatpush1.bf16.msra.mxu1 %v1746_v32 }
  0x48   :  { %366 = vmatprep.subr.bf16.mxu0 %v1654_v1  ;;  %407 = vmatprep.subr.bf16.mxu1 %v1667_v6 }
  0x4a   :  { %282 = vmatmul.mubr.bf16.vlgmr.msra.gmra.mrb[0].mxu0 %v1603_v33  ;;  %323 = vmatmul.mubr.bf16.vlgmr.msra.gmra.mrb[0].mxu1 %v1603_v33 }
  0x4b   :  { %367 = vmatpush1.bf16.msra.mxu0 %v1656_v2  ;;  %398 = vmatprep.mubr.bf16.mxu0 %v1602_v0 }
  0x4c   :  { %368 = vmatprep.subr.bf16.mxu0 %v1659_v3  ;;  %408 = vmatpush1.bf16.msra.mxu1 %v1669_v7 }
  0x4d   :  { %409 = vmatprep.subr.bf16.mxu1 %v1679_v10  ;;  %439 = vmatprep.mubr.bf16.mxu1 %v1602_v0 }
  0x4f   :  { %369 = vmatpush1.bf16.msra.mxu0 %v1662_v4 }
  0x50   :  { %370 = vmatprep.subr.bf16.mxu0 %v1665_v5  ;;  %410 = vmatpush1.bf16.msra.mxu1 %v1681_v11 }
  0x51   :  { %411 = vmatprep.subr.bf16.mxu1 %v1689_v14 }
  0x53   :  { %371 = vmatpush1.bf16.msra.mxu0 %v1672_v8 }
  0x54   :  { %372 = vmatprep.subr.bf16.mxu0 %v1676_v9  ;;  %412 = vmatpush1.bf16.msra.mxu1 %v1693_v15 }
  0x55   :  { %413 = vmatprep.subr.bf16.mxu1 %v1696_v16 }
  0x57   :  { %373 = vmatpush1.bf16.msra.mxu0 %v1685_v12 }
  0x58   :  { %374 = vmatprep.subr.bf16.mxu0 %v1687_v13  ;;  %414 = vmatpush1.bf16.msra.mxu1 %v1705_v19 }
  0x59   :  { %415 = vmatprep.subr.bf16.mxu1 %v1708_v20 }
  0x5b   :  { %375 = vmatpush1.bf16.msra.mxu0 %v1699_v17 }
  0x5c   :  { %376 = vmatprep.subr.bf16.mxu0 %v1702_v18  ;;  %416 = vmatpush1.bf16.msra.mxu1 %v1717_v23 }
  0x5d   :  { %417 = vmatprep.subr.bf16.mxu1 %v1720_v24 }
  0x5f   :  { %377 = vmatpush1.bf16.msra.mxu0 %v1711_v21 }
  0x60   :  { %378 = vmatprep.subr.bf16.mxu0 %v1713_v22  ;;  %418 = vmatpush1.bf16.msra.mxu1 %v1729_v27 }
  0x61   :  { %419 = vmatprep.subr.bf16.mxu1 %v1732_v28 }
  0x63   :  { %379 = vmatpush1.bf16.msra.mxu0 %v1723_v25 }
  0x64   :  { %380 = vmatprep.subr.bf16.mxu0 %v1726_v26  ;;  %420 = vmatpush1.bf16.msra.mxu1 %v1739_v30 }
  0x65   :  { %421 = vmatprep.subr.bf16.mxu1 %v1742_v31 }
  0x67   :  { %381 = vmatpush1.bf16.msra.mxu0 %v1735_v29 }
  0x68   :  { %484 = vmatprep.subr.bf16.mxu0 %v1654_v1  ;;  %422 = vmatpush1.bf16.msra.mxu1 %v1746_v32 }
  0x69   :  { %525 = vmatprep.subr.bf16.mxu1 %v1667_v6 }
 0x11d   :  { %v283_v36 = vpop.f32.mrb[0].mxu0  ;;  %v324_v45 = vpop.f32.mrb[0].mxu1 }
 0x11e   :  { %v331_v37 = vadd.f32 %v283_v36, %v84_v34  ;;  %v285_v38 = vpop.f32.mrb[1].mxu0  ;;  %v326_v46 = vpop.f32.mrb[1].mxu1  ;;  %v333_v47 = vadd.f32 %v324_v45, %v86_v44 }
 0x11f   :  { %v332_v39 = vadd.f32 %v285_v38, %v85_v35  ;;  %v287_v40 = vpop.f32.mrb[2].mxu0  ;;  %v328_v48 = vpop.f32.mrb[2].mxu1  ;;  %v334_v52 = vadd.f32 %v326_v46, %v87_v50  ;;  %v361_v38 = vld [vmem:[#allocation4 + $0x20] sm:$0xff] }
 0x120   :  { %v1256_v41 = vmul.f32 -1.442695, %v331_v37  ;;  %v288_v42 = vpop.f32.mrb[3].mxu0  ;;  %v329_v49 = vpop.f32.mrb[3].mxu1  ;;  %v1258_v51 = vmul.f32 -1.442695, %v333_v47 }
 0x121   :  { %v1257_v43 = vmul.f32 -1.442695, %v332_v39  ;;  %v362_v39 = vld [vmem:[#allocation4 + $0x28] sm:$0xff] }
 0x122   :  { %1340 = vpow2.f32 %v1256_v41 }
 0x123   :  { %1342 = vpow2.f32 %v1257_v43 }
 0x124   :  { %1344 = vpow2.f32 %v1258_v51 }
 0x125   :  { %1346 = vtanh.f32 %v334_v52  ;;  %v363_v52 = vld [vmem:[#allocation4 + $0x30] sm:$0xff] }
 0x12c   :  { %v1341_v53 = vpop.eup %1340 }
 0x12d   :  { %v1343_v54 = vpop.eup %1342  ;;  %v338_v55 = vadd.f32 1.0, %v1341_v53 }
 0x12e   :  { %v344_v56 = vadd.f32 1.0, %v1343_v54  ;;  %v1345_v57 = vpop.eup %1344  ;;  %v364_v54 = vld [vmem:[#allocation4 + $0x38] sm:$0xff] }
 0x12f   :  { %1348 = vrcp.f32 %v338_v55  ;;  %v1347_v58 = vpop.eup %1346  ;;  %v350_v60 = vadd.f32 1.0, %v1345_v57 }
 0x130   :  { %1350 = vrcp.f32 %v344_v56 }
 0x131   :  { %1352 = vrcp.f32 %v350_v60 }
 0x139   :  { %v1349_v59 = vpop.eup %1348 }
 0x13a   :  { %v1351_v61 = vpop.eup %1350  ;;  %v354_v62 = vmul.f32 0.0, %v1349_v59 }
 0x13b   :  { %v355_v63 = vmul.f32 %v1351_v61, %v1347_v58  ;;  %v1353_v34 = vpop.eup %1352 }
 0x13d   :  { %v1786_v33 = vadd.f32 %v355_v63, %v354_v62 }
 0x13f   :  { %1354 = vtanh.f32 %v1786_v33 }
 0x149   :  { %v1355_v35 = vpop.eup %1354 }
 0x14a   :  { %v358_v36 = vmul.f32 %v1355_v35, %v1353_v34 }
 0x14c   :  { %359 = vst [vmem:[#allocation9] sm:$0xff] %v358_v36  ;;  %v365_v37 = vpack.c.bf16 %v358_v36, %v358_v36 }
 0x14e   :  { %399 = vmatmul.mubr.bf16.vlgmr.msra.gmra.mrb[4].mxu0 %v365_v37  ;;  %440 = vmatmul.mubr.bf16.vlgmr.msra.gmra.mrb[4].mxu1 %v365_v37 }
 0x14f   :  { %485 = vmatpush1.bf16.msra.mxu0 %v1656_v2  ;;  %526 = vmatpush1.bf16.msra.mxu1 %v1669_v7 }
 0x150   :  { %486 = vmatprep.subr.bf16.mxu0 %v1659_v3  ;;  %527 = vmatprep.subr.bf16.mxu1 %v1679_v10 }
 0x151   :  { %516 = vmatprep.mubr.bf16.mxu0 %v1602_v0  ;;  %557 = vmatprep.mubr.bf16.mxu1 %v1602_v0 }
 0x153   :  { %487 = vmatpush1.bf16.msra.mxu0 %v1662_v4  ;;  %528 = vmatpush1.bf16.msra.mxu1 %v1681_v11 }
 0x154   :  { %488 = vmatprep.subr.bf16.mxu0 %v1665_v5  ;;  %529 = vmatprep.subr.bf16.mxu1 %v1689_v14 }
 0x157   :  { %489 = vmatpush1.bf16.msra.mxu0 %v1672_v8  ;;  %530 = vmatpush1.bf16.msra.mxu1 %v1693_v15 }
 0x158   :  { %490 = vmatprep.subr.bf16.mxu0 %v1676_v9  ;;  %531 = vmatprep.subr.bf16.mxu1 %v1696_v16 }
 0x15b   :  { %491 = vmatpush1.bf16.msra.mxu0 %v1685_v12  ;;  %532 = vmatpush1.bf16.msra.mxu1 %v1705_v19 }
 0x15c   :  { %492 = vmatprep.subr.bf16.mxu0 %v1687_v13  ;;  %533 = vmatprep.subr.bf16.mxu1 %v1708_v20 }
 0x15f   :  { %493 = vmatpush1.bf16.msra.mxu0 %v1699_v17  ;;  %534 = vmatpush1.bf16.msra.mxu1 %v1717_v23 }
 0x160   :  { %494 = vmatprep.subr.bf16.mxu0 %v1702_v18  ;;  %535 = vmatprep.subr.bf16.mxu1 %v1720_v24 }
 0x163   :  { %495 = vmatpush1.bf16.msra.mxu0 %v1711_v21  ;;  %536 = vmatpush1.bf16.msra.mxu1 %v1729_v27 }
 0x164   :  { %496 = vmatprep.subr.bf16.mxu0 %v1713_v22  ;;  %537 = vmatprep.subr.bf16.mxu1 %v1732_v28 }
 0x167   :  { %497 = vmatpush1.bf16.msra.mxu0 %v1723_v25  ;;  %538 = vmatpush1.bf16.msra.mxu1 %v1739_v30 }
 0x168   :  { %498 = vmatprep.subr.bf16.mxu0 %v1726_v26  ;;  %539 = vmatprep.subr.bf16.mxu1 %v1742_v31 }
 0x16b   :  { %499 = vmatpush1.bf16.msra.mxu0 %v1735_v29  ;;  %540 = vmatpush1.bf16.msra.mxu1 %v1746_v32 }
 0x16c   :  { %602 = vmatprep.subr.bf16.mxu0 %v1654_v1  ;;  %643 = vmatprep.subr.bf16.mxu1 %v1667_v6 }
 0x221   :  { %v400_v40 = vpop.f32.mrb[4].mxu0  ;;  %v441_v41 = vpop.f32.mrb[4].mxu1 }
 0x222   :  { %v448_v42 = vadd.f32 %v400_v40, %v361_v38  ;;  %v402_v43 = vpop.f32.mrb[5].mxu0  ;;  %v443_v44 = vpop.f32.mrb[5].mxu1  ;;  %v450_v53 = vadd.f32 %v441_v41, %v363_v52 }
 0x223   :  { %v449_v45 = vadd.f32 %v402_v43, %v362_v39  ;;  %v404_v46 = vpop.f32.mrb[6].mxu0  ;;  %v445_v47 = vpop.f32.mrb[6].mxu1  ;;  %v451_v57 = vadd.f32 %v443_v44, %v364_v54  ;;  %v480_v43 = vld [vmem:[#allocation4 + $0x48] sm:$0xff] }
 0x224   :  { %v1259_v48 = vmul.f32 -1.442695, %v448_v42  ;;  %v405_v49 = vpop.f32.mrb[7].mxu0  ;;  %v446_v50 = vpop.f32.mrb[7].mxu1  ;;  %v1261_v55 = vmul.f32 -1.442695, %v450_v53 }
 0x225   :  { %v1260_v51 = vmul.f32 -1.442695, %v449_v45 }
 0x226   :  { %1356 = vpow2.f32 %v1259_v48 }
 0x227   :  { %1358 = vpow2.f32 %v1260_v51 }
 0x228   :  { %1360 = vpow2.f32 %v1261_v55 }
 0x230   :  { %v1357_v56 = vpop.eup %1356 }
 0x231   :  { %v455_v58 = vadd.f32 1.0, %v1357_v56  ;;  %v1359_v59 = vpop.eup %1358  ;;  %v481_v56 = vld [vmem:[#allocation4 + $0x50] sm:$0xff] }
 0x232   :  { %v461_v60 = vadd.f32 1.0, %v1359_v59  ;;  %v1361_v61 = vpop.eup %1360 }
 0x233   :  { %1362 = vrcp.f32 %v455_v58  ;;  %v467_v36 = vadd.f32 1.0, %v1361_v61  ;;  %v482_v58 = vld [vmem:[#allocation4 + $0x58] sm:$0xff] }
 0x234   :  { %1364 = vtanh.f32 %v451_v57 }
 0x235   :  { %1366 = vrcp.f32 %v461_v60 }
 0x236   :  { %1368 = vrcp.f32 %v467_v36 }
 0x23d   :  { %v1363_v62 = vpop.eup %1362 }
 0x23e   :  { %v1365_v63 = vpop.eup %1364  ;;  %v471_v34 = vmul.f32 %v1363_v62, %v1786_v33  ;;  %v479_v33 = vld [vmem:[#allocation4 + $0x40] sm:$0xff] }
 0x23f   :  { %v1367_v35 = vpop.eup %1366 }
 0x240   :  { %v472_v37 = vmul.f32 %v1367_v35, %v1365_v63  ;;  %v1369_v39 = vpop.eup %1368 }
 0x242   :  { %v1824_v38 = vadd.f32 %v472_v37, %v471_v34 }
 0x244   :  { %1370 = vtanh.f32 %v1824_v38 }
 0x24e   :  { %v1371_v40 = vpop.eup %1370 }
 0x24f   :  { %v475_v41 = vmul.f32 %v1371_v40, %v1369_v39 }
 0x251   :  { %477 = vst [vmem:[#allocation9 + $0x8] sm:$0xff] %v475_v41  ;;  %v483_v42 = vpack.c.bf16 %v475_v41, %v475_v41 }
 0x253   :  { %517 = vmatmul.mubr.bf16.vlgmr.msra.gmra.mrb[8].mxu0 %v483_v42  ;;  %558 = vmatmul.mubr.bf16.vlgmr.msra.gmra.mrb[8].mxu1 %v483_v42 }
 0x254   :  { %603 = vmatpush1.bf16.msra.mxu0 %v1656_v2  ;;  %644 = vmatpush1.bf16.msra.mxu1 %v1669_v7 }
 0x255   :  { %604 = vmatprep.subr.bf16.mxu0 %v1659_v3  ;;  %645 = vmatprep.subr.bf16.mxu1 %v1679_v10 }
 0x256   :  { %634 = vmatprep.mubr.bf16.mxu0 %v1602_v0  ;;  %675 = vmatprep.mubr.bf16.mxu1 %v1602_v0 }
 0x258   :  { %605 = vmatpush1.bf16.msra.mxu0 %v1662_v4  ;;  %646 = vmatpush1.bf16.msra.mxu1 %v1681_v11 }
 0x259   :  { %606 = vmatprep.subr.bf16.mxu0 %v1665_v5  ;;  %647 = vmatprep.subr.bf16.mxu1 %v1689_v14 }
 0x25c   :  { %607 = vmatpush1.bf16.msra.mxu0 %v1672_v8  ;;  %648 = vmatpush1.bf16.msra.mxu1 %v1693_v15 }
 0x25d   :  { %608 = vmatprep.subr.bf16.mxu0 %v1676_v9  ;;  %649 = vmatprep.subr.bf16.mxu1 %v1696_v16 }
 0x260   :  { %609 = vmatpush1.bf16.msra.mxu0 %v1685_v12  ;;  %650 = vmatpush1.bf16.msra.mxu1 %v1705_v19 }
 0x261   :  { %610 = vmatprep.subr.bf16.mxu0 %v1687_v13  ;;  %651 = vmatprep.subr.bf16.mxu1 %v1708_v20 }
 0x264   :  { %611 = vmatpush1.bf16.msra.mxu0 %v1699_v17  ;;  %652 = vmatpush1.bf16.msra.mxu1 %v1717_v23 }
 0x265   :  { %612 = vmatprep.subr.bf16.mxu0 %v1702_v18  ;;  %653 = vmatprep.subr.bf16.mxu1 %v1720_v24 }
 0x268   :  { %613 = vmatpush1.bf16.msra.mxu0 %v1711_v21  ;;  %654 = vmatpush1.bf16.msra.mxu1 %v1729_v27 }
 0x269   :  { %614 = vmatprep.subr.bf16.mxu0 %v1713_v22  ;;  %655 = vmatprep.subr.bf16.mxu1 %v1732_v28 }
 0x26c   :  { %615 = vmatpush1.bf16.msra.mxu0 %v1723_v25  ;;  %656 = vmatpush1.bf16.msra.mxu1 %v1739_v30 }
 0x26d   :  { %616 = vmatprep.subr.bf16.mxu0 %v1726_v26  ;;  %657 = vmatprep.subr.bf16.mxu1 %v1742_v31 }
 0x270   :  { %617 = vmatpush1.bf16.msra.mxu0 %v1735_v29  ;;  %658 = vmatpush1.bf16.msra.mxu1 %v1746_v32 }
 0x271   :  { %720 = vmatprep.subr.bf16.mxu0 %v1654_v1  ;;  %761 = vmatprep.subr.bf16.mxu1 %v1667_v6 }
 0x326   :  { %v518_v44 = vpop.f32.mrb[8].mxu0  ;;  %v559_v45 = vpop.f32.mrb[8].mxu1 }
 0x327   :  { %v566_v46 = vadd.f32 %v518_v44, %v479_v33  ;;  %v520_v47 = vpop.f32.mrb[9].mxu0  ;;  %v561_v48 = vpop.f32.mrb[9].mxu1  ;;  %v568_v57 = vadd.f32 %v559_v45, %v481_v56 }
 0x328   :  { %v567_v49 = vadd.f32 %v520_v47, %v480_v43  ;;  %v522_v50 = vpop.f32.mrb[10].mxu0  ;;  %v563_v51 = vpop.f32.mrb[10].mxu1  ;;  %v569_v61 = vadd.f32 %v561_v48, %v482_v58  ;;  %v598_v47 = vld [vmem:[#allocation4 + $0x68] sm:$0xff] }
 0x329   :  { %v1262_v52 = vmul.f32 -1.442695, %v566_v46  ;;  %v523_v53 = vpop.f32.mrb[11].mxu0  ;;  %v564_v54 = vpop.f32.mrb[11].mxu1  ;;  %v1264_v59 = vmul.f32 -1.442695, %v568_v57 }
 0x32a   :  { %v1263_v55 = vmul.f32 -1.442695, %v567_v49 }
 0x32b   :  { %1372 = vpow2.f32 %v1262_v52 }
 0x32c   :  { %1374 = vpow2.f32 %v1263_v55 }
 0x32d   :  { %1376 = vpow2.f32 %v1264_v59 }
 0x335   :  { %v1373_v60 = vpop.eup %1372 }
 0x336   :  { %v573_v62 = vadd.f32 1.0, %v1373_v60  ;;  %v1375_v63 = vpop.eup %1374  ;;  %v599_v60 = vld [vmem:[#allocation4 + $0x70] sm:$0xff] }
 0x337   :  { %v579_v34 = vadd.f32 1.0, %v1375_v63  ;;  %v1377_v35 = vpop.eup %1376 }
 0x338   :  { %1378 = vrcp.f32 %v573_v62  ;;  %v585_v41 = vadd.f32 1.0, %v1377_v35  ;;  %v600_v62 = vld [vmem:[#allocation4 + $0x78] sm:$0xff] }
 0x339   :  { %1380 = vtanh.f32 %v569_v61 }
 0x33a   :  { %1382 = vrcp.f32 %v579_v34 }
 0x33b   :  { %1384 = vrcp.f32 %v585_v41 }
 0x342   :  { %v1379_v36 = vpop.eup %1378 }
 0x343   :  { %v1381_v37 = vpop.eup %1380  ;;  %v589_v39 = vmul.f32 %v1379_v36, %v1824_v38  ;;  %v597_v38 = vld [vmem:[#allocation4 + $0x60] sm:$0xff] }
 0x344   :  { %v1383_v40 = vpop.eup %1382 }
 0x345   :  { %v590_v42 = vmul.f32 %v1383_v40, %v1381_v37  ;;  %v1385_v43 = vpop.eup %1384 }
 0x347   :  { %v1862_v33 = vadd.f32 %v590_v42, %v589_v39 }
 0x349   :  { %1386 = vtanh.f32 %v1862_v33 }
 0x353   :  { %v1387_v44 = vpop.eup %1386 }
 0x354   :  { %v593_v45 = vmul.f32 %v1387_v44, %v1385_v43 }
 0x356   :  { %595 = vst [vmem:[#allocation9 + $0x10] sm:$0xff] %v593_v45  ;;  %v601_v46 = vpack.c.bf16 %v593_v45, %v593_v45 }
 0x358   :  { %635 = vmatmul.mubr.bf16.vlgmr.msra.gmra.mrb[12].mxu0 %v601_v46  ;;  %676 = vmatmul.mubr.bf16.vlgmr.msra.gmra.mrb[12].mxu1 %v601_v46 }
 0x359   :  { %721 = vmatpush1.bf16.msra.mxu0 %v1656_v2  ;;  %762 = vmatpush1.bf16.msra.mxu1 %v1669_v7 }
 0x35a   :  { %722 = vmatprep.subr.bf16.mxu0 %v1659_v3  ;;  %763 = vmatprep.subr.bf16.mxu1 %v1679_v10 }
 0x35b   :  { %752 = vmatprep.mubr.bf16.mxu0 %v1602_v0  ;;  %793 = vmatprep.mubr.bf16.mxu1 %v1602_v0 }
 0x35d   :  { %723 = vmatpush1.bf16.msra.mxu0 %v1662_v4  ;;  %764 = vmatpush1.bf16.msra.mxu1 %v1681_v11 }
 0x35e   :  { %724 = vmatprep.subr.bf16.mxu0 %v1665_v5  ;;  %765 = vmatprep.subr.bf16.mxu1 %v1689_v14 }
 0x361   :  { %725 = vmatpush1.bf16.msra.mxu0 %v1672_v8  ;;  %766 = vmatpush1.bf16.msra.mxu1 %v1693_v15 }
 0x362   :  { %726 = vmatprep.subr.bf16.mxu0 %v1676_v9  ;;  %767 = vmatprep.subr.bf16.mxu1 %v1696_v16 }
 0x365   :  { %727 = vmatpush1.bf16.msra.mxu0 %v1685_v12  ;;  %768 = vmatpush1.bf16.msra.mxu1 %v1705_v19 }
 0x366   :  { %728 = vmatprep.subr.bf16.mxu0 %v1687_v13  ;;  %769 = vmatprep.subr.bf16.mxu1 %v1708_v20 }
 0x369   :  { %729 = vmatpush1.bf16.msra.mxu0 %v1699_v17  ;;  %770 = vmatpush1.bf16.msra.mxu1 %v1717_v23 }
 0x36a   :  { %730 = vmatprep.subr.bf16.mxu0 %v1702_v18  ;;  %771 = vmatprep.subr.bf16.mxu1 %v1720_v24 }
 0x36d   :  { %731 = vmatpush1.bf16.msra.mxu0 %v1711_v21  ;;  %772 = vmatpush1.bf16.msra.mxu1 %v1729_v27 }
 0x36e   :  { %732 = vmatprep.subr.bf16.mxu0 %v1713_v22  ;;  %773 = vmatprep.subr.bf16.mxu1 %v1732_v28 }
 0x371   :  { %733 = vmatpush1.bf16.msra.mxu0 %v1723_v25  ;;  %774 = vmatpush1.bf16.msra.mxu1 %v1739_v30 }
 0x372   :  { %734 = vmatprep.subr.bf16.mxu0 %v1726_v26  ;;  %775 = vmatprep.subr.bf16.mxu1 %v1742_v31 }
 0x375   :  { %735 = vmatpush1.bf16.msra.mxu0 %v1735_v29  ;;  %776 = vmatpush1.bf16.msra.mxu1 %v1746_v32 }
 0x376   :  { %838 = vmatprep.subr.bf16.mxu0 %v1654_v1  ;;  %879 = vmatprep.subr.bf16.mxu1 %v1667_v6 }
 0x42b   :  { %v636_v48 = vpop.f32.mrb[12].mxu0  ;;  %v677_v49 = vpop.f32.mrb[12].mxu1 }
 0x42c   :  { %v684_v50 = vadd.f32 %v636_v48, %v597_v38  ;;  %v638_v51 = vpop.f32.mrb[13].mxu0  ;;  %v679_v52 = vpop.f32.mrb[13].mxu1  ;;  %v686_v61 = vadd.f32 %v677_v49, %v599_v60 }
 0x42d   :  { %v685_v53 = vadd.f32 %v638_v51, %v598_v47  ;;  %v640_v54 = vpop.f32.mrb[14].mxu0  ;;  %v681_v55 = vpop.f32.mrb[14].mxu1  ;;  %v687_v35 = vadd.f32 %v679_v52, %v600_v62  ;;  %v716_v51 = vld [vmem:[#allocation4 + $0x88] sm:$0xff] }
 0x42e   :  { %v1265_v56 = vmul.f32 -1.442695, %v684_v50  ;;  %v641_v57 = vpop.f32.mrb[15].mxu0  ;;  %v682_v58 = vpop.f32.mrb[15].mxu1  ;;  %v1267_v63 = vmul.f32 -1.442695, %v686_v61 }
 0x42f   :  { %v1266_v59 = vmul.f32 -1.442695, %v685_v53 }
 0x430   :  { %1388 = vpow2.f32 %v1265_v56 }
 0x431   :  { %1390 = vpow2.f32 %v1266_v59 }
 0x432   :  { %1392 = vpow2.f32 %v1267_v63 }
 0x43a   :  { %v1389_v34 = vpop.eup %1388 }
 0x43b   :  { %v691_v36 = vadd.f32 1.0, %v1389_v34  ;;  %v1391_v37 = vpop.eup %1390  ;;  %v717_v34 = vld [vmem:[#allocation4 + $0x90] sm:$0xff] }
 0x43c   :  { %v697_v39 = vadd.f32 1.0, %v1391_v37  ;;  %v1393_v40 = vpop.eup %1392 }
 0x43d   :  { %1394 = vrcp.f32 %v691_v36  ;;  %v703_v45 = vadd.f32 1.0, %v1393_v40 }
 0x43e   :  { %1396 = vtanh.f32 %v687_v35  ;;  %v718_v35 = vld [vmem:[#allocation4 + $0x98] sm:$0xff] }
 0x43f   :  { %1398 = vrcp.f32 %v697_v39 }
 0x440   :  { %1400 = vrcp.f32 %v703_v45 }
 0x447   :  { %v1395_v41 = vpop.eup %1394 }
 0x448   :  { %v1397_v42 = vpop.eup %1396  ;;  %v707_v43 = vmul.f32 %v1395_v41, %v1862_v33  ;;  %v715_v33 = vld [vmem:[#allocation4 + $0x80] sm:$0xff] }
 0x449   :  { %v1399_v44 = vpop.eup %1398 }
 0x44a   :  { %v708_v46 = vmul.f32 %v1399_v44, %v1397_v42  ;;  %v1401_v47 = vpop.eup %1400 }
 0x44c   :  { %v1900_v38 = vadd.f32 %v708_v46, %v707_v43 }
 0x44e   :  { %1402 = vtanh.f32 %v1900_v38 }
 0x458   :  { %v1403_v48 = vpop.eup %1402 }
 0x459   :  { %v711_v49 = vmul.f32 %v1403_v48, %v1401_v47 }
 0x45b   :  { %713 = vst [vmem:[#allocation9 + $0x18] sm:$0xff] %v711_v49  ;;  %v719_v50 = vpack.c.bf16 %v711_v49, %v711_v49 }
 0x45d   :  { %753 = vmatmul.mubr.bf16.vlgmr.msra.gmra.mrb[16].mxu0 %v719_v50  ;;  %794 = vmatmul.mubr.bf16.vlgmr.msra.gmra.mrb[16].mxu1 %v719_v50 }
 0x45e   :  { %839 = vmatpush1.bf16.msra.mxu0 %v1656_v2  ;;  %880 = vmatpush1.bf16.msra.mxu1 %v1669_v7 }
 0x45f   :  { %840 = vmatprep.subr.bf16.mxu0 %v1659_v3  ;;  %881 = vmatprep.subr.bf16.mxu1 %v1679_v10 }
 0x460   :  { %870 = vmatprep.mubr.bf16.mxu0 %v1602_v0  ;;  %911 = vmatprep.mubr.bf16.mxu1 %v1602_v0 }
 0x462   :  { %841 = vmatpush1.bf16.msra.mxu0 %v1662_v4  ;;  %882 = vmatpush1.bf16.msra.mxu1 %v1681_v11 }
 0x463   :  { %842 = vmatprep.subr.bf16.mxu0 %v1665_v5  ;;  %883 = vmatprep.subr.bf16.mxu1 %v1689_v14 }
 0x466   :  { %843 = vmatpush1.bf16.msra.mxu0 %v1672_v8  ;;  %884 = vmatpush1.bf16.msra.mxu1 %v1693_v15 }
 0x467   :  { %844 = vmatprep.subr.bf16.mxu0 %v1676_v9  ;;  %885 = vmatprep.subr.bf16.mxu1 %v1696_v16 }
 0x46a   :  { %845 = vmatpush1.bf16.msra.mxu0 %v1685_v12  ;;  %886 = vmatpush1.bf16.msra.mxu1 %v1705_v19 }
 0x46b   :  { %846 = vmatprep.subr.bf16.mxu0 %v1687_v13  ;;  %887 = vmatprep.subr.bf16.mxu1 %v1708_v20 }
 0x46e   :  { %847 = vmatpush1.bf16.msra.mxu0 %v1699_v17  ;;  %888 = vmatpush1.bf16.msra.mxu1 %v1717_v23 }
 0x46f   :  { %848 = vmatprep.subr.bf16.mxu0 %v1702_v18  ;;  %889 = vmatprep.subr.bf16.mxu1 %v1720_v24 }
 0x472   :  { %849 = vmatpush1.bf16.msra.mxu0 %v1711_v21  ;;  %890 = vmatpush1.bf16.msra.mxu1 %v1729_v27 }
 0x473   :  { %850 = vmatprep.subr.bf16.mxu0 %v1713_v22  ;;  %891 = vmatprep.subr.bf16.mxu1 %v1732_v28 }
 0x476   :  { %851 = vmatpush1.bf16.msra.mxu0 %v1723_v25  ;;  %892 = vmatpush1.bf16.msra.mxu1 %v1739_v30 }
 0x477   :  { %852 = vmatprep.subr.bf16.mxu0 %v1726_v26  ;;  %893 = vmatprep.subr.bf16.mxu1 %v1742_v31 }
 0x47a   :  { %853 = vmatpush1.bf16.msra.mxu0 %v1735_v29  ;;  %894 = vmatpush1.bf16.msra.mxu1 %v1746_v32 }
 0x47b   :  { %956 = vmatprep.subr.bf16.mxu0 %v1654_v1  ;;  %997 = vmatprep.subr.bf16.mxu1 %v1667_v6 }
 0x530   :  { %v754_v52 = vpop.f32.mrb[16].mxu0  ;;  %v795_v53 = vpop.f32.mrb[16].mxu1 }
 0x531   :  { %v802_v54 = vadd.f32 %v754_v52, %v715_v33  ;;  %v756_v55 = vpop.f32.mrb[17].mxu0  ;;  %v797_v56 = vpop.f32.mrb[17].mxu1  ;;  %v804_v1 = vadd.f32 %v795_v53, %v717_v34  ;;  %v1475_v34 = vld [vmem:[#allocation7 + $0x28] ss:$16 sps:$4 sm:$0xff]  }
 0x532   :  { %v803_v57 = vadd.f32 %v756_v55, %v716_v51  ;;  %v758_v58 = vpop.f32.mrb[18].mxu0  ;;  %v799_v59 = vpop.f32.mrb[18].mxu1  ;;  %v805_v37 = vadd.f32 %v797_v56, %v718_v35  ;;  %v1477_v35 = vld [vmem:[#allocation7 + $0x4c] ss:$16 sps:$4 sm:$0xff]  }
 0x533   :  { %v1268_v60 = vmul.f32 -1.442695, %v802_v54  ;;  %v759_v61 = vpop.f32.mrb[19].mxu0  ;;  %v800_v62 = vpop.f32.mrb[19].mxu1  ;;  %v1270_v6 = vmul.f32 -1.442695, %v804_v1 }
 0x534   :  { %v1269_v63 = vmul.f32 -1.442695, %v803_v57  ;;  %v1470_v59 = vld [vmem:[#allocation7] ss:$16 sps:$4 sm:$0xff]   ;;  %v1472_v61 = vld [vmem:[#allocation7 + $0x24] ss:$16 sps:$4 sm:$0xff]  }
 0x535   :  { %1404 = vpow2.f32 %v1268_v60  ;;  %v1471_v60 = vld [vmem:[#allocation7 + $0x8] ss:$16 sps:$4 sm:$0xff]   ;;  %v1473_v62 = vld [vmem:[#allocation7 + $0x2c] ss:$16 sps:$4 sm:$0xff]   ;;  %v1476_v1 = vld [vmem:[#allocation7 + $0x44] ss:$16 sps:$4 sm:$0xff]  }
 0x536   :  { %1406 = vpow2.f32 %v1269_v63  ;;  %v1474_v63 = vld [vmem:[#allocation7 + $0x20] ss:$16 sps:$4 sm:$0xff]  }
 0x537   :  { %1408 = vpow2.f32 %v1270_v6  ;;  %v1478_v6 = vld [vmem:[#allocation7 + $0x40] ss:$16 sps:$4 sm:$0xff]  }
 0x53f   :  { %v1405_v36 = vpop.eup %1404 }
 0x540   :  { %v809_v39 = vadd.f32 1.0, %v1405_v36  ;;  %v1407_v40 = vpop.eup %1406  ;;  %v1479_v36 = vld [vmem:[#allocation7 + $0x48] ss:$16 sps:$4 sm:$0xff]  }
 0x541   :  { %v815_v41 = vadd.f32 1.0, %v1407_v40  ;;  %v1409_v42 = vpop.eup %1408  ;;  %v1482_v40 = vld [vmem:[#allocation7 + $0x60] ss:$16 sps:$4 sm:$0xff]  }
 0x542   :  { %1410 = vrcp.f32 %v809_v39  ;;  %v821_v47 = vadd.f32 1.0, %v1409_v42  ;;  %v1481_v39 = vld [vmem:[#allocation7 + $0x6c] ss:$16 sps:$4 sm:$0xff]  }
 0x543   :  { %1412 = vtanh.f32 %v805_v37  ;;  %v1480_v37 = vld [vmem:[#allocation7 + $0x64] ss:$16 sps:$4 sm:$0xff]   ;;  %v1485_v42 = vld [vmem:[#allocation7 + $0x8c] ss:$16 sps:$4 sm:$0xff]  }
 0x544   :  { %1414 = vrcp.f32 %v815_v41  ;;  %v1483_v41 = vld [vmem:[#allocation7 + $0x68] ss:$16 sps:$4 sm:$0xff]  }
 0x545   :  { %1416 = vrcp.f32 %v821_v47  ;;  %v1490_v47 = vld [vmem:[#allocation7 + $0xa0] ss:$16 sps:$4 sm:$0xff]  }
 0x54c   :  { %v1411_v43 = vpop.eup %1410 }
 0x54d   :  { %v1413_v44 = vpop.eup %1412  ;;  %v825_v45 = vmul.f32 %v1411_v43, %v1900_v38  ;;  %v1486_v43 = vld [vmem:[#allocation7 + $0x80] ss:$16 sps:$4 sm:$0xff]  }
 0x54e   :  { %v1415_v46 = vpop.eup %1414 }
 0x54f   :  { %v826_v48 = vmul.f32 %v1415_v46, %v1413_v44  ;;  %v1417_v50 = vpop.eup %1416  ;;  %v1487_v44 = vld [vmem:[#allocation7 + $0x88] ss:$16 sps:$4 sm:$0xff]   ;;  %v1489_v46 = vld [vmem:[#allocation7 + $0xac] ss:$16 sps:$4 sm:$0xff]  }
 0x551   :  { %v1938_v49 = vadd.f32 %v826_v48, %v825_v45  ;;  %v1488_v45 = vld [vmem:[#allocation7 + $0xa4] ss:$16 sps:$4 sm:$0xff]   ;;  %v1491_v48 = vld [vmem:[#allocation7 + $0xa8] ss:$16 sps:$4 sm:$0xff]  }
 0x553   :  { %1418 = vtanh.f32 %v1938_v49 }
 0x55d   :  { %v1419_v33 = vpop.eup %1418 }
 0x55e   :  { %v829_v51 = vmul.f32 %v1419_v33, %v1417_v50  ;;  %v1493_v50 = vld [vmem:[#allocation7 + $0xcc] ss:$16 sps:$4 sm:$0xff]   ;;  %v1494_v33 = vld [vmem:[#allocation7 + $0xc0] ss:$16 sps:$4 sm:$0xff]  }
 0x560   :  { %831 = vst [vmem:[#allocation9 + $0x20] sm:$0xff] %v829_v51  ;;  %v837_v52 = vpack.c.bf16 %v829_v51, %v829_v51  ;;  %v1495_v51 = vld [vmem:[#allocation7 + $0xc8] ss:$16 sps:$4 sm:$0xff]  }
 0x562   :  { %871 = vmatmul.mubr.bf16.vlgmr.msra.gmra.mrb[20].mxu0 %v837_v52  ;;  %912 = vmatmul.mubr.bf16.vlgmr.msra.gmra.mrb[20].mxu1 %v837_v52  ;;  %v1496_v52 = vld [vmem:[#allocation7 + $0xe4] ss:$16 sps:$4 sm:$0xff]  }
 0x563   :  { %957 = vmatpush1.bf16.msra.mxu0 %v1656_v2  ;;  %998 = vmatpush1.bf16.msra.mxu1 %v1669_v7  ;;  %v1468_v2 = vld [vmem:[#allocation7 + $0x4] ss:$16 sps:$4 sm:$0xff]  }
 0x564   :  { %958 = vmatprep.subr.bf16.mxu0 %v1659_v3  ;;  %999 = vmatprep.subr.bf16.mxu1 %v1679_v10  ;;  %v1469_v3 = vld [vmem:[#allocation7 + $0xc] ss:$16 sps:$4 sm:$0xff]  }
 0x565   :  { %988 = vmatprep.mubr.bf16.mxu0 %v1602_v0  ;;  %1029 = vmatprep.mubr.bf16.mxu1 %v1602_v0 }
 0x567   :  { %959 = vmatpush1.bf16.msra.mxu0 %v1662_v4  ;;  %1000 = vmatpush1.bf16.msra.mxu1 %v1681_v11  ;;  %v833_v4 = vld [vmem:[#allocation4 + $0xa0] sm:$0xff] }
 0x568   :  { %960 = vmatprep.subr.bf16.mxu0 %v1665_v5  ;;  %1001 = vmatprep.subr.bf16.mxu1 %v1689_v14  ;;  %v834_v5 = vld [vmem:[#allocation4 + $0xa8] sm:$0xff] }
 0x56b   :  { %961 = vmatpush1.bf16.msra.mxu0 %v1672_v8  ;;  %1002 = vmatpush1.bf16.msra.mxu1 %v1693_v15 }
 0x56c   :  { %962 = vmatprep.subr.bf16.mxu0 %v1676_v9  ;;  %1003 = vmatprep.subr.bf16.mxu1 %v1696_v16 }
 0x56f   :  { %963 = vmatpush1.bf16.msra.mxu0 %v1685_v12  ;;  %1004 = vmatpush1.bf16.msra.mxu1 %v1705_v19  ;;  %v835_v19 = vld [vmem:[#allocation4 + $0xb0] sm:$0xff] }
 0x570   :  { %964 = vmatprep.subr.bf16.mxu0 %v1687_v13  ;;  %1005 = vmatprep.subr.bf16.mxu1 %v1708_v20 }
 0x573   :  { %965 = vmatpush1.bf16.msra.mxu0 %v1699_v17  ;;  %1006 = vmatpush1.bf16.msra.mxu1 %v1717_v23 }
 0x574   :  { %966 = vmatprep.subr.bf16.mxu0 %v1702_v18  ;;  %1007 = vmatprep.subr.bf16.mxu1 %v1720_v24 }
 0x577   :  { %967 = vmatpush1.bf16.msra.mxu0 %v1711_v21  ;;  %1008 = vmatpush1.bf16.msra.mxu1 %v1729_v27  ;;  %v836_v21 = vld [vmem:[#allocation4 + $0xb8] sm:$0xff] }
 0x578   :  { %968 = vmatprep.subr.bf16.mxu0 %v1713_v22  ;;  %1009 = vmatprep.subr.bf16.mxu1 %v1732_v28 }
 0x57b   :  { %969 = vmatpush1.bf16.msra.mxu0 %v1723_v25  ;;  %1010 = vmatpush1.bf16.msra.mxu1 %v1739_v30 }
 0x57c   :  { %970 = vmatprep.subr.bf16.mxu0 %v1726_v26  ;;  %1011 = vmatprep.subr.bf16.mxu1 %v1742_v31 }
 0x57f   :  { %971 = vmatpush1.bf16.msra.mxu0 %v1735_v29  ;;  %1012 = vmatpush1.bf16.msra.mxu1 %v1746_v32 }
 0x580   :  { %1074 = vmatprep.subr.bf16.mxu0 %v1468_v2  ;;  %1115 = vmatprep.subr.bf16.mxu1 %v1469_v3  ;;  %v1497_v2 = vld [vmem:[#allocation7 + $0xec] ss:$16 sps:$4 sm:$0xff]   ;;  %v1498_v3 = vld [vmem:[#allocation7 + $0xe0] ss:$16 sps:$4 sm:$0xff]  }
 0x635   :  { %v872_v7 = vpop.f32.mrb[20].mxu0  ;;  %v913_v8 = vpop.f32.mrb[20].mxu1 }
 0x636   :  { %v920_v9 = vadd.f32 %v872_v7, %v833_v4  ;;  %v874_v10 = vpop.f32.mrb[21].mxu0  ;;  %v915_v11 = vpop.f32.mrb[21].mxu1  ;;  %v922_v20 = vadd.f32 %v913_v8, %v835_v19  ;;  %v1499_v4 = vld [vmem:[#allocation7 + $0xe8] ss:$16 sps:$4 sm:$0xff]  }
 0x637   :  { %v921_v12 = vadd.f32 %v874_v10, %v834_v5  ;;  %v876_v13 = vpop.f32.mrb[22].mxu0  ;;  %v917_v14 = vpop.f32.mrb[22].mxu1  ;;  %v923_v24 = vadd.f32 %v915_v11, %v836_v21  ;;  %v951_v5 = vld [vmem:[#allocation4 + $0xc0] sm:$0xff]  ;;  %v952_v7 = vld [vmem:[#allocation4 + $0xc8] sm:$0xff] }
 0x638   :  { %v1271_v15 = vmul.f32 -1.442695, %v920_v9  ;;  %v877_v16 = vpop.f32.mrb[23].mxu0  ;;  %v918_v17 = vpop.f32.mrb[23].mxu1  ;;  %v1273_v22 = vmul.f32 -1.442695, %v922_v20 }
 0x639   :  { %v1272_v18 = vmul.f32 -1.442695, %v921_v12  ;;  %v953_v20 = vld [vmem:[#allocation4 + $0xd0] sm:$0xff] }
 0x63a   :  { %1420 = vpow2.f32 %v1271_v15 }
 0x63b   :  { %1422 = vpow2.f32 %v1272_v18 }
 0x63c   :  { %1424 = vpow2.f32 %v1273_v22  ;;  %v954_v22 = vld [vmem:[#allocation4 + $0xd8] sm:$0xff] }
 0x644   :  { %v1421_v23 = vpop.eup %1420 }
 0x645   :  { %v927_v25 = vadd.f32 1.0, %v1421_v23  ;;  %v1423_v26 = vpop.eup %1422 }
 0x646   :  { %v933_v27 = vadd.f32 1.0, %v1423_v26  ;;  %v1425_v28 = vpop.eup %1424 }
 0x647   :  { %1426 = vrcp.f32 %v927_v25  ;;  %v939_v38 = vadd.f32 1.0, %v1425_v28 }
 0x648   :  { %1428 = vtanh.f32 %v923_v24 }
 0x649   :  { %1430 = vrcp.f32 %v933_v27 }
 0x64a   :  { %1432 = vrcp.f32 %v939_v38 }
 0x651   :  { %v1427_v29 = vpop.eup %1426 }
 0x652   :  { %v1429_v30 = vpop.eup %1428  ;;  %v943_v31 = vmul.f32 %v1427_v29, %v1938_v49  ;;  %v1492_v49 = vld [vmem:[#allocation7 + $0xc4] ss:$16 sps:$4 sm:$0xff]  }
 0x653   :  { %v1431_v32 = vpop.eup %1430 }
 0x654   :  { %v944_v53 = vmul.f32 %v1431_v32, %v1429_v30  ;;  %v1433_v55 = vpop.eup %1432 }
 0x656   :  { %v1974_v54 = vadd.f32 %v944_v53, %v943_v31 }
 0x658   :  { %1434 = vtanh.f32 %v1974_v54 }
 0x662   :  { %v1435_v56 = vpop.eup %1434 }
 0x663   :  { %v947_v57 = vmul.f32 %v1435_v56, %v1433_v55 }
 0x665   :  { %949 = vst [vmem:[#allocation9 + $0x28] sm:$0xff] %v947_v57  ;;  %v955_v58 = vpack.c.bf16 %v947_v57, %v947_v57 }
 0x667   :  { %989 = vmatmul.mubr.bf16.vlgmr.msra.gmra.mrb[24].mxu0 %v955_v58  ;;  %1030 = vmatmul.mubr.bf16.vlgmr.msra.gmra.mrb[24].mxu1 %v955_v58 }
 0x668   :  { %1075 = vmatpush1.bf16.msra.mxu0 %v1470_v59  ;;  %1116 = vmatpush1.bf16.msra.mxu1 %v1471_v60 }
 0x669   :  { %1076 = vmatprep.subr.bf16.mxu0 %v1472_v61  ;;  %1117 = vmatprep.subr.bf16.mxu1 %v1473_v62  ;;  %v1069_v61 = vld [vmem:[#allocation4 + $0xe0] sm:$0xff]  ;;  %v1070_v62 = vld [vmem:[#allocation4 + $0xe8] sm:$0xff] }
 0x66a   :  { %1106 = vmatprep.mubr.bf16.mxu0 %v1602_v0  ;;  %1147 = vmatprep.mubr.bf16.mxu1 %v1602_v0  ;;  %v1484_v0 = vld [vmem:[#allocation7 + $0x84] ss:$16 sps:$4 sm:$0xff]  }
 0x66c   :  { %1077 = vmatpush1.bf16.msra.mxu0 %v1474_v63  ;;  %1118 = vmatpush1.bf16.msra.mxu1 %v1475_v34 }
 0x66d   :  { %1078 = vmatprep.subr.bf16.mxu0 %v1476_v1  ;;  %1119 = vmatprep.subr.bf16.mxu1 %v1477_v35 }
 0x670   :  { %1079 = vmatpush1.bf16.msra.mxu0 %v1478_v6  ;;  %1120 = vmatpush1.bf16.msra.mxu1 %v1479_v36 }
 0x671   :  { %1080 = vmatprep.subr.bf16.mxu0 %v1480_v37  ;;  %1121 = vmatprep.subr.bf16.mxu1 %v1481_v39 }
 0x674   :  { %1081 = vmatpush1.bf16.msra.mxu0 %v1482_v40  ;;  %1122 = vmatpush1.bf16.msra.mxu1 %v1483_v41 }
 0x675   :  { %1082 = vmatprep.subr.bf16.mxu0 %v1484_v0  ;;  %1123 = vmatprep.subr.bf16.mxu1 %v1485_v42  ;;  %v1071_v42 = vld [vmem:[#allocation4 + $0xf0] sm:$0xff] }
 0x678   :  { %1083 = vmatpush1.bf16.msra.mxu0 %v1486_v43  ;;  %1124 = vmatpush1.bf16.msra.mxu1 %v1487_v44  ;;  %v1072_v44 = vld [vmem:[#allocation4 + $0xf8] sm:$0xff] }
 0x679   :  { %1084 = vmatprep.subr.bf16.mxu0 %v1488_v45  ;;  %1125 = vmatprep.subr.bf16.mxu1 %v1489_v46 }
 0x67c   :  { %1085 = vmatpush1.bf16.msra.mxu0 %v1490_v47  ;;  %1126 = vmatpush1.bf16.msra.mxu1 %v1491_v48 }
 0x67d   :  { %1086 = vmatprep.subr.bf16.mxu0 %v1492_v49  ;;  %1127 = vmatprep.subr.bf16.mxu1 %v1493_v50 }
 0x680   :  { %1087 = vmatpush1.bf16.msra.mxu0 %v1494_v33  ;;  %1128 = vmatpush1.bf16.msra.mxu1 %v1495_v51 }
 0x681   :  { %1088 = vmatprep.subr.bf16.mxu0 %v1496_v52  ;;  %1129 = vmatprep.subr.bf16.mxu1 %v1497_v2 }
 0x684   :  { %1089 = vmatpush1.bf16.msra.mxu0 %v1498_v3  ;;  %1130 = vmatpush1.bf16.msra.mxu1 %v1499_v4 }
 0x73a   :  { %v990_v8 = vpop.f32.mrb[24].mxu0  ;;  %v1031_v9 = vpop.f32.mrb[24].mxu1 }
 0x73b   :  { %v1038_v10 = vadd.f32 %v990_v8, %v951_v5  ;;  %v992_v11 = vpop.f32.mrb[25].mxu0  ;;  %v1033_v12 = vpop.f32.mrb[25].mxu1  ;;  %v1040_v21 = vadd.f32 %v1031_v9, %v953_v20 }
 0x73c   :  { %v1039_v13 = vadd.f32 %v992_v11, %v952_v7  ;;  %v994_v14 = vpop.f32.mrb[26].mxu0  ;;  %v1035_v15 = vpop.f32.mrb[26].mxu1  ;;  %v1041_v25 = vadd.f32 %v1033_v12, %v954_v22 }
 0x73d   :  { %v1274_v16 = vmul.f32 -1.442695, %v1038_v10  ;;  %v995_v17 = vpop.f32.mrb[27].mxu0  ;;  %v1036_v18 = vpop.f32.mrb[27].mxu1  ;;  %v1276_v23 = vmul.f32 -1.442695, %v1040_v21 }
 0x73e   :  { %v1275_v19 = vmul.f32 -1.442695, %v1039_v13 }
 0x73f   :  { %1436 = vpow2.f32 %v1274_v16 }
 0x740   :  { %1438 = vpow2.f32 %v1275_v19 }
 0x741   :  { %1440 = vpow2.f32 %v1276_v23 }
 0x749   :  { %v1437_v24 = vpop.eup %1436 }
 0x74a   :  { %v1045_v26 = vadd.f32 1.0, %v1437_v24  ;;  %v1439_v27 = vpop.eup %1438 }
 0x74b   :  { %v1051_v28 = vadd.f32 1.0, %v1439_v27  ;;  %v1441_v29 = vpop.eup %1440 }
 0x74c   :  { %1442 = vrcp.f32 %v1045_v26  ;;  %v1057_v53 = vadd.f32 1.0, %v1441_v29 }
 0x74d   :  { %1444 = vtanh.f32 %v1041_v25 }
 0x74e   :  { %1446 = vrcp.f32 %v1051_v28 }
 0x74f   :  { %1448 = vrcp.f32 %v1057_v53 }
 0x756   :  { %v1443_v30 = vpop.eup %1442 }
 0x757   :  { %v1445_v31 = vpop.eup %1444  ;;  %v1061_v32 = vmul.f32 %v1443_v30, %v1974_v54 }
 0x758   :  { %v1447_v38 = vpop.eup %1446 }
 0x759   :  { %v1062_v55 = vmul.f32 %v1447_v38, %v1445_v31  ;;  %v1449_v57 = vpop.eup %1448 }
 0x75b   :  { %v1063_v56 = vadd.f32 %v1062_v55, %v1061_v32 }
 0x75d   :  { %1450 = vtanh.f32 %v1063_v56 }
 0x767   :  { %v1451_v58 = vpop.eup %1450 }
 0x768   :  { %v1065_v59 = vmul.f32 %v1451_v58, %v1449_v57 }
 0x76a   :  { %1067 = vst [vmem:[#allocation9 + $0x30] sm:$0xff] %v1065_v59  ;;  %v1073_v60 = vpack.c.bf16 %v1065_v59, %v1065_v59 }
 0x76c   :  { %1107 = vmatmul.mubr.bf16.vlgmr.msra.gmra.mrb[28].mxu0 %v1073_v60  ;;  %1148 = vmatmul.mubr.bf16.vlgmr.msra.gmra.mrb[28].mxu1 %v1073_v60 }
 0x83f   :  { %v1108_v63 = vpop.f32.mrb[28].mxu0  ;;  %v1149_v34 = vpop.f32.mrb[28].mxu1 }
 0x840   :  { %v1156_v1 = vadd.f32 %v1108_v63, %v1069_v61  ;;  %v1110_v35 = vpop.f32.mrb[29].mxu0  ;;  %v1151_v54 = vpop.f32.mrb[29].mxu1  ;;  %v1158_v43 = vadd.f32 %v1149_v34, %v1071_v42 }
 0x841   :  { %v1157_v6 = vadd.f32 %v1110_v35, %v1070_v62  ;;  %v1112_v36 = vpop.f32.mrb[30].mxu0  ;;  %v1153_v37 = vpop.f32.mrb[30].mxu1  ;;  %v1159_v47 = vadd.f32 %v1151_v54, %v1072_v44 }
 0x842   :  { %v1277_v39 = vmul.f32 -1.442695, %v1156_v1  ;;  %v1113_v40 = vpop.f32.mrb[31].mxu0  ;;  %v1154_v41 = vpop.f32.mrb[31].mxu1  ;;  %v1279_v45 = vmul.f32 -1.442695, %v1158_v43 }
 0x843   :  { %v1278_v0 = vmul.f32 -1.442695, %v1157_v6 }
 0x844   :  { %1452 = vpow2.f32 %v1277_v39 }
 0x845   :  { %1454 = vpow2.f32 %v1278_v0 }
 0x846   :  { %1456 = vpow2.f32 %v1279_v45 }
 0x84e   :  { %v1453_v46 = vpop.eup %1452 }
 0x84f   :  { %v1163_v48 = vadd.f32 1.0, %v1453_v46  ;;  %v1455_v49 = vpop.eup %1454 }
 0x850   :  { %v1169_v50 = vadd.f32 1.0, %v1455_v49  ;;  %v1457_v33 = vpop.eup %1456 }
 0x851   :  { %1458 = vrcp.f32 %v1163_v48  ;;  %v1175_v4 = vadd.f32 1.0, %v1457_v33 }
 0x852   :  { %1460 = vtanh.f32 %v1159_v47 }
 0x853   :  { %1462 = vrcp.f32 %v1169_v50 }
 0x854   :  { %1464 = vrcp.f32 %v1175_v4 }
 0x85b   :  { %v1459_v51 = vpop.eup %1458 }
 0x85c   :  { %v1461_v52 = vpop.eup %1460  ;;  %v1179_v2 = vmul.f32 %v1459_v51, %v1063_v56 }
 0x85d   :  { %v1463_v3 = vpop.eup %1462 }
 0x85e   :  { %v1180_v5 = vmul.f32 %v1463_v3, %v1461_v52 }
 0x860   :  { %v1181_v7 = vadd.f32 %v1180_v5, %v1179_v2 }
 0x862   :  { %1466 = vtanh.f32 %v1181_v7  ;;  %1191 = vst [vmem:[#allocation10] sm:$0xff] %v1181_v7 }
 0x863   :  { %1555 = shalt.err (!%p1552_p6)
}
 0x864   :  { %s1556_s16 = scalar_lea.hbm %s2007_s3, 128 }
 0x865   :  { %p1557_p7 = scmp.ne.s32.totalorder %s2007_s3, %s1556_s16  ;;  %p1560_p8 = scmp.lt.u32.totalorder %s1556_s16, %s2007_s3 }
 0x867   :  { %p1562_p9 = pnand %p1560_p8, %p1557_p7 }
 0x869   :  { %1565 = shalt.err (!%p1562_p9)
}
 0x86a   :  { %1213 = dma.vmem_to_hbm [thread:$0]  %s1211_s12, 128, %s2007_s3, [#allocation11]   ;;  %v1465_v8 = vpop.eup %1464 }
 0x86b   :  { %s1605_s23 = smov [#allocation9]  }
 0x86c   :  { %s1197_s24 = sshll.u32 %s1605_s23, 4  ;;  %v1467_v9 = vpop.eup %1466  ;;  %s1198_s24 = int_to_ptr.vmem [resolvable:$true] %s1197_s24 }
 0x86d   :  { %v1183_v10 = vmul.f32 %v1467_v9, %v1465_v8  ;;  %s1566_s25 = scalar_lea.vmem %s1198_s24, 1024  ;;  %p1571_p11 = scmp.lt.s32.totalorder %s1198_s24, %s1198_s24 }
 0x86e   :  { %p1567_p10 = scmp.ne.s32.totalorder %s1198_s24, %s1566_s25  ;;  %p1572_p12 = scmp.lt.s32.totalorder %s1566_s25, %s1566_s25 }
 0x86f   :  { %1185 = vst [vmem:[#allocation9 + $0x38] sm:$0xff] %v1183_v10 }
 0x870   :  { %p1573_p13 = por %p1572_p12, %p1571_p11 }
 0x872   :  { %p1574_p0 = pnand %p1573_p13, %p1567_p10 }
 0x874   :  { %1577 = shalt.err (!%p1574_p0)
}
 0x875   :  { %s1578_s28 = scalar_lea.hbm %s2006_s2, 1024 }
 0x876   :  { %p1579_p1 = scmp.ne.s32.totalorder %s2006_s2, %s1578_s28  ;;  %p1582_p2 = scmp.lt.u32.totalorder %s1578_s28, %s2006_s2 }
 0x878   :  { %p1584_p3 = pnand %p1582_p2, %p1579_p1 }
 0x87a   :  { %1587 = shalt.err (!%p1584_p3)
}
 0x87b   :  { %s1606_s5 = smov 128   ;;  %s1607_s6 = smov 8  }
 0x87c   :  { %1203 = dma.vmem_to_hbm [thread:$0]  %s1198_s24, 1024, %s2006_s2, [#allocation6], %s1606_s5, %s1606_s5, %s1607_s6  }
 0x87d   :  { %1592 = dma.done.wait [#allocation6], 1024  }
 0x87e   :  { %1593 = vsyncadd [#allocation6], 4294966272 }
 0x87f   :  { %1594 = dma.done.wait [#allocation11], 128  }
 0x880   :  { %1595 = vsyncadd [#allocation11], 4294967168 }
 0x881   :  { %1220 = vsyncpa [#allocation5], 1 }
 0x882   :  { %1221 = vsyncpa [#allocation8], 1 }
 0x883   :  { %1222 = vsyncpa [#allocation6], 1 }
 0x884   :  { %1223 = vsyncpa [#allocation11], 1 }

</bundles_post_ra>
